<compile_context>
chip_gen: v6e
topology: v6e:2x2x1
jax: 0.10.0
libtpu: 0.0.40
codegen_flags: <defaults>
</compile_context>

<pallas_src>
import numpy as np
import jax
import jax.numpy as jnp
from jax.experimental import pallas as pl
from jax.experimental.pallas import tpu as pltpu

_LANE = 128
_SUBLANE = 8
_NEG_BIG = -1e30
_VMEM_LIMIT = 32 * 1024 * 1024


def _round_up(v, m):
    return (v + m - 1) // m * m


def _softplus(s):
    # numerically stable softplus
    return jnp.maximum(s, 0.0) + jnp.log1p(jnp.exp(-jnp.abs(s)))


def _static_value(a):
    """Concrete numpy value of `a`, or None if it is traced (inside jit/grad)."""
    try:
        return np.asarray(a)
    except Exception:
        return None


# ------------------------------------------------------------------ prologue --
def _prologue_kernel(x_ref, y_ref, w1x_ref, w1y_ref, b1_ref, w2r_ref, scale_ref,
                     b2_ref, hxs_ref, hys_ref, t0_ref):
    """hx = x@W1x + b1, hy = y@W1y, diagonal T0, and pre-scaled copies."""
    hx = jnp.dot(x_ref[...], w1x_ref[...], preferred_element_type=jnp.float32)
    hx = hx + b1_ref[...]                       # fold b1 once, here
    hy = jnp.dot(y_ref[...], w1y_ref[...], preferred_element_type=jnp.float32)
    # T0[i] = softplus(relu(hx_i + hy_i) . w2 + b2)          (O(N*H), cheap)
    h0 = jnp.maximum(hx + hy, 0.0)
    s0 = jnp.sum(h0 * w2r_ref[...], axis=1, keepdims=True) + b2_ref[0, 0]
    t0_ref[...] = _softplus(s0)
    # Pre-scale rows (by w2 in the grouped fast path, by ones in the fallback):
    # hoists the per-(i,j,h) multiply out of the O(N^2*H) pairwise loop.
    scale = scale_ref[...]
    hxs_ref[...] = hx * scale
    hys_ref[...] = hy * scale


# -------------------------------------------------- pairwise + online logsumexp
def _make_pair_kernel(*, tile_i, tile_j, hp, hp_pos):
    grouped = hp_pos is not None

    def kernel(*refs):
        if grouped:
            hys_ref, hxt_ref, cmask_ref, b2_ref, lse_ref, m_s, l_s = refs
            w2_ref = None
        else:
            hys_ref, hxt_ref, cmask_ref, b2_ref, w2_ref, lse_ref, m_s, l_s = refs

        j = pl.program_id(1)
        nj = pl.num_programs(1)

        @pl.when(j == 0)
        def _init():
            m_s[...] = jnp.full((tile_i, 1), _NEG_BIG, jnp.float32)
            l_s[...] = jnp.zeros((tile_i, 1), jnp.float32)

        # Chunked H reduction: one hidden unit at a time, an outer-sum
        # broadcast [tile_i,1] + [1,tile_j], then max/min, accumulated into a
        # single [tile_i, tile_j] f32 accumulator.  No [.., H, ..] 3-D
        # intermediate is materialised (the old version round-tripped ~4 MiB
        # per elementwise op through VMEM and saturated the store slot).
        acc = jnp.zeros((tile_i, tile_j), jnp.float32)
        for hh in range(hp):
            col = hys_ref[:, hh:hh + 1]          # [tile_i, 1]   rows i
            row = hxt_ref[hh:hh + 1, :]          # [1, tile_j]   cols j
            z = col + row                        # -> [tile_i, tile_j]
            if grouped:
                # rows pre-scaled by w2; hidden units permuted w2>=0 first:
                # relu(p)*w2 == max(z,0) (pos group) / min(z,0) (neg group).
                c = jnp.maximum(z, 0.0) if hh < hp_pos else jnp.minimum(z, 0.0)
            else:
                c = jnp.maximum(z, 0.0) * w2_ref[hh]     # w2[h] SMEM scalar
            acc = acc + c

        # pairwise score T1[i, j]; padded columns get -1e30 added after the
        # softplus (single VALU add per vreg, exp underflows to 0 in the LSE).
        t = _softplus(acc + b2_ref[0, 0]) + cmask_ref[...]

        # streaming logsumexp over the j grid axis
        m_prev = m_s[...]
        m_new = jnp.maximum(m_prev, jnp.max(t, axis=1, keepdims=True))
        l_s[...] = (jnp.exp(m_prev - m_new) * l_s[...]
                    + jnp.sum(jnp.exp(t - m_new), axis=1, keepdims=True))
        m_s[...] = m_new

        @pl.when(j == nj - 1)
        def _finalize():
            lse_ref[...] = m_s[...] + jnp.log(l_s[...])

    return kernel


def infonce_pallas(x, y, w1, b1, w2, b2):
    """InfoNCE bound.  x:[N,Dx] y:[N,Dy] w1:[Dx+Dy,H] b1:[H] w2:[H,1] b2:[1]."""
    f32 = jnp.float32
    n, dx = x.shape
    dy = y.shape[1]
    h = w1.shape[1]
    hp = _round_up(h, _SUBLANE)      # H only needs sublane (8) alignment now

    # --- static w2 sign grouping (concrete weights only; jit-safe fallback) ---
    w2_flat = w2.reshape(-1)
    w2_np = _static_value(w2_flat)
    if w2_np is not None:
        perm = np.argsort(w2_np < 0, kind="stable").astype(np.int32)  # pos first
        hp_pos = int(np.sum(w2_np >= 0))
        perm_j = jnp.asarray(perm)
        w1_u = jnp.take(w1, perm_j, axis=1)
        b1_u = jnp.take(b1, perm_j, axis=0)
        w2_u = jnp.take(w2_flat, perm_j, axis=0)
    else:
        hp_pos = None                 # traced weights: per-h scalar multiply path
        w1_u, b1_u, w2_u = w1, b1, w2_flat

    # --- tile selection: everything divides exactly (no edge blocks) ----------
    if n >= _LANE:
        npad = _round_up(n, _LANE)
        tile_i = tile_j = _LANE       # restored to 128 (3-D score block is gone)
    else:
        npad = _round_up(n, _SUBLANE)
        tile_i = tile_j = npad
    gi, gj = npad // tile_i, npad // tile_j
    if npad % 256 == 0:
        tile_p = 256                  # feeds the 2x256 MXU on v6e/v7x
    elif npad % _LANE == 0:
        tile_p = _LANE
    else:
        tile_p = npad

    # --- wrapper-side layout plumbing (zero padding is mathematically exact) --
    x_p = jnp.pad(x.astype(f32), ((0, npad - n), (0, 0)))
    y_p = jnp.pad(y.astype(f32), ((0, npad - n), (0, 0)))
    w1x = jnp.pad(w1_u[:dx].astype(f32), ((0, 0), (0, hp - h)))
    w1y = jnp.pad(w1_u[dx:].astype(f32), ((0, 0), (0, hp - h)))
    b1_p = jnp.pad(b1_u.astype(f32).reshape(1, h), ((0, 0), (0, hp - h)))
    w2_row = jnp.pad(w2_u.astype(f32).reshape(1, h), ((0, 0), (0, hp - h)))
    b2_p = b2.astype(f32).reshape(1, 1)
    scale_row = w2_row if hp_pos is not None else jnp.ones((1, hp), f32)
    colmask = jnp.where(jnp.arange(npad) < n, 0.0, _NEG_BIG
                        ).astype(f32).reshape(1, npad)

    # --- prologue: hx(+b1), hy, T0 diagonal, pre-scaled rows (all O(N*H)) -----
    hxs_full, hys_full, t0_full = pl.pallas_call(
        _prologue_kernel,
        grid=(npad // tile_p,),
        in_specs=[
            pl.BlockSpec((tile_p, dx), lambda i: (i, 0)),
            pl.BlockSpec((tile_p, dy), lambda i: (i, 0)),
            pl.BlockSpec((dx, hp), lambda i: (0, 0)),
            pl.BlockSpec((dy, hp), lambda i: (0, 0)),
            pl.BlockSpec((1, hp), lambda i: (0, 0)),              # b1 row
            pl.BlockSpec((1, hp), lambda i: (0, 0)),              # w2 row (T0)
            pl.BlockSpec((1, hp), lambda i: (0, 0)),              # scale row
            pl.BlockSpec(memory_space=pltpu.MemorySpace.SMEM),    # b2 scalar
        ],
        out_specs=[
            pl.BlockSpec((tile_p, hp), lambda i: (i, 0)),         # (x@W1x+b1)*s
            pl.BlockSpec((tile_p, hp), lambda i: (i, 0)),         # (y@W1y)*s
            pl.BlockSpec((tile_p, 1), lambda i: (i, 0)),          # T0 diagonal
        ],
        out_shape=[
            jax.ShapeDtypeStruct((npad, hp), f32),
            jax.ShapeDtypeStruct((npad, hp), f32),
            jax.ShapeDtypeStruct((npad, 1), f32),
        ],
        compiler_params=pltpu.CompilerParams(
            dimension_semantics=("parallel",),
            vmem_limit_bytes=_VMEM_LIMIT),
    )(x_p, y_p, w1x, w1y, b1_p, w2_row, scale_row, b2_p)

    # One-shot O(N*H) wrapper transpose: the pairwise kernel reads hx with H on
    # sublanes and the j columns dense on the 128-lane axis (no per-tile
    # transpose / trailing-unit relayout inside the hot loop).
    hxt_full = hxs_full.T                                          # [hp, npad]

    # --- main pairwise kernel: (i, j) grid with online logsumexp over j -------
    kernel = _make_pair_kernel(tile_i=tile_i, tile_j=tile_j, hp=hp, hp_pos=hp_pos)
    in_specs = [
        pl.BlockSpec((tile_i, hp), lambda i, j: (i, 0)),           # hy rows (i)
        pl.BlockSpec((hp, tile_j), lambda i, j: (0, j)),           # hx^T cols (j)
        pl.BlockSpec((1, tile_j), lambda i, j: (0, j)),            # column mask
        pl.BlockSpec(memory_space=pltpu.MemorySpace.SMEM),         # b2 scalar
    ]
    args = [hys_full, hxt_full, colmask, b2_p]
    if hp_pos is None:
        in_specs.append(pl.BlockSpec(memory_space=pltpu.MemorySpace.SMEM))
        args.append(jnp.pad(w2_u.astype(f32), (0, hp - h)))        # w2 scalars

    lse_full = pl.pallas_call(
        kernel,
        grid=(gi, gj),
        in_specs=in_specs,
        out_specs=pl.BlockSpec((tile_i, 1), lambda i, j: (i, 0)),
        out_shape=jax.ShapeDtypeStruct((npad, 1), f32),
        scratch_shapes=[pltpu.VMEM((tile_i, 1), f32),     # running max
                        pltpu.VMEM((tile_i, 1), f32)],    # running sum(exp)
        compiler_params=pltpu.CompilerParams(
            dimension_semantics=("parallel", "arbitrary"),
            vmem_limit_bytes=_VMEM_LIMIT),
        cost_estimate=pl.CostEstimate(
            flops=3 * npad * npad * hp + 12 * npad * npad,
            transcendentals=3 * npad * npad,
            bytes_accessed=4 * (npad * hp * (gi + gj) + 4 * npad)),
    )(*args)

    lse = lse_full[:n, 0]
    t0 = t0_full[:n, 0]
    return jnp.mean(t0) - (jnp.mean(lse) - jnp.log(jnp.float32(n)))


def infonce_ref(x, y, w1, b1, w2, b2):
    """Pure-JAX reference matching the PyTorch forward (identity permutation)."""
    n = x.shape[0]

    def f(a):
        hh = jnp.maximum(a @ w1 + b1, 0.0)
        return jax.nn.softplus(hh @ w2 + b2)

    t0 = f(jnp.concatenate([x, y], axis=-1))                  # [N, 1]
    x_tile = jnp.broadcast_to(x[None], (n, n, x.shape[1]))
    y_tile = jnp.broadcast_to(y[:, None], (n, n, y.shape[1]))
    t1 = f(jnp.concatenate([x_tile, y_tile], axis=-1))        # [N, N, 1]
    lse = jax.scipy.special.logsumexp(t1, axis=1)             # [N, 1]
    return t0.mean() - (lse.mean() - jnp.log(jnp.float32(n)))


if __name__ == "__main__":
    # Full-f32 matmuls so the XLA reference and the in-kernel MXU dots agree.
    jax.config.update("jax_default_matmul_precision", "highest")

    # Small shapes consistent with the module (x_dim, y_dim, hidden scaled down).
    N, DX, DY, H = 250, 32, 48, 40

    key = jax.random.PRNGKey(0)
    kx, ky, k1, k2, k3, k4 = jax.random.split(key, 6)
    x = jax.random.normal(kx, (N, DX), jnp.float32)
    y = jax.random.normal(ky, (N, DY), jnp.float32)
    w1 = jax.random.normal(k1, (DX + DY, H), jnp.float32) * 0.05
    b1 = jax.random.normal(k2, (H,), jnp.float32) * 0.05
    w2 = jax.random.normal(k3, (H, 1), jnp.float32) * 0.05
    b2 = jax.random.normal(k4, (1,), jnp.float32) * 0.05

    # Multi-tile path: 2x2 (i, j) grid of 128-tiles, online LSE across j tiles,
    # padded rows/columns (250 -> 256) masked / discarded.
    out = jax.block_until_ready(infonce_pallas(x, y, w1, b1, w2, b2))
    ref = jax.block_until_ready(infonce_ref(x, y, w1, b1, w2, b2))
    assert np.allclose(np.asarray(out), np.asarray(ref), rtol=1e-3, atol=5e-4), (out, ref)

    # Single-tile path (N < 128).
    n2 = 16
    out2 = jax.block_until_ready(infonce_pallas(x[:n2], y[:n2], w1, b1, w2, b2))
    ref2 = jax.block_until_ready(infonce_ref(x[:n2], y[:n2], w1, b1, w2, b2))
    assert np.allclose(np.asarray(out2), np.asarray(ref2), rtol=1e-3, atol=5e-4), (out2, ref2)

    print("KERNEL_OK")
</pallas_src>

<mosaic_0001>
module attributes {stable_mosaic.version = 11 : i64} {
  func.func @_prologue_kernel(%arg0: i32, %arg1: memref<256x32xf32, #tpu.memory_space<vmem>>, %arg2: memref<256x48xf32, #tpu.memory_space<vmem>>, %arg3: memref<32x40xf32, #tpu.memory_space<vmem>>, %arg4: memref<48x40xf32, #tpu.memory_space<vmem>>, %arg5: memref<1x40xf32, #tpu.memory_space<vmem>>, %arg6: memref<1x40xf32, #tpu.memory_space<vmem>>, %arg7: memref<1x40xf32, #tpu.memory_space<vmem>>, %arg8: memref<1x1xf32, #tpu.memory_space<smem>>, %arg9: memref<256x40xf32, #tpu.memory_space<vmem>>, %arg10: memref<256x40xf32, #tpu.memory_space<vmem>>, %arg11: memref<256x1xf32, #tpu.memory_space<vmem>>) attributes {dimension_semantics = [#tpu.dimension_semantics<parallel>], iteration_bounds = array<i64: 1>, scalar_prefetch = 0 : i64, scratch_operands = 0 : i64, tpu.core_type = #tpu.core_type<tc>, window_params = [{transform_indices = @transform_0, window_bounds = array<i64: 256, 32>}, {transform_indices = @transform_1, window_bounds = array<i64: 256, 48>}, {pipeline_mode = #tpu.pipeline_mode<synchronous>, transform_indices = @transform_2, window_bounds = array<i64: 32, 40>}, {pipeline_mode = #tpu.pipeline_mode<synchronous>, transform_indices = @transform_3, window_bounds = array<i64: 48, 40>}, {pipeline_mode = #tpu.pipeline_mode<synchronous>, transform_indices = @transform_4, window_bounds = array<i64: 1, 40>}, {pipeline_mode = #tpu.pipeline_mode<synchronous>, transform_indices = @transform_5, window_bounds = array<i64: 1, 40>}, {pipeline_mode = #tpu.pipeline_mode<synchronous>, transform_indices = @transform_6, window_bounds = array<i64: 1, 40>}, {transform_indices = @transform_7, window_bounds = array<i64: 1, 1>}, {transform_indices = @transform_8, window_bounds = array<i64: 256, 40>}, {transform_indices = @transform_9, window_bounds = array<i64: 256, 40>}, {transform_indices = @transform_10, window_bounds = array<i64: 256, 1>}]} {
    %c0 = arith.constant 0 : index
    %c0_0 = arith.constant 0 : index
    %0 = vector.load %arg1[%c0, %c0_0] : memref<256x32xf32, #tpu.memory_space<vmem>>, vector<256x32xf32>
    %c0_1 = arith.constant 0 : index
    %c0_2 = arith.constant 0 : index
    %1 = vector.load %arg3[%c0_1, %c0_2] : memref<32x40xf32, #tpu.memory_space<vmem>>, vector<32x40xf32>
    %cst = arith.constant dense<0.000000e+00> : vector<256x40xf32>
    %2 = tpu.matmul %0, %1, %cst {dimension_numbers = #tpu.dot_dimension_numbers<[1], [0], [0], [1], [0, 0, 1, 1], [], []>, precision = #tpu.contract_precision<fp32>} : vector<256x32xf32>, vector<32x40xf32>, vector<256x40xf32> -> vector<256x40xf32>
    %c0_3 = arith.constant 0 : index
    %c0_4 = arith.constant 0 : index
    %3 = vector.load %arg5[%c0_3, %c0_4] : memref<1x40xf32, #tpu.memory_space<vmem>>, vector<1x40xf32>
    %4 = vector.broadcast %3 : vector<1x40xf32> to vector<256x40xf32>
    %5 = arith.addf %2, %4 : vector<256x40xf32>
    %c0_5 = arith.constant 0 : index
    %c0_6 = arith.constant 0 : index
    %6 = vector.load %arg2[%c0_5, %c0_6] : memref<256x48xf32, #tpu.memory_space<vmem>>, vector<256x48xf32>
    %c0_7 = arith.constant 0 : index
    %c0_8 = arith.constant 0 : index
    %7 = vector.load %arg4[%c0_7, %c0_8] : memref<48x40xf32, #tpu.memory_space<vmem>>, vector<48x40xf32>
    %cst_9 = arith.constant dense<0.000000e+00> : vector<256x40xf32>
    %8 = tpu.matmul %6, %7, %cst_9 {dimension_numbers = #tpu.dot_dimension_numbers<[1], [0], [0], [1], [0, 0, 1, 1], [], []>, precision = #tpu.contract_precision<fp32>} : vector<256x48xf32>, vector<48x40xf32>, vector<256x40xf32> -> vector<256x40xf32>
    %9 = arith.addf %5, %8 : vector<256x40xf32>
    %cst_10 = arith.constant 0.000000e+00 : f32
    %10 = vector.broadcast %cst_10 : f32 to vector<256x40xf32>
    %11 = arith.maximumf %9, %10 : vector<256x40xf32>
    %c0_11 = arith.constant 0 : index
    %c0_12 = arith.constant 0 : index
    %12 = vector.load %arg6[%c0_11, %c0_12] : memref<1x40xf32, #tpu.memory_space<vmem>>, vector<1x40xf32>
    %13 = vector.broadcast %12 : vector<1x40xf32> to vector<256x40xf32>
    %14 = arith.mulf %11, %13 : vector<256x40xf32>
    %cst_13 = arith.constant dense<0.000000e+00> : vector<256xf32>
    %15 = vector.multi_reduction <add>, %14, %cst_13 [1] : vector<256x40xf32> to vector<256xf32>
    %16 = vector.shape_cast %15 : vector<256xf32> to vector<256x1xf32>
    %c0_14 = arith.constant 0 : index
    %c0_15 = arith.constant 0 : index
    %17 = memref.load %arg8[%c0_14, %c0_15] : memref<1x1xf32, #tpu.memory_space<smem>>
    %18 = vector.broadcast %17 : f32 to vector<256x1xf32>
    %19 = arith.addf %16, %18 : vector<256x1xf32>
    %cst_16 = arith.constant 0.000000e+00 : f32
    %20 = vector.broadcast %cst_16 : f32 to vector<256x1xf32>
    %21 = arith.maximumf %19, %20 : vector<256x1xf32>
    %22 = math.absf %19 : vector<256x1xf32>
    %cst_17 = arith.constant 0.000000e+00 : f32
    %23 = vector.broadcast %cst_17 : f32 to vector<256x1xf32>
    %24 = arith.subf %23, %22 : vector<256x1xf32>
    %25 = math.exp %24 : vector<256x1xf32>
    %26 = math.log1p %25 : vector<256x1xf32>
    %27 = arith.addf %21, %26 : vector<256x1xf32>
    %c0_18 = arith.constant 0 : index
    %c0_19 = arith.constant 0 : index
    %28 = vector.load %arg11[%c0_18, %c0_19] : memref<256x1xf32, #tpu.memory_space<vmem>>, vector<256x1xf32>
    tpu.vector_store %arg11[%c0_18, %c0_19], %27 {strides = array<i32>} : memref<256x1xf32, #tpu.memory_space<vmem>>, vector<256x1xf32>,
    %c0_20 = arith.constant 0 : index
    %c0_21 = arith.constant 0 : index
    %29 = vector.load %arg7[%c0_20, %c0_21] : memref<1x40xf32, #tpu.memory_space<vmem>>, vector<1x40xf32>
    %30 = vector.broadcast %29 : vector<1x40xf32> to vector<256x40xf32>
    %31 = arith.mulf %5, %30 : vector<256x40xf32>
    %c0_22 = arith.constant 0 : index
    %c0_23 = arith.constant 0 : index
    %32 = vector.load %arg9[%c0_22, %c0_23] : memref<256x40xf32, #tpu.memory_space<vmem>>, vector<256x40xf32>
    tpu.vector_store %arg9[%c0_22, %c0_23], %31 {strides = array<i32>} : memref<256x40xf32, #tpu.memory_space<vmem>>, vector<256x40xf32>,
    %33 = vector.broadcast %29 : vector<1x40xf32> to vector<256x40xf32>
    %34 = arith.mulf %8, %33 : vector<256x40xf32>
    %c0_24 = arith.constant 0 : index
    %c0_25 = arith.constant 0 : index
    %35 = vector.load %arg10[%c0_24, %c0_25] : memref<256x40xf32, #tpu.memory_space<vmem>>, vector<256x40xf32>
    tpu.vector_store %arg10[%c0_24, %c0_25], %34 {strides = array<i32>} : memref<256x40xf32, #tpu.memory_space<vmem>>, vector<256x40xf32>,
    return
  }
  func.func @transform_0(%arg0: i32) -> (i32, i32) {
    %c0_i32 = arith.constant 0 : i32
    %c0_i32_0 = arith.constant 0 : i32
    return %arg0, %c0_i32 : i32, i32
  }
  func.func @transform_1(%arg0: i32) -> (i32, i32) {
    %c0_i32 = arith.constant 0 : i32
    %c0_i32_0 = arith.constant 0 : i32
    return %arg0, %c0_i32 : i32, i32
  }
  func.func @transform_2(%arg0: i32) -> (i32, i32) {
    %c0_i32 = arith.constant 0 : i32
    %c0_i32_0 = arith.constant 0 : i32
    %c0_i32_1 = arith.constant 0 : i32
    return %c0_i32, %c0_i32_0 : i32, i32
  }
  func.func @transform_3(%arg0: i32) -> (i32, i32) {
    %c0_i32 = arith.constant 0 : i32
    %c0_i32_0 = arith.constant 0 : i32
    %c0_i32_1 = arith.constant 0 : i32
    return %c0_i32, %c0_i32_0 : i32, i32
  }
  func.func @transform_4(%arg0: i32) -> (i32, i32) {
    %c0_i32 = arith.constant 0 : i32
    %c0_i32_0 = arith.constant 0 : i32
    %c0_i32_1 = arith.constant 0 : i32
    return %c0_i32, %c0_i32_0 : i32, i32
  }
  func.func @transform_5(%arg0: i32) -> (i32, i32) {
    %c0_i32 = arith.constant 0 : i32
    %c0_i32_0 = arith.constant 0 : i32
    %c0_i32_1 = arith.constant 0 : i32
    return %c0_i32, %c0_i32_0 : i32, i32
  }
  func.func @transform_6(%arg0: i32) -> (i32, i32) {
    %c0_i32 = arith.constant 0 : i32
    %c0_i32_0 = arith.constant 0 : i32
    %c0_i32_1 = arith.constant 0 : i32
    return %c0_i32, %c0_i32_0 : i32, i32
  }
  func.func @transform_7(%arg0: i32) -> (i32, i32) {
    %c0_i32 = arith.constant 0 : i32
    %c0_i32_0 = arith.constant 0 : i32
    %c0_i32_1 = arith.constant 0 : i32
    return %c0_i32, %c0_i32_0 : i32, i32
  }
  func.func @transform_8(%arg0: i32) -> (i32, i32) {
    %c0_i32 = arith.constant 0 : i32
    %c0_i32_0 = arith.constant 0 : i32
    return %arg0, %c0_i32 : i32, i32
  }
  func.func @transform_9(%arg0: i32) -> (i32, i32) {
    %c0_i32 = arith.constant 0 : i32
    %c0_i32_0 = arith.constant 0 : i32
    return %arg0, %c0_i32 : i32, i32
  }
  func.func @transform_10(%arg0: i32) -> (i32, i32) {
    %c0_i32 = arith.constant 0 : i32
    %c0_i32_0 = arith.constant 0 : i32
    return %arg0, %c0_i32 : i32, i32
  }
}

</mosaic_0001>

<bundles_post_ra>
// kernel: tpu_custom_call.1
= control target key start
LH: loop header
LB: loop body
LE: loop exit
PB: predicated region body
PF: predicated region fallthrough
CT: control target
= control target key end

     0   :  { %vm76_vm0 = vcmask 261120   ;;  %vm2029_vm1 = vcmask 392192   ;;  %vm4073_vm2 = vcmask 326656   ;;  %vm4684_vm3 = vcmask 7168   ;;  %s9469_s2 = inlined_call_operand.vmem [shape: f32[32,40], index: 2, kind: input, shape index: {}]   ;;  %s9470_s0 = inlined_call_operand.vmem [shape: f32[256,32], index: 0, kind: input, shape index: {}]   ;;  %s9471_s3 = inlined_call_operand.vmem [shape: f32[48,40], index: 3, kind: input, shape index: {}]   ;;  %s9472_s1 = inlined_call_operand.vmem [shape: f32[256,48], index: 1, kind: input, shape index: {}]   ;;  %s9473_s4 = inlined_call_operand.vmem [shape: f32[1,40], index: 4, kind: input, shape index: {}]   ;;  %s9474_s6 = inlined_call_operand.vmem [shape: f32[1,40], index: 6, kind: input, shape index: {}]   ;;  %s9475_s8 = inlined_call_operand.vmem [shape: f32[256,40], index: 8, kind: output, shape index: {0}]   ;;  %s9476_s5 = inlined_call_operand.vmem [shape: f32[1,40], index: 5, kind: input, shape index: {}]   ;;  %s9477_s9 = inlined_call_operand.vmem [shape: f32[256,40], index: 9, kind: output, shape index: {1}]   ;;  %s9478_s7 = inlined_call_operand.<no memory space> [shape: f32[1,1], index: 7, kind: input, shape index: {}]   ;;  %s9479_s10 = inlined_call_operand.vmem [shape: f32[256,1], index: 10, kind: output, shape index: {2}]  }
   0x1   :  { %v68_v0 = vld [vmem:[%s9469_s2 + $0x18] sm:$0xff]  ;;  %v67_v1 = vld [vmem:[%s9469_s2 + $0x10] sm:$0xff]  ;;  %v66_v2 = vld [vmem:[%s9469_s2 + $0x8] sm:$0xff] }
   0x2   :  { %v6200_v3 = vand.u32 4294901760, %v68_v0  ;;  %v6202_v4 = vand.u32 4294901760, %v67_v1  ;;  %v6204_v5 = vand.u32 4294901760, %v66_v2  ;;  %v65_v6 = vld [vmem:[%s9469_s2] sm:$0xff]  ;;  %v34_v8 = vld [vmem:[%s9470_s0 + $0x8] sm:$0xff]  ;;  %v35_v12 = vld [vmem:[%s9470_s0 + $0x10] sm:$0xff] }
   0x3   :  { %v33_v7 = vld [vmem:[%s9470_s0] sm:$0xff]  ;;  %v6215_v9 = vand.u32 4294901760, %v65_v6  ;;  %v81_v11 = vsel %vm76_vm0, %v34_v8, 0  ;;  %v36_v13 = vld [vmem:[%s9470_s0 + $0x18] sm:$0xff]  ;;  %v84_v19 = vsel %vm76_vm0, %v35_v12, 0  ;;  %v38_v39 = vld [vmem:[%s9470_s0 + $0x28] sm:$0xff] }
   0x4   :  { %v78_v10 = vsel %vm76_vm0, %v33_v7, 0  ;;  %5311 = vmatprep.subr.mxu0 %v6200_v3  ;;  %v6227_v14 = vsub.f32 %v68_v0, %v6200_v3  ;;  %v6231_v16 = vand.u32 4294901760, %v81_v11  ;;  %v6234_v17 = vsub.f32 %v67_v1, %v6202_v4  ;;  %v37_v38 = vld [vmem:[%s9470_s0 + $0x20] sm:$0xff]  ;;  %v39_v44 = vld [vmem:[%s9470_s0 + $0x30] sm:$0xff]  ;;  %v40_v45 = vld [vmem:[%s9470_s0 + $0x38] sm:$0xff] }
   0x5   :  { %v6229_v15 = vand.u32 4294901760, %v78_v10  ;;  %5312 = vmatpush3.msra.mxu0 %v6200_v3  ;;  %v6238_v18 = vsub.f32 %v66_v2, %v6204_v5  ;;  %v87_v20 = vsel %vm76_vm0, %v36_v13, 0  ;;  %v6243_v21 = vsub.f32 %v65_v6, %v6215_v9  ;;  %v41_v50 = vld [vmem:[%s9470_s0 + $0x40] sm:$0xff]  ;;  %v42_v51 = vld [vmem:[%s9470_s0 + $0x48] sm:$0xff]  ;;  %v43_v0 = vld [vmem:[%s9470_s0 + $0x50] sm:$0xff] }
   0x6   :  { %9670 = vst [vmem:[#allocation4_spill] sm:$0xff] %v6231_v16  ;;  %5313 = vmatprep.subr.mxu0 %v6202_v4  ;;  %v6247_v22 = vand.u32 4294901760, %v6227_v14  ;;  %v6253_v24 = vsub.f32 %v81_v11, %v6231_v16  ;;  %v6256_v25 = vand.u32 4294901760, %v6234_v17  ;;  %v6263_v27 = vand.u32 4294901760, %v84_v19  ;;  %v44_v1 = vld [vmem:[%s9470_s0 + $0x58] sm:$0xff] }
   0x7   :  { %9669 = vst [vmem:[#allocation3_spill] sm:$0xff] %v6229_v15  ;;  %v6250_v23 = vsub.f32 %v78_v10, %v6229_v15  ;;  %5375 = vmatprep.mubr.f32.mxu1 %v6229_v15  ;;  %5314 = vmatpush3.msra.mxu0 %v6202_v4  ;;  %v6261_v26 = vand.u32 4294901760, %v6238_v18  ;;  %v6265_v28 = vand.u32 4294901760, %v87_v20  ;;  %v6268_v29 = vand.u32 4294901760, %v6243_v21 }
   0x8   :  { %9671 = vst [vmem:[#allocation5_spill] sm:$0xff] %v6263_v27  ;;  %5315 = vmatprep.subr.mxu0 %v6204_v5  ;;  %v590_v30 = vsub.f32 %v6227_v14, %v6247_v22  ;;  %v9492_v32 = vand.u32 4294901760, %v6253_v24  ;;  %v597_v33 = vsub.f32 %v6234_v17, %v6256_v25  ;;  %v6281_v35 = vsub.f32 %v84_v19, %v6263_v27 }
   0x9   :  { %9672 = vst [vmem:[#allocation6_spill] sm:$0xff] %v6265_v28  ;;  %v9493_v31 = vand.u32 4294901760, %v6250_v23  ;;  %5316 = vmatpush3.msra.mxu0 %v6204_v5  ;;  %v604_v34 = vsub.f32 %v6238_v18, %v6261_v26  ;;  %v6284_v36 = vsub.f32 %v87_v20, %v6265_v28  ;;  %v611_v37 = vsub.f32 %v6243_v21, %v6268_v29 }
   0xa   :  { %5317 = vmatprep.subr.mxu0 %v6215_v9  ;;  %v591_v40 = vand.u32 4294901760, %v590_v30  ;;  %v255_v42 = vsub.f32 %v6253_v24, %v9492_v32  ;;  %v598_v43 = vand.u32 4294901760, %v597_v33  ;;  %v9491_v47 = vand.u32 4294901760, %v6281_v35 }
   0xb   :  { %v245_v41 = vsub.f32 %v6250_v23, %v9493_v31  ;;  %5318 = vmatpush3.msra.mxu0 %v6215_v9  ;;  %v605_v46 = vand.u32 4294901760, %v604_v34  ;;  %v9490_v48 = vand.u32 4294901760, %v6284_v36  ;;  %v612_v49 = vand.u32 4294901760, %v611_v37  ;;  %v55_v31 = vld [vmem:[%s9470_s0 + $0xb0] sm:$0xff] }
   0xc   :  { %5367 = vmatprep.subr.mxu1 %v591_v40  ;;  %v256_v53 = vand.u32 4294901760, %v255_v42  ;;  %5423 = vmatprep.subr.mxu0 %v6227_v14  ;;  %v90_v54 = vsel %vm76_vm0, %v37_v38, 0  ;;  %v93_v55 = vsel %vm76_vm0, %v38_v39, 0  ;;  %v265_v56 = vsub.f32 %v6281_v35, %v9491_v47 }
   0xd   :  { %v246_v52 = vand.u32 4294901760, %v245_v41  ;;  %5368 = vmatpush3.msra.mxu1 %v591_v40  ;;  %v275_v57 = vsub.f32 %v6284_v36, %v9490_v48  ;;  %v6325_v58 = vand.u32 4294901760, %v90_v54  ;;  %v6327_v59 = vand.u32 4294901760, %v93_v55 }
   0xe   :  { %5369 = vmatprep.subr.mxu1 %v598_v43  ;;  %v96_v60 = vsel %vm76_vm0, %v39_v44, 0  ;;  %v99_v61 = vsel %vm76_vm0, %v40_v45, 0  ;;  %v102_v62 = vsel %vm76_vm0, %v41_v50, 0  ;;  %v105_v63 = vsel %vm76_vm0, %v42_v51, 0  ;;  %v46_v50 = vld [vmem:[%s9470_s0 + $0x68] sm:$0xff] }
   0xf   :  { %9673 = vst [vmem:[#allocation7_spill] sm:$0xff] %v6325_v58  ;;  %9674 = vst [vmem:[#allocation8_spill] sm:$0xff] %v6327_v59  ;;  %5319 = vmatprep.mubr.f32.mxu0 %v246_v52  ;;  %5370 = vmatpush3.msra.mxu1 %v598_v43  ;;  %v266_v2 = vand.u32 4294901760, %v265_v56  ;;  %v276_v6 = vand.u32 4294901760, %v275_v57  ;;  %v6340_v7 = vsub.f32 %v90_v54, %v6325_v58  ;;  %v6346_v10 = vand.u32 4294901760, %v96_v60 }
  0x10   :  { %5320 = vmatmul.mubr.f32.vlgmr.msra.gmra.mxu0 %v256_v53  ;;  %v6343_v8 = vsub.f32 %v93_v55, %v6327_v59  ;;  %5371 = vmatprep.subr.mxu1 %v605_v46  ;;  %v6348_v11 = vand.u32 4294901760, %v99_v61  ;;  %v6350_v12 = vand.u32 4294901760, %v102_v62  ;;  %v6352_v13 = vand.u32 4294901760, %v105_v63 }
  0x11   :  { %5424 = vmatpush3.msra.mxu0 %v6227_v14  ;;  %9675 = vst [vmem:[#allocation9_spill] sm:$0xff] %v6346_v10  ;;  %5322 = vmatprep.mubr.f32.mxu0 %v266_v2  ;;  %v9487_v19 = vand.u32 4294901760, %v6340_v7  ;;  %v108_v30 = vsel %vm76_vm0, %v43_v0, 0  ;;  %v111_v33 = vsel %vm76_vm0, %v44_v1, 0  ;;  %v6359_v14 = vsub.f32 %v96_v60, %v6346_v10 }
  0x12   :  { %9676 = vst [vmem:[#allocation10_spill] sm:$0xff] %v6348_v11  ;;  %9677 = vst [vmem:[#allocation11_spill] sm:$0xff] %v6350_v12  ;;  %5372 = vmatpush3.msra.mxu1 %v605_v46  ;;  %v9486_v20 = vand.u32 4294901760, %v6343_v8  ;;  %v6362_v34 = vsub.f32 %v99_v61, %v6348_v11  ;;  %v6365_v37 = vsub.f32 %v102_v62, %v6350_v12  ;;  %v6376_v41 = vand.u32 4294901760, %v108_v30  ;;  %v47_v61 = vld [vmem:[%s9470_s0 + $0x70] sm:$0xff]  ;;  %v48_v62 = vld [vmem:[%s9470_s0 + $0x78] sm:$0xff] }
  0x13   :  { %9678 = vst [vmem:[#allocation12_spill] sm:$0xff] %v6352_v13  ;;  %5373 = vmatprep.subr.mxu1 %v612_v49  ;;  %v6368_v38 = vsub.f32 %v105_v63, %v6352_v13  ;;  %v285_v39 = vsub.f32 %v6340_v7, %v9487_v19  ;;  %v6378_v42 = vand.u32 4294901760, %v111_v33  ;;  %v9485_v43 = vand.u32 4294901760, %v6359_v14  ;;  %5425 = vmatprep.subr.mxu0 %v6234_v17 }
  0x14   :  { %5323 = vmatmul.mubr.f32.gmra.mxu0 %v276_v6  ;;  %5374 = vmatpush3.msra.mxu1 %v612_v49  ;;  %v295_v40 = vsub.f32 %v6343_v8, %v9486_v20  ;;  %9679 = vst [vmem:[#allocation13_spill] sm:$0xff] %v6376_v41  ;;  %v9484_v44 = vand.u32 4294901760, %v6362_v34  ;;  %v9483_v45 = vand.u32 4294901760, %v6365_v37  ;;  %v45_v49 = vld [vmem:[%s9470_s0 + $0x60] sm:$0xff]  ;;  %v6395_v53 = vsub.f32 %v108_v30, %v6376_v41  ;;  %v50_v30 = vld [vmem:[%s9470_s0 + $0x88] sm:$0xff] }
  0x15   :  { %9680 = vst [vmem:[#allocation14_spill] sm:$0xff] %v6378_v42  ;;  %5376 = vmatmul.mubr.f32.vlgmr.msra.gmra.mxu1 %v6231_v16  ;;  %5479 = vmatprep.subr.mxu1 %v6200_v3  ;;  %v9481_v46 = vand.u32 4294901760, %v6368_v38  ;;  %v286_v51 = vand.u32 4294901760, %v285_v39  ;;  %v6398_v54 = vsub.f32 %v111_v33, %v6378_v42  ;;  %v305_v55 = vsub.f32 %v6359_v14, %v9485_v43  ;;  %v49_v6 = vld [vmem:[%s9470_s0 + $0x80] sm:$0xff]  ;;  %v64_v16 = vld [vmem:[%s9470_s0 + $0xf8] sm:$0xff] }
  0x16   :  { %5480 = vmatpush3.msra.mxu1 %v6200_v3  ;;  %v296_v52 = vand.u32 4294901760, %v295_v40  ;;  %5378 = vmatprep.mubr.f32.mxu1 %v6263_v27  ;;  %v315_v56 = vsub.f32 %v6362_v34, %v9484_v44  ;;  %v325_v57 = vsub.f32 %v6365_v37, %v9483_v45  ;;  %v9480_v63 = vand.u32 4294901760, %v6395_v53 }
  0x17   :  { %v335_v60 = vsub.f32 %v6368_v38, %v9481_v46  ;;  %5325 = vmatprep.mubr.f32.mxu0 %v286_v51  ;;  %v9482_v0 = vand.u32 4294901760, %v6398_v54  ;;  %5426 = vmatpush3.msra.mxu0 %v6234_v17  ;;  %v114_v1 = vsel %vm76_vm0, %v45_v49, 0  ;;  %v117_v2 = vsel %vm76_vm0, %v46_v50, 0 }
  0x18   :  { %5326 = vmatmul.mubr.f32.gmra.mxu0 %v296_v52  ;;  %v306_v33 = vand.u32 4294901760, %v305_v55  ;;  %v316_v39 = vand.u32 4294901760, %v315_v56  ;;  %v326_v40 = vand.u32 4294901760, %v325_v57  ;;  %v345_v49 = vsub.f32 %v6395_v53, %v9480_v63  ;;  %5481 = vmatprep.subr.mxu1 %v6202_v4  ;;  %v52_v63 = vld [vmem:[%s9470_s0 + $0x98] sm:$0xff] }
  0x19   :  { %5379 = vmatmul.mubr.f32.gmra.mxu1 %v6265_v28  ;;  %v336_v17 = vand.u32 4294901760, %v335_v60  ;;  %v6436_v50 = vand.u32 4294901760, %v114_v1  ;;  %v6438_v51 = vand.u32 4294901760, %v117_v2  ;;  %v120_v52 = vsel %vm76_vm0, %v47_v61, 0  ;;  %v51_v60 = vld [vmem:[%s9470_s0 + $0x90] sm:$0xff]  ;;  %5427 = vmatprep.subr.mxu0 %v6238_v18 }
  0x1a   :  { %5381 = vmatprep.mubr.f32.mxu1 %v6325_v58  ;;  %5328 = vmatprep.mubr.f32.mxu0 %v306_v33  ;;  %v123_v55 = vsel %vm76_vm0, %v48_v62, 0  ;;  %v126_v56 = vsel %vm76_vm0, %v49_v6, 0  ;;  %v129_v57 = vsel %vm76_vm0, %v50_v30, 0  ;;  %v346_v46 = vand.u32 4294901760, %v345_v49 }
  0x1b   :  { %9681 = vst [vmem:[#allocation15_spill] sm:$0xff] %v6436_v50  ;;  %9682 = vst [vmem:[#allocation16_spill] sm:$0xff] %v6438_v51  ;;  %5482 = vmatpush3.msra.mxu1 %v6202_v4  ;;  %v355_v33 = vsub.f32 %v6398_v54, %v9482_v0  ;;  %v6455_v61 = vsub.f32 %v114_v1, %v6436_v50  ;;  %v6458_v62 = vsub.f32 %v117_v2, %v6438_v51 }
  0x1c   :  { %5483 = vmatprep.subr.mxu1 %v6204_v5  ;;  %5329 = vmatmul.mubr.f32.gmra.mxu0 %v316_v39  ;;  %v6463_v6 = vand.u32 4294901760, %v120_v52  ;;  %v6465_v30 = vand.u32 4294901760, %v123_v55  ;;  %v6467_v49 = vand.u32 4294901760, %v126_v56  ;;  %v6469_v0 = vand.u32 4294901760, %v129_v57 }
  0x1d   :  { %5382 = vmatmul.mubr.f32.gmra.mxu1 %v6327_v59  ;;  %5331 = vmatprep.mubr.f32.mxu0 %v326_v40  ;;  %v9488_v1 = vand.u32 4294901760, %v6455_v61  ;;  %v9489_v2 = vand.u32 4294901760, %v6458_v62  ;;  %v132_v45 = vsel %vm76_vm0, %v51_v60, 0  ;;  %v135_v39 = vsel %vm76_vm0, %v52_v63, 0  ;;  %v60_v59 = vld [vmem:[%s9470_s0 + $0xd8] sm:$0xff] }
  0x1e   :  { %9683 = vst [vmem:[#allocation17_spill] sm:$0xff] %v6463_v6  ;;  %9684 = vst [vmem:[#allocation18_spill] sm:$0xff] %v6465_v30  ;;  %5384 = vmatprep.mubr.f32.mxu1 %v6346_v10  ;;  %v6477_v44 = vsub.f32 %v120_v52, %v6463_v6  ;;  %v6480_v43 = vsub.f32 %v123_v55, %v6465_v30  ;;  %v6483_v20 = vsub.f32 %v126_v56, %v6467_v49 }
  0x1f   :  { %9685 = vst [vmem:[#allocation19_spill] sm:$0xff] %v6467_v49  ;;  %9686 = vst [vmem:[#allocation20_spill] sm:$0xff] %v6469_v0  ;;  %v6486_v40 = vsub.f32 %v129_v57, %v6469_v0  ;;  %5428 = vmatpush3.msra.mxu0 %v6238_v18  ;;  %v356_v19 = vand.u32 4294901760, %v355_v33  ;;  %v365_v60 = vsub.f32 %v6455_v61, %v9488_v1  ;;  %v6492_v63 = vand.u32 4294901760, %v132_v45  ;;  %v53_v33 = vld [vmem:[%s9470_s0 + $0xa0] sm:$0xff] }
  0x20   :  { %v6494_v52 = vand.u32 4294901760, %v135_v39  ;;  %5484 = vmatpush3.msra.mxu1 %v6204_v5  ;;  %5429 = vmatprep.subr.mxu0 %v6243_v21  ;;  %v375_v18 = vsub.f32 %v6458_v62, %v9489_v2  ;;  %v9494_v55 = vand.u32 4294901760, %v6477_v44  ;;  %v9495_v56 = vand.u32 4294901760, %v6480_v43 }
  0x21   :  { %9687 = vst [vmem:[#allocation21_spill] sm:$0xff] %v6492_v63  ;;  %5332 = vmatmul.mubr.f32.gmra.mxu0 %v336_v17  ;;  %5385 = vmatmul.mubr.f32.gmra.mxu1 %v6348_v11  ;;  %v9500_v57 = vand.u32 4294901760, %v6483_v20  ;;  %v54_v17 = vld [vmem:[%s9470_s0 + $0xa8] sm:$0xff]  ;;  %v366_v1 = vand.u32 4294901760, %v365_v60  ;;  %v6513_v2 = vsub.f32 %v132_v45, %v6492_v63  ;;  %v138_v60 = vsel %vm76_vm0, %v53_v33, 0 }
  0x22   :  { %5334 = vmatprep.mubr.f32.mxu0 %v346_v46  ;;  %5387 = vmatprep.mubr.f32.mxu1 %v6350_v12  ;;  %v385_v48 = vsub.f32 %v6477_v44, %v9494_v55  ;;  %v395_v32 = vsub.f32 %v6480_v43, %v9495_v56  ;;  %v6524_v46 = vsub.f32 %v135_v39, %v6494_v52  ;;  %v141_v45 = vsel %vm76_vm0, %v54_v17, 0  ;;  %v56_v55 = vld [vmem:[%s9470_s0 + $0xb8] sm:$0xff]  ;;  %v59_v56 = vld [vmem:[%s9470_s0 + $0xd0] sm:$0xff] }
  0x23   :  { %5430 = vmatpush3.msra.mxu0 %v6243_v21  ;;  %v57_v21 = vld [vmem:[%s9470_s0 + $0xc0] sm:$0xff]  ;;  %5485 = vmatprep.subr.mxu1 %v6215_v9  ;;  %v376_v39 = vand.u32 4294901760, %v375_v18  ;;  %v405_v33 = vsub.f32 %v6483_v20, %v9500_v57  ;;  %v6545_v47 = vand.u32 4294901760, %v138_v60  ;;  %v6547_v12 = vand.u32 4294901760, %v141_v45 }
  0x24   :  { %5535 = vmatprep.subr.mxu0 %v6247_v22  ;;  %v386_v17 = vand.u32 4294901760, %v385_v48  ;;  %v9688_v18 = vand.u32 4294901760, %v6486_v40  ;;  %v144_v57 = vsel %vm76_vm0, %v55_v31, 0  ;;  %v150_v48 = vsel %vm76_vm0, %v57_v21, 0  ;;  %5486 = vmatpush3.msra.mxu1 %v6215_v9 }
  0x25   :  { %5335 = vmatmul.mubr.f32.gmra.mxu0 %v356_v19  ;;  %5388 = vmatmul.mubr.f32.gmra.mxu1 %v6352_v13  ;;  %v58_v19 = vld [vmem:[%s9470_s0 + $0xc8] sm:$0xff]  ;;  %v6564_v10 = vsub.f32 %v138_v60, %v6545_v47  ;;  %v6571_v31 = vand.u32 4294901760, %v144_v57  ;;  %v6575_v21 = vand.u32 4294901760, %v150_v48  ;;  %v406_v60 = vand.u32 4294901760, %v405_v33 }
  0x26   :  { %5337 = vmatprep.mubr.f32.mxu0 %v366_v1  ;;  %5390 = vmatprep.mubr.f32.mxu1 %v6376_v41  ;;  %v415_v13 = vsub.f32 %v6486_v40, %v9688_v18  ;;  %v147_v1 = vsel %vm76_vm0, %v56_v55, 0  ;;  %v396_v41 = vand.u32 4294901760, %v395_v32  ;;  %v6567_v18 = vsub.f32 %v141_v45, %v6547_v12 }
  0x27   :  { %5591 = vmatprep.subr.mxu1 %v6200_v3  ;;  %v6573_v55 = vand.u32 4294901760, %v147_v1  ;;  %v153_v32 = vsel %vm76_vm0, %v58_v19, 0  ;;  %v9690_v45 = vand.u32 4294901760, %v6513_v2  ;;  %v6588_v58 = vsub.f32 %v144_v57, %v6571_v31 }
  0x28   :  { %9689 = vst [vmem:[#allocation22_spill] sm:$0xff] %v6567_v18  ;;  %v416_v19 = vand.u32 4294901760, %v415_v13  ;;  %v6594_v28 = vand.u32 4294901760, %v153_v32  ;;  %v159_v13 = vsel %vm76_vm0, %v60_v59, 0  ;;  %v9692_v59 = vand.u32 4294901760, %v6567_v18 }
  0x29   :  { %5338 = vmatmul.mubr.f32.gmra.mxu0 %v376_v39  ;;  %5391 = vmatmul.mubr.f32.gmra.mxu1 %v6378_v42  ;;  %v425_v11 = vsub.f32 %v6513_v2, %v9690_v45  ;;  %v9521_v39 = vand.u32 4294901760, %v6564_v10  ;;  %v156_v42 = vsel %vm76_vm0, %v59_v56, 0  ;;  %v6598_v56 = vsub.f32 %v147_v1, %v6573_v55 }
  0x2a   :  { %5340 = vmatprep.mubr.f32.mxu0 %v386_v17  ;;  %5393 = vmatprep.mubr.f32.mxu1 %v6436_v50  ;;  %v9691_v17 = vand.u32 4294901760, %v6524_v46  ;;  %v6601_v45 = vsub.f32 %v150_v48, %v6575_v21  ;;  %v6603_v57 = vand.u32 4294901760, %v156_v42  ;;  %v62_v48 = vld [vmem:[%s9470_s0 + $0xe8] sm:$0xff]  ;;  %v6621_v27 = vsub.f32 %v153_v32, %v6594_v28 }
  0x2b   :  { %v445_v1 = vsub.f32 %v6564_v10, %v9521_v39  ;;  %v63_v39 = vld [vmem:[%s9470_s0 + $0xf0] sm:$0xff] }
  0x2c   :  { %v435_v33 = vsub.f32 %v6524_v46, %v9691_v17  ;;  %v61_v17 = vld [vmem:[%s9470_s0 + $0xe0] sm:$0xff] }
  0x2d   :  { %5341 = vmatmul.mubr.f32.gmra.mxu0 %v396_v41  ;;  %5394 = vmatmul.mubr.f32.gmra.mxu1 %v6438_v51  ;;  %v426_v41 = vand.u32 4294901760, %v425_v11  ;;  %v455_v51 = vsub.f32 %v6567_v18, %v9692_v59  ;;  %v162_v11 = vsel %vm76_vm0, %v61_v17, 0  ;;  %v6633_v59 = vsub.f32 %v156_v42, %v6603_v57 }
  0x2e   :  { %5343 = vmatprep.mubr.f32.mxu0 %v406_v60  ;;  %5396 = vmatprep.mubr.f32.mxu1 %v6463_v6  ;;  %v6623_v60 = vand.u32 4294901760, %v159_v13  ;;  %v436_v50 = vand.u32 4294901760, %v435_v33  ;;  %v446_v32 = vand.u32 4294901760, %v445_v1  ;;  %v9693_v17 = vand.u32 4294901760, %v6588_v58 }
  0x2f   :  { %v6639_v18 = vand.u32 4294901760, %v162_v11  ;;  %v168_v33 = vsel %vm76_vm0, %v63_v39, 0  ;;  %v456_v42 = vand.u32 4294901760, %v455_v51  ;;  %v9694_v1 = vand.u32 4294901760, %v6598_v56 }
  0x30   :  { %v465_v15 = vsub.f32 %v6588_v58, %v9693_v17  ;;  %v6648_v6 = vsub.f32 %v159_v13, %v6623_v60  ;;  %v6664_v13 = vand.u32 4294901760, %v168_v33 }
  0x31   :  { %5344 = vmatmul.mubr.f32.gmra.mxu0 %v416_v19  ;;  %5397 = vmatmul.mubr.f32.gmra.mxu1 %v6465_v30  ;;  %v165_v19 = vsel %vm76_vm0, %v62_v48, 0  ;;  %v475_v17 = vsub.f32 %v6598_v56, %v9694_v1  ;;  %v9695_v48 = vand.u32 4294901760, %v6601_v45  ;;  %v9696_v1 = vand.u32 4294901760, %v6621_v27 }
  0x32   :  { %5346 = vmatprep.mubr.f32.mxu0 %v426_v41  ;;  %5399 = vmatprep.mubr.f32.mxu1 %v6467_v49  ;;  %v6658_v30 = vand.u32 4294901760, %v165_v19  ;;  %v466_v51 = vand.u32 4294901760, %v465_v15  ;;  %v171_v41 = vsel %vm76_vm0, %v64_v16, 0  ;;  %v9697_v16 = vand.u32 4294901760, %v6633_v59 }
  0x33   :  { %v485_v39 = vsub.f32 %v6601_v45, %v9695_v48  ;;  %v476_v48 = vand.u32 4294901760, %v475_v17  ;;  %v6675_v15 = vand.u32 4294901760, %v171_v41 }
  0x34   :  { %v6673_v49 = vsub.f32 %v165_v19, %v6658_v30 }
  0x35   :  { %5347 = vmatmul.mubr.f32.gmra.mxu0 %v436_v50  ;;  %5400 = vmatmul.mubr.f32.gmra.mxu1 %v6469_v0  ;;  %v6662_v50 = vsub.f32 %v162_v11, %v6639_v18  ;;  %v495_v0 = vsub.f32 %v6621_v27, %v9696_v1  ;;  %v486_v11 = vand.u32 4294901760, %v485_v39  ;;  %v6683_v1 = vsub.f32 %v168_v33, %v6664_v13 }
  0x36   :  { %5349 = vmatprep.mubr.f32.mxu0 %v446_v32  ;;  %5402 = vmatprep.mubr.f32.mxu1 %v6492_v63  ;;  %v9538_v32 = vand.u32 4294901760, %v6648_v6  ;;  %v505_v63 = vsub.f32 %v6633_v59, %v9697_v16  ;;  %v6691_v39 = vsub.f32 %v171_v41, %v6675_v15 }
  0x37   :  { %v496_v19 = vand.u32 4294901760, %v495_v0 }
  0x38   :  { %v515_v17 = vsub.f32 %v6648_v6, %v9538_v32  ;;  %v506_v16 = vand.u32 4294901760, %v505_v63  ;;  %v554_v41 = vand.u32 4294901760, %v6691_v39 }
  0x39   :  { %5350 = vmatmul.mubr.f32.gmra.mxu0 %v456_v42  ;;  %5403 = vmatmul.mubr.f32.gmra.mxu1 %v6494_v52  ;;  %v524_v42 = vand.u32 4294901760, %v6662_v50 }
  0x3a   :  { %5352 = vmatprep.mubr.f32.mxu0 %v466_v51  ;;  %5405 = vmatprep.mubr.f32.mxu1 %v6545_v47  ;;  %v9539_v51 = vand.u32 4294901760, %v6673_v49  ;;  %v516_v0 = vand.u32 4294901760, %v515_v17  ;;  %v555_v17 = vsub.f32 %v6691_v39, %v554_v41 }
  0x3b   :  { %v525_v33 = vsub.f32 %v6662_v50, %v524_v42 }
  0x3c   :  { %v535_v32 = vsub.f32 %v6673_v49, %v9539_v51 }
  0x3d   :  { %5353 = vmatmul.mubr.f32.gmra.mxu0 %v476_v48  ;;  %5406 = vmatmul.mubr.f32.gmra.mxu1 %v6547_v12  ;;  %v544_v48 = vand.u32 4294901760, %v6683_v1  ;;  %v526_v63 = vand.u32 4294901760, %v525_v33 }
  0x3e   :  { %5355 = vmatprep.mubr.f32.mxu0 %v486_v11  ;;  %5408 = vmatprep.mubr.f32.mxu1 %v6571_v31 }
  0x3f   :  { %v545_v11 = vsub.f32 %v6683_v1, %v544_v48 }
  0x41   :  { %5356 = vmatmul.mubr.f32.gmra.mxu0 %v496_v19  ;;  %5409 = vmatmul.mubr.f32.gmra.mxu1 %v6573_v55  ;;  %v536_v19 = vand.u32 4294901760, %v535_v32  ;;  %v546_v51 = vand.u32 4294901760, %v545_v11  ;;  %v2028_v32 = vld [vmem:[%s9471_s3 + $0x28] sm:$0xff]  ;;  %v9700_v11 = vand.u32 4294901760, %v6281_v35 }
  0x42   :  { %5358 = vmatprep.mubr.f32.mxu0 %v506_v16  ;;  %5411 = vmatprep.mubr.f32.mxu1 %v6575_v21  ;;  %v556_v16 = vand.u32 4294901760, %v555_v17  ;;  %v6720_v33 = vand.u32 4294901760, %v2028_v32  ;;  %v2025_v17 = vld [vmem:[%s9471_s3 + $0x10] sm:$0xff] }
  0x45   :  { %5359 = vmatmul.mubr.f32.gmra.mxu0 %v516_v0  ;;  %5412 = vmatmul.mubr.f32.gmra.mxu1 %v6594_v28  ;;  %v6730_v0 = vsub.f32 %v2028_v32, %v6720_v33 }
  0x46   :  { %5361 = vmatprep.mubr.f32.mxu0 %v526_v63  ;;  %5414 = vmatprep.mubr.f32.mxu1 %v6603_v57  ;;  %v9699_v63 = vand.u32 4294901760, %v6253_v24 }
  0x49   :  { %5362 = vmatmul.mubr.f32.gmra.mxu0 %v536_v19  ;;  %5415 = vmatmul.mubr.f32.gmra.mxu1 %v6623_v60 }
  0x4a   :  { %5364 = vmatprep.mubr.f32.mxu0 %v546_v51  ;;  %5417 = vmatprep.mubr.f32.mxu1 %v6639_v18  ;;  %v9698_v51 = vand.u32 4294901760, %v6250_v23 }
  0x4d   :  { %5365 = vmatmul.mubr.f32.gmra.mxu0 %v556_v16  ;;  %5418 = vmatmul.mubr.f32.gmra.mxu1 %v6658_v30 }
  0x4e   :  { %5431 = vmatprep.mubr.f32.mxu0 %v6250_v23  ;;  %5420 = vmatprep.mubr.f32.mxu1 %v6664_v13  ;;  %v9701_v23 = vand.u32 4294901760, %v6284_v36 }
  0x51   :  { %5432 = vmatmul.mubr.f32.vlgmr.msra.gmra.mxu0 %v6253_v24  ;;  %5421 = vmatmul.mubr.f32.gmra.mxu1 %v6675_v15 }
  0x52   :  { %5434 = vmatprep.mubr.f32.mxu0 %v6281_v35  ;;  %5487 = vmatprep.mubr.f32.mxu1 %v9698_v51  ;;  %v9704_v35 = vand.u32 4294901760, %v6359_v14  ;;  %v9727_v51 = vand.u32 4294901760, %v6673_v49 }
  0x53   :  { %5536 = vmatpush3.msra.mxu0 %v6247_v22  ;;  %v6743_v22 = vand.u32 4294901760, %v6730_v0 }
  0x54   :  { %5537 = vmatprep.subr.mxu0 %v6256_v25 }
  0x55   :  { %5435 = vmatmul.mubr.f32.gmra.mxu0 %v6284_v36  ;;  %5488 = vmatmul.mubr.f32.vlgmr.msra.gmra.mxu1 %v9699_v63  ;;  %v2541_v24 = vsub.f32 %v6730_v0, %v6743_v22  ;;  %v9706_v36 = vand.u32 4294901760, %v6365_v37  ;;  %v9728_v63 = vld [vmem:[#allocation3_spill] sm:$0xff] }
  0x56   :  { %5437 = vmatprep.mubr.f32.mxu0 %v6340_v7  ;;  %5592 = vmatpush3.msra.mxu1 %v6200_v3  ;;  %v9702_v3 = vand.u32 4294901760, %v6340_v7  ;;  %v9709_v7 = vand.u32 4294901760, %v6398_v54 }
  0x57   :  { %5490 = vmatprep.mubr.f32.mxu1 %v9700_v11  ;;  %5538 = vmatpush3.msra.mxu0 %v6256_v25  ;;  %v9703_v25 = vand.u32 4294901760, %v6343_v8 }
  0x58   :  { %5593 = vmatprep.subr.mxu1 %v6202_v4  ;;  %5539 = vmatprep.subr.mxu0 %v6261_v26 }
  0x59   :  { %5438 = vmatmul.mubr.f32.gmra.mxu0 %v6343_v8  ;;  %5491 = vmatmul.mubr.f32.gmra.mxu1 %v9701_v23  ;;  %v9711_v8 = vand.u32 4294901760, %v6458_v62  ;;  %v9729_v23 = vld [vmem:[#allocation4_spill] sm:$0xff] }
  0x5a   :  { %5440 = vmatprep.mubr.f32.mxu0 %v6359_v14  ;;  %5493 = vmatprep.mubr.f32.mxu1 %v9702_v3  ;;  %v9712_v14 = vand.u32 4294901760, %v6477_v44 }
  0x5b   :  { %5594 = vmatpush3.msra.mxu1 %v6202_v4  ;;  %5540 = vmatpush3.msra.mxu0 %v6261_v26  ;;  %v6767_v4 = vand.u32 4294901760, %v2541_v24  ;;  %v9705_v26 = vand.u32 4294901760, %v6362_v34 }
  0x5c   :  { %5595 = vmatprep.subr.mxu1 %v6204_v5  ;;  %5541 = vmatprep.subr.mxu0 %v6268_v29 }
  0x5d   :  { %5441 = vmatmul.mubr.f32.gmra.mxu0 %v6362_v34  ;;  %5494 = vmatmul.mubr.f32.gmra.mxu1 %v9703_v25  ;;  %v9713_v34 = vand.u32 4294901760, %v6480_v43 }
  0x5e   :  { %5443 = vmatprep.mubr.f32.mxu0 %v6365_v37  ;;  %5496 = vmatprep.mubr.f32.mxu1 %v9704_v35  ;;  %v9714_v37 = vand.u32 4294901760, %v6483_v20  ;;  %v9731_v35 = vld [vmem:[#allocation6_spill] sm:$0xff] }
  0x5f   :  { %5596 = vmatpush3.msra.mxu1 %v6204_v5  ;;  %5542 = vmatpush3.msra.mxu0 %v6268_v29  ;;  %v9707_v5 = vand.u32 4294901760, %v6368_v38  ;;  %v9708_v29 = vand.u32 4294901760, %v6395_v53 }
  0x60   :  { %5597 = vmatprep.subr.mxu1 %v6215_v9  ;;  %5647 = vmatprep.subr.mxu0 %v6720_v33 }
  0x61   :  { %5444 = vmatmul.mubr.f32.gmra.mxu0 %v6368_v38  ;;  %5497 = vmatmul.mubr.f32.gmra.mxu1 %v9705_v26  ;;  %v9715_v38 = vand.u32 4294901760, %v6486_v40  ;;  %v9732_v26 = vld [vmem:[#allocation7_spill] sm:$0xff] }
  0x62   :  { %5446 = vmatprep.mubr.f32.mxu0 %v6395_v53  ;;  %5499 = vmatprep.mubr.f32.mxu1 %v9706_v36  ;;  %v9717_v53 = vld [vmem:[#allocation22_spill] sm:$0xff] }
  0x63   :  { %5598 = vmatpush3.msra.mxu1 %v6215_v9  ;;  %v9710_v9 = vand.u32 4294901760, %v6455_v61 }
  0x64   :  { %5707 = vmatprep.subr.mxu1 %v6767_v4 }
  0x65   :  { %5447 = vmatmul.mubr.f32.gmra.mxu0 %v6398_v54  ;;  %5500 = vmatmul.mubr.f32.gmra.mxu1 %v9707_v5  ;;  %v9720_v54 = vand.u32 4294901760, %v9717_v53 }
  0x66   :  { %5449 = vmatprep.mubr.f32.mxu0 %v6455_v61  ;;  %5502 = vmatprep.mubr.f32.mxu1 %v9708_v29  ;;  %v9721_v61 = vand.u32 4294901760, %v6588_v58 }
  0x69   :  { %5450 = vmatmul.mubr.f32.gmra.mxu0 %v6458_v62  ;;  %5503 = vmatmul.mubr.f32.gmra.mxu1 %v9709_v7  ;;  %v9722_v62 = vand.u32 4294901760, %v6598_v56 }
  0x6a   :  { %5452 = vmatprep.mubr.f32.mxu0 %v6477_v44  ;;  %5505 = vmatprep.mubr.f32.mxu1 %v9710_v9  ;;  %v9716_v44 = vand.u32 4294901760, %v6513_v2  ;;  %v9734_v9 = vld [vmem:[#allocation8_spill] sm:$0xff] }
  0x6d   :  { %5453 = vmatmul.mubr.f32.gmra.mxu0 %v6480_v43  ;;  %5506 = vmatmul.mubr.f32.gmra.mxu1 %v9711_v8  ;;  %v9718_v43 = vand.u32 4294901760, %v6524_v46 }
  0x6e   :  { %5455 = vmatprep.mubr.f32.mxu0 %v6483_v20  ;;  %5508 = vmatprep.mubr.f32.mxu1 %v9712_v14  ;;  %v9719_v20 = vand.u32 4294901760, %v6564_v10 }
  0x71   :  { %5456 = vmatmul.mubr.f32.gmra.mxu0 %v6486_v40  ;;  %5509 = vmatmul.mubr.f32.gmra.mxu1 %v9713_v34 }
  0x72   :  { %5458 = vmatprep.mubr.f32.mxu0 %v6513_v2  ;;  %5511 = vmatprep.mubr.f32.mxu1 %v9714_v37  ;;  %v9723_v2 = vand.u32 4294901760, %v6601_v45  ;;  %v9737_v37 = vld [vmem:[#allocation10_spill] sm:$0xff] }
  0x75   :  { %5459 = vmatmul.mubr.f32.gmra.mxu0 %v6524_v46  ;;  %5512 = vmatmul.mubr.f32.gmra.mxu1 %v9715_v38  ;;  %v2026_v46 = vld [vmem:[%s9471_s3 + $0x18] sm:$0xff]  ;;  %v9738_v38 = vld [vmem:[#allocation11_spill] sm:$0xff] }
  0x76   :  { %5461 = vmatprep.mubr.f32.mxu0 %v6564_v10  ;;  %5514 = vmatprep.mubr.f32.mxu1 %v9716_v44  ;;  %v2027_v10 = vld [vmem:[%s9471_s3 + $0x20] sm:$0xff] }
  0x77   :  { %v6828_v40 = vand.u32 4294901760, %v2027_v10 }
  0x79   :  { %5462 = vmatmul.mubr.f32.gmra.mxu0 %v9717_v53  ;;  %5515 = vmatmul.mubr.f32.gmra.mxu1 %v9718_v43  ;;  %v6840_v19 = vsub.f32 %v2027_v10, %v6828_v40  ;;  %v9739_v43 = vld [vmem:[#allocation12_spill] sm:$0xff] }
  0x7a   :  { %5464 = vmatprep.mubr.f32.mxu0 %v6588_v58  ;;  %5517 = vmatprep.mubr.f32.mxu1 %v9719_v20  ;;  %v9724_v58 = vand.u32 4294901760, %v6621_v27  ;;  %v9740_v20 = vld [vmem:[#allocation13_spill] sm:$0xff]  ;;  %v9743_v10 = vld [vmem:[#allocation16_spill] sm:$0xff] }
  0x7b   :  { %v6856_v16 = vand.u32 4294901760, %v6840_v19 }
  0x7d   :  { %5465 = vmatmul.mubr.f32.gmra.mxu0 %v6598_v56  ;;  %5518 = vmatmul.mubr.f32.gmra.mxu1 %v9720_v54  ;;  %v9725_v56 = vand.u32 4294901760, %v6633_v59 }
  0x7e   :  { %5467 = vmatprep.mubr.f32.mxu0 %v6601_v45  ;;  %5520 = vmatprep.mubr.f32.mxu1 %v9721_v61  ;;  %v6842_v45 = vand.u32 4294901760, %v2026_v46  ;;  %v9741_v61 = vld [vmem:[#allocation14_spill] sm:$0xff] }
  0x80   :  { %v6859_v32 = vsub.f32 %v2026_v46, %v6842_v45  ;;  %v9746_v46 = vld [vmem:[#allocation19_spill] sm:$0xff] }
  0x81   :  { %5468 = vmatmul.mubr.f32.gmra.mxu0 %v6621_v27  ;;  %5521 = vmatmul.mubr.f32.gmra.mxu1 %v9722_v62  ;;  %v9726_v27 = vand.u32 4294901760, %v6648_v6  ;;  %v9742_v62 = vld [vmem:[#allocation15_spill] sm:$0xff] }
  0x82   :  { %5470 = vmatprep.mubr.f32.mxu0 %v6633_v59  ;;  %5523 = vmatprep.mubr.f32.mxu1 %v9723_v2  ;;  %v6853_v59 = vand.u32 4294901760, %v2025_v17  ;;  %v6876_v11 = vand.u32 4294901760, %v6859_v32  ;;  %v9744_v2 = vld [vmem:[#allocation17_spill] sm:$0xff] }
  0x85   :  { %5471 = vmatmul.mubr.f32.gmra.mxu0 %v6648_v6  ;;  %5524 = vmatmul.mubr.f32.gmra.mxu1 %v9724_v58  ;;  %v2024_v6 = vld [vmem:[%s9471_s3 + $0x8] sm:$0xff]  ;;  %v9745_v58 = vld [vmem:[#allocation18_spill] sm:$0xff] }
  0x86   :  { %5473 = vmatprep.mubr.f32.mxu0 %v6662_v50  ;;  %5526 = vmatprep.mubr.f32.mxu1 %v9725_v56  ;;  %v6871_v50 = vsub.f32 %v2025_v17, %v6853_v59  ;;  %v9747_v56 = vld [vmem:[#allocation20_spill] sm:$0xff]  ;;  %v9748_v17 = vld [vmem:[#allocation21_spill] sm:$0xff] }
  0x88   :  { %v6890_v3 = vand.u32 4294901760, %v6871_v50 }
  0x89   :  { %5474 = vmatmul.mubr.f32.gmra.mxu0 %v6673_v49  ;;  %5527 = vmatmul.mubr.f32.gmra.mxu1 %v9726_v27  ;;  %v6878_v49 = vand.u32 4294901760, %v2024_v6  ;;  %v1991_v27 = vld [vmem:[%s9472_s1] sm:$0xff] }
  0x8a   :  { %5476 = vmatprep.mubr.f32.mxu0 %v6683_v1  ;;  %5529 = vmatprep.mubr.f32.mxu1 %v524_v42  ;;  %v2548_v42 = vsub.f32 %v6840_v19, %v6856_v16  ;;  %v2023_v1 = vld [vmem:[%s9471_s3] sm:$0xff]  ;;  %v2562_v5 = vsub.f32 %v6871_v50, %v6890_v3 }
  0x8b   :  { %v6898_v25 = vand.u32 4294901760, %v2023_v1 }
  0x8c   :  { %v2549_v24 = vand.u32 4294901760, %v2548_v42  ;;  %v2563_v8 = vand.u32 4294901760, %v2562_v5 }
  0x8d   :  { %5477 = vmatmul.mubr.f32.gmra.mxu0 %v6691_v39  ;;  %5530 = vmatmul.mubr.f32.gmra.mxu1 %v9727_v51  ;;  %v2555_v39 = vsub.f32 %v6859_v32, %v6876_v11  ;;  %v6913_v7 = vsub.f32 %v2023_v1, %v6898_v25  ;;  %v2031_v51 = vsel %vm2029_vm1, %v1991_v27, 0  ;;  %v1994_v1 = vld [vmem:[%s9472_s1 + $0x18] sm:$0xff] }
  0x8e   :  { %5543 = vmatprep.mubr.f32.mxu0 %v9728_v63  ;;  %5532 = vmatprep.mubr.f32.mxu1 %v544_v48  ;;  %v9730_v48 = vld [vmem:[#allocation5_spill] sm:$0xff]  ;;  %v6977_v42 = vand.u32 4294901760, %v2031_v51 }
  0x8f   :  { %v2556_v36 = vand.u32 4294901760, %v2555_v39  ;;  %v6924_v34 = vand.u32 4294901760, %v6913_v7 }
  0x90   :  { %9749 = vst [vmem:[#allocation4_spill] sm:$0xff] %v6977_v42  ;;  %v6995_v39 = vsub.f32 %v2031_v51, %v6977_v42 }
  0x91   :  { %5544 = vmatmul.mubr.f32.vlgmr.msra.gmra.mxu0 %v9729_v23  ;;  %5533 = vmatmul.mubr.f32.gmra.mxu1 %v554_v41  ;;  %v6896_v41 = vsub.f32 %v2024_v6, %v6878_v49  ;;  %9736 = vst [vmem:[#allocation3_spill] sm:$0xff] %v6924_v34  ;;  %v2576_v53 = vsub.f32 %v6913_v7, %v6924_v34  ;;  %v1992_v6 = vld [vmem:[%s9472_s1 + $0x8] sm:$0xff] }
  0x92   :  { %5546 = vmatprep.mubr.f32.mxu0 %v9730_v48  ;;  %5599 = vmatprep.mubr.f32.mxu1 %v9728_v63  ;;  %v1993_v63 = vld [vmem:[%s9472_s1 + $0x10] sm:$0xff] }
  0x93   :  { %5648 = vmatpush3.msra.mxu0 %v6720_v33  ;;  %v6910_v29 = vand.u32 4294901760, %v6896_v41  ;;  %v2577_v54 = vand.u32 4294901760, %v2576_v53 }
  0x94   :  { %5649 = vmatprep.subr.mxu0 %v6828_v40 }
  0x95   :  { %5547 = vmatmul.mubr.f32.gmra.mxu0 %v9731_v35  ;;  %5600 = vmatmul.mubr.f32.vlgmr.msra.gmra.mxu1 %v9729_v23  ;;  %9733 = vst [vmem:[#allocation22_spill] sm:$0xff] %v6910_v29  ;;  %v2569_v14 = vsub.f32 %v6896_v41, %v6910_v29  ;;  %v2034_v23 = vsel %vm2029_vm1, %v1992_v6, 0 }
  0x96   :  { %5549 = vmatprep.mubr.f32.mxu0 %v9732_v26  ;;  %5708 = vmatpush3.msra.mxu1 %v6767_v4  ;;  %v9735_v4 = vld [vmem:[#allocation9_spill] sm:$0xff] }
  0x97   :  { %5602 = vmatprep.mubr.f32.mxu1 %v9730_v48  ;;  %5650 = vmatpush3.msra.mxu0 %v6828_v40  ;;  %v2570_v44 = vand.u32 4294901760, %v2569_v14  ;;  %v2037_v48 = vsel %vm2029_vm1, %v1993_v63, 0  ;;  %v2002_v63 = vld [vmem:[%s9472_s1 + $0x58] sm:$0xff] }
  0x98   :  { %5709 = vmatprep.subr.mxu1 %v2549_v24  ;;  %5651 = vmatprep.subr.mxu0 %v6842_v45 }
  0x99   :  { %5550 = vmatmul.mubr.f32.gmra.mxu0 %v9734_v9  ;;  %5603 = vmatmul.mubr.f32.gmra.mxu1 %v9731_v35  ;;  %v6997_v35 = vand.u32 4294901760, %v2037_v48 }
  0x9a   :  { %5552 = vmatprep.mubr.f32.mxu0 %v9735_v4  ;;  %5605 = vmatprep.mubr.f32.mxu1 %v9732_v26  ;;  %v1996_v26 = vld [vmem:[%s9472_s1 + $0x28] sm:$0xff] }
  0x9b   :  { %5710 = vmatpush3.msra.mxu1 %v2549_v24  ;;  %5652 = vmatpush3.msra.mxu0 %v6842_v45  ;;  %v1995_v24 = vld [vmem:[%s9472_s1 + $0x20] sm:$0xff]  ;;  %9751 = vst [vmem:[#allocation6_spill] sm:$0xff] %v6997_v35  ;;  %v7021_v14 = vsub.f32 %v2037_v48, %v6997_v35 }
  0x9c   :  { %5711 = vmatprep.subr.mxu1 %v2556_v36  ;;  %5653 = vmatprep.subr.mxu0 %v6853_v59 }
  0x9d   :  { %5553 = vmatmul.mubr.f32.gmra.mxu0 %v9737_v37  ;;  %5606 = vmatmul.mubr.f32.gmra.mxu1 %v9734_v9  ;;  %v2046_v9 = vsel %vm2029_vm1, %v1996_v26, 0 }
  0x9e   :  { %5555 = vmatprep.mubr.f32.mxu0 %v9738_v38  ;;  %5608 = vmatprep.mubr.f32.mxu1 %v9735_v4  ;;  %v1998_v4 = vld [vmem:[%s9472_s1 + $0x38] sm:$0xff]  ;;  %v7032_v53 = vand.u32 4294901760, %v2046_v9 }
  0x9f   :  { %5712 = vmatpush3.msra.mxu1 %v2556_v36  ;;  %5654 = vmatpush3.msra.mxu0 %v6853_v59  ;;  %v2043_v36 = vsel %vm2029_vm1, %v1995_v24, 0 }
  0xa0   :  { %5713 = vmatprep.subr.mxu1 %v2563_v8  ;;  %5655 = vmatprep.subr.mxu0 %v6878_v49  ;;  %9754 = vst [vmem:[#allocation9_spill] sm:$0xff] %v7032_v53 }
  0xa1   :  { %5556 = vmatmul.mubr.f32.gmra.mxu0 %v9739_v43  ;;  %5609 = vmatmul.mubr.f32.gmra.mxu1 %v9737_v37  ;;  %v7023_v37 = vand.u32 4294901760, %v2043_v36 }
  0xa2   :  { %5558 = vmatprep.mubr.f32.mxu0 %v9740_v20  ;;  %5611 = vmatprep.mubr.f32.mxu1 %v9738_v38  ;;  %v1999_v38 = vld [vmem:[%s9472_s1 + $0x40] sm:$0xff] }
  0xa3   :  { %5714 = vmatpush3.msra.mxu1 %v2563_v8  ;;  %5656 = vmatpush3.msra.mxu0 %v6878_v49  ;;  %v9547_v8 = vand.u32 4294901760, %v6995_v39  ;;  %9753 = vst [vmem:[#allocation8_spill] sm:$0xff] %v7023_v37 }
  0xa4   :  { %5715 = vmatprep.subr.mxu1 %v2570_v44  ;;  %5657 = vmatprep.subr.mxu0 %v6898_v25 }
  0xa5   :  { %5559 = vmatmul.mubr.f32.gmra.mxu0 %v9741_v61  ;;  %5612 = vmatmul.mubr.f32.gmra.mxu1 %v9739_v43 }
  0xa6   :  { %5561 = vmatprep.mubr.f32.mxu0 %v9742_v62  ;;  %5614 = vmatprep.mubr.f32.mxu1 %v9740_v20 }
  0xa7   :  { %5716 = vmatpush3.msra.mxu1 %v2570_v44  ;;  %5658 = vmatpush3.msra.mxu0 %v6898_v25 }
  0xa8   :  { %5717 = vmatprep.subr.mxu1 %v2577_v54  ;;  %5767 = vmatprep.subr.mxu0 %v6730_v0 }
  0xa9   :  { %5562 = vmatmul.mubr.f32.gmra.mxu0 %v9743_v10  ;;  %5615 = vmatmul.mubr.f32.gmra.mxu1 %v9741_v61  ;;  %v2200_v61 = vsub.f32 %v6995_v39, %v9547_v8 }
  0xaa   :  { %5564 = vmatprep.mubr.f32.mxu0 %v9744_v2  ;;  %5617 = vmatprep.mubr.f32.mxu1 %v9742_v62  ;;  %v9544_v62 = vand.u32 4294901760, %v7021_v14 }
  0xab   :  { %5718 = vmatpush3.msra.mxu1 %v2577_v54  ;;  %v2000_v54 = vld [vmem:[%s9472_s1 + $0x48] sm:$0xff] }
  0xac   :  { %5827 = vmatprep.subr.mxu1 %v6720_v33 }
  0xad   :  { %5565 = vmatmul.mubr.f32.gmra.mxu0 %v9745_v58  ;;  %5618 = vmatmul.mubr.f32.gmra.mxu1 %v9743_v10  ;;  %v2055_v10 = vsel %vm2029_vm1, %v1999_v38, 0 }
  0xae   :  { %5567 = vmatprep.mubr.f32.mxu0 %v9746_v46  ;;  %5620 = vmatprep.mubr.f32.mxu1 %v9744_v2  ;;  %v2001_v2 = vld [vmem:[%s9472_s1 + $0x50] sm:$0xff]  ;;  %v7071_v51 = vand.u32 4294901760, %v2055_v10 }
  0xaf   :  { %v2061_v6 = vsel %vm2029_vm1, %v2001_v2, 0 }
  0xb0   :  { %9757 = vst [vmem:[#allocation12_spill] sm:$0xff] %v7071_v51 }
  0xb1   :  { %5568 = vmatmul.mubr.f32.gmra.mxu0 %v9747_v56  ;;  %5621 = vmatmul.mubr.f32.gmra.mxu1 %v9745_v58 }
  0xb2   :  { %5570 = vmatprep.mubr.f32.mxu0 %v9748_v17  ;;  %5623 = vmatprep.mubr.f32.mxu1 %v9746_v46 }
  0xb5   :  { %5571 = vmatmul.mubr.f32.gmra.mxu0 %v6494_v52  ;;  %5624 = vmatmul.mubr.f32.gmra.mxu1 %v9747_v56  ;;  %v2058_v56 = vsel %vm2029_vm1, %v2000_v54, 0 }
  0xb6   :  { %5573 = vmatprep.mubr.f32.mxu0 %v6545_v47  ;;  %5626 = vmatprep.mubr.f32.mxu1 %v9748_v17  ;;  %v7086_v24 = vand.u32 4294901760, %v2058_v56 }
  0xb8   :  { %9758 = vst [vmem:[#allocation13_spill] sm:$0xff] %v7086_v24 }
  0xb9   :  { %5574 = vmatmul.mubr.f32.gmra.mxu0 %v6547_v12  ;;  %5627 = vmatmul.mubr.f32.gmra.mxu1 %v6494_v52  ;;  %v6989_v52 = vand.u32 4294901760, %v2034_v23 }
  0xba   :  { %5576 = vmatprep.mubr.f32.mxu0 %v6571_v31  ;;  %5629 = vmatprep.mubr.f32.mxu1 %v6545_v47  ;;  %v2040_v47 = vsel %vm2029_vm1, %v1994_v1, 0 }
  0xbb   :  { %9750 = vst [vmem:[#allocation5_spill] sm:$0xff] %v6989_v52  ;;  %v7006_v5 = vand.u32 4294901760, %v2040_v47 }
  0xbd   :  { %5577 = vmatmul.mubr.f32.gmra.mxu0 %v6573_v55  ;;  %5630 = vmatmul.mubr.f32.gmra.mxu1 %v6547_v12  ;;  %v1997_v12 = vld [vmem:[%s9472_s1 + $0x30] sm:$0xff]  ;;  %9752 = vst [vmem:[#allocation7_spill] sm:$0xff] %v7006_v5  ;;  %v7030_v44 = vsub.f32 %v2040_v47, %v7006_v5  ;;  %v2003_v47 = vld [vmem:[%s9472_s1 + $0x60] sm:$0xff] }
  0xbe   :  { %5579 = vmatprep.mubr.f32.mxu0 %v6575_v21  ;;  %5632 = vmatprep.mubr.f32.mxu1 %v6571_v31  ;;  %v7011_v31 = vsub.f32 %v2034_v23, %v6989_v52  ;;  %v2220_v23 = vsub.f32 %v7021_v14, %v9544_v62  ;;  %v2067_v54 = vsel %vm2029_vm1, %v2003_v47, 0 }
  0xbf   :  { %v9541_v46 = vand.u32 4294901760, %v7030_v44 }
  0xc0   :  { %v9545_v43 = vand.u32 4294901760, %v7011_v31  ;;  %v2221_v38 = vand.u32 4294901760, %v2220_v23 }
  0xc1   :  { %5580 = vmatmul.mubr.f32.gmra.mxu0 %v6594_v28  ;;  %5633 = vmatmul.mubr.f32.gmra.mxu1 %v6573_v55  ;;  %v2049_v55 = vsel %vm2029_vm1, %v1997_v12, 0  ;;  %v2064_v12 = vsel %vm2029_vm1, %v2002_v63, 0 }
  0xc2   :  { %5582 = vmatprep.mubr.f32.mxu0 %v6603_v57  ;;  %5635 = vmatprep.mubr.f32.mxu1 %v6575_v21  ;;  %v2052_v21 = vsel %vm2029_vm1, %v1998_v4, 0  ;;  %v7038_v20 = vand.u32 4294901760, %v2049_v55  ;;  %v2210_v17 = vsub.f32 %v7011_v31, %v9545_v43  ;;  %v7121_v2 = vand.u32 4294901760, %v2064_v12 }
  0xc3   :  { %v7056_v58 = vand.u32 4294901760, %v2052_v21 }
  0xc4   :  { %9755 = vst [vmem:[#allocation10_spill] sm:$0xff] %v7038_v20  ;;  %v7069_v27 = vsub.f32 %v2049_v55, %v7038_v20  ;;  %v7102_v55 = vsub.f32 %v2055_v10, %v7071_v51  ;;  %9761 = vst [vmem:[#allocation16_spill] sm:$0xff] %v7121_v2  ;;  %v7156_v43 = vsub.f32 %v2064_v12, %v7121_v2 }
  0xc5   :  { %5583 = vmatmul.mubr.f32.gmra.mxu0 %v6623_v60  ;;  %5636 = vmatmul.mubr.f32.gmra.mxu1 %v6594_v28  ;;  %v7050_v28 = vsub.f32 %v2043_v36, %v7023_v37  ;;  %9756 = vst [vmem:[#allocation11_spill] sm:$0xff] %v7056_v58  ;;  %v7084_v48 = vsub.f32 %v2052_v21, %v7056_v58  ;;  %v7095_v36 = vand.u32 4294901760, %v2061_v6 }
  0xc6   :  { %5585 = vmatprep.mubr.f32.mxu0 %v6639_v18  ;;  %5638 = vmatprep.mubr.f32.mxu1 %v6603_v57  ;;  %v7060_v57 = vsub.f32 %v2046_v9, %v7032_v53  ;;  %v2211_v9 = vand.u32 4294901760, %v2210_v17  ;;  %v9543_v4 = vand.u32 4294901760, %v7069_v27  ;;  %v2005_v17 = vld [vmem:[%s9472_s1 + $0x70] sm:$0xff]  ;;  %9764 = vst [vmem:[#allocation19_spill] sm:$0xff] %v7156_v43 }
  0xc7   :  { %v9540_v1 = vand.u32 4294901760, %v7050_v28  ;;  %9759 = vst [vmem:[#allocation14_spill] sm:$0xff] %v7095_v36  ;;  %v9546_v10 = vand.u32 4294901760, %v7084_v48  ;;  %v7130_v47 = vsub.f32 %v2061_v6, %v7095_v36 }
  0xc8   :  { %v9542_v26 = vand.u32 4294901760, %v7060_v57 }
  0xc9   :  { %5586 = vmatmul.mubr.f32.gmra.mxu0 %v6658_v30  ;;  %5639 = vmatmul.mubr.f32.gmra.mxu1 %v6623_v60  ;;  %v2201_v60 = vand.u32 4294901760, %v2200_v61  ;;  %v2240_v21 = vsub.f32 %v7050_v28, %v9540_v1  ;;  %v7115_v61 = vld [vmem:[%s9473_s4] ss:$0 sm:$0xff]  ;;  %9762 = vst [vmem:[#allocation17_spill] sm:$0xff] %v7130_v47  ;;  %v9552_v1 = vand.u32 4294901760, %v7102_v55  ;;  %v7152_v62 = vsub.f32 %v7084_v48, %v9546_v10 }
  0xca   :  { %5588 = vmatprep.mubr.f32.mxu0 %v6664_v13  ;;  %5641 = vmatprep.mubr.f32.mxu1 %v6639_v18  ;;  %v2230_v18 = vsub.f32 %v7030_v44, %v9541_v46  ;;  %v2250_v23 = vsub.f32 %v7060_v57, %v9542_v26  ;;  %v7139_v46 = vand.u32 4294901760, %v2067_v54  ;;  %v2006_v26 = vld [vmem:[%s9472_s1 + $0x78] sm:$0xff] }
  0xcb   :  { %v2076_v10 = vsel %vm2029_vm1, %v2006_v26, 0  ;;  %v2008_v26 = vld [vmem:[%s9472_s1 + $0x88] sm:$0xff]  ;;  %v2271_v29 = vand.u32 4294901760, %v7152_v62 }
  0xcc   :  { %9763 = vst [vmem:[#allocation18_spill] sm:$0xff] %v7139_v46 }
  0xcd   :  { %5589 = vmatmul.mubr.f32.gmra.mxu0 %v6675_v15  ;;  %5642 = vmatmul.mubr.f32.gmra.mxu1 %v6658_v30  ;;  %v2004_v30 = vld [vmem:[%s9472_s1 + $0x68] sm:$0xff] }
  0xce   :  { %5659 = vmatprep.mubr.f32.mxu0 %v2201_v60  ;;  %5644 = vmatprep.mubr.f32.mxu1 %v6664_v13  ;;  %v7119_v13 = vsub.f32 %v2058_v56, %v7086_v24  ;;  %v2231_v60 = vand.u32 4294901760, %v2230_v18  ;;  %v7136_v56 = vsub.f32 %v7069_v27, %v9543_v4  ;;  %v2070_v18 = vsel %vm2029_vm1, %v2004_v30, 0 }
  0xcf   :  { %v2073_v4 = vsel %vm2029_vm1, %v2005_v17, 0  ;;  %v7163_v17 = vand.u32 4294901760, %v2070_v18  ;;  %v7171_v30 = vsub.f32 %v7102_v55, %v9552_v1 }
  0xd0   :  { %9760 = vst [vmem:[#allocation15_spill] sm:$0xff] %v7119_v13  ;;  %v5321_v63 = vpop.f32.mrf.mxu0  ;;  %v2261_v12 = vand.u32 4294901760, %v7136_v56 }
  0xd1   :  { %5660 = vmatmul.mubr.f32.vlgmr.msra.gmra.mxu0 %v2211_v9  ;;  %5645 = vmatmul.mubr.f32.gmra.mxu1 %v6675_v15  ;;  %v259_v6 = vadd.f32 %v5321_v63, %v7115_v61  ;;  %v2241_v15 = vand.u32 4294901760, %v2240_v21  ;;  %v2251_v21 = vand.u32 4294901760, %v2250_v23  ;;  %9765 = vst [vmem:[#allocation20_spill] sm:$0xff] %v7163_v17  ;;  %v7174_v23 = vsub.f32 %v2067_v54, %v7139_v46  ;;  %v2009_v54 = vld [vmem:[%s9472_s1 + $0x90] sm:$0xff] }
  0xd2   :  { %v248_v9 = vpop.f32.mrf.mxu0  ;;  %5662 = vmatprep.mubr.f32.mxu0 %v2221_v38  ;;  %5719 = vmatprep.mubr.f32.mxu1 %v6977_v42  ;;  %v2007_v38 = vld [vmem:[%s9472_s1 + $0x80] sm:$0xff]  ;;  %v7176_v42 = vand.u32 4294901760, %v2073_v4  ;;  %v7210_v62 = vsub.f32 %v2070_v18, %v7163_v17  ;;  %v2010_v18 = vld [vmem:[%s9472_s1 + $0x98] sm:$0xff] }
  0xd3   :  { %5768 = vmatpush3.msra.mxu0 %v6730_v0  ;;  %9766 = vst [vmem:[#allocation21_spill] sm:$0xff] %v7174_v23  ;;  %v2079_v1 = vsel %vm2029_vm1, %v2007_v38, 0  ;;  %v9772_v38 = vand.u32 4294901760, %v7130_v47 }
  0xd4   :  { %v5324_v63 = vpop.f32.mrf.mxu0  ;;  %5769 = vmatprep.subr.mxu0 %v6840_v19  ;;  %9767 = vst [vmem:[#allocation23_spill] sm:$0xff] %v7176_v42 }
  0xd5   :  { %5663 = vmatmul.mubr.f32.gmra.mxu0 %v2231_v60  ;;  %v5377_v8 = vpop.f32.mrf.mxu1  ;;  %5720 = vmatmul.mubr.f32.vlgmr.msra.gmra.mxu1 %v6989_v52  ;;  %v249_v60 = vadd.f32 %v7115_v61, %v248_v9  ;;  %v279_v0 = vadd.f32 %v5324_v63, %v7115_v61  ;;  %v9769_v9 = vand.u32 4294901760, %v7119_v13 }
  0xd6   :  { %v268_v52 = vpop.f32.mrf.mxu0  ;;  %v7183_v56 = vadd.f32 %v5377_v8, %v259_v6  ;;  %5665 = vmatprep.mubr.f32.mxu0 %v2241_v15  ;;  %5828 = vmatpush3.msra.mxu1 %v6720_v33  ;;  %v7199_v6 = vand.u32 4294901760, %v2076_v10 }
  0xd7   :  { %v649_v34 = vpop.f32.mrf.mxu1  ;;  %5722 = vmatprep.mubr.f32.mxu1 %v6997_v35  ;;  %v7195_v63 = vsub.f32 %v7119_v13, %v9769_v9  ;;  %5770 = vmatpush3.msra.mxu0 %v6840_v19  ;;  %v7207_v35 = vsub.f32 %v7130_v47, %v9772_v38  ;;  %v2082_v19 = vsel %vm2029_vm1, %v2008_v26, 0  ;;  %v2085_v38 = vsel %vm2029_vm1, %v2009_v54, 0 }
  0xd8   :  { %9768 = vst [vmem:[#allocation24_spill] sm:$0xff] %v7183_v56  ;;  %9770 = vst [vmem:[#allocation25_spill] sm:$0xff] %v7199_v6  ;;  %v7201_v15 = vadd.f32 %v649_v34, %v249_v60  ;;  %5829 = vmatprep.subr.mxu1 %v6828_v40  ;;  %5771 = vmatprep.subr.mxu0 %v6859_v32  ;;  %v5327_v9 = vpop.f32.mrf.mxu0  ;;  %v7217_v60 = vsub.f32 %v2073_v4, %v7176_v42  ;;  %v2281_v4 = vand.u32 4294901760, %v7171_v30  ;;  %v2011_v30 = vld [vmem:[%s9472_s1 + $0xa0] sm:$0xff] }
  0xd9   :  { %5666 = vmatmul.mubr.f32.gmra.mxu0 %v2251_v21  ;;  %v5380_v8 = vpop.f32.mrf.mxu1  ;;  %5723 = vmatmul.mubr.f32.gmra.mxu1 %v7006_v5  ;;  %v269_v26 = vadd.f32 %v7115_v61, %v268_v52  ;;  %v299_v21 = vadd.f32 %v5327_v9, %v7115_v61  ;;  %v2291_v47 = vand.u32 4294901760, %v7195_v63  ;;  %v9775_v54 = vand.u32 4294901760, %v7156_v43 }
  0xda   :  { %9771 = vst [vmem:[#allocation26_spill] sm:$0xff] %v7201_v15  ;;  %v7219_v15 = vand.u32 4294901760, %v2079_v1  ;;  %v7227_v56 = vadd.f32 %v5380_v8, %v279_v0  ;;  %5668 = vmatprep.mubr.f32.mxu0 %v2261_v12  ;;  %5725 = vmatprep.mubr.f32.mxu1 %v7023_v37  ;;  %v288_v34 = vpop.f32.mrf.mxu0  ;;  %v7240_v52 = vsub.f32 %v2076_v10, %v7199_v6  ;;  %v7242_v0 = vand.u32 4294901760, %v2082_v19 }
  0xdb   :  { %v661_v5 = vpop.f32.mrf.mxu1  ;;  %5830 = vmatpush3.msra.mxu1 %v6828_v40  ;;  %v7236_v13 = vsub.f32 %v7156_v43, %v9775_v54  ;;  %5772 = vmatpush3.msra.mxu0 %v6859_v32  ;;  %v2301_v63 = vand.u32 4294901760, %v7207_v35  ;;  %v7251_v8 = vand.u32 4294901760, %v2085_v38  ;;  %v2088_v9 = vsel %vm2029_vm1, %v2010_v18, 0  ;;  %v2012_v18 = vld [vmem:[%s9472_s1 + $0xa8] sm:$0xff] }
  0xdc   :  { %9773 = vst [vmem:[#allocation27_spill] sm:$0xff] %v7219_v15  ;;  %9774 = vst [vmem:[#allocation28_spill] sm:$0xff] %v7227_v56  ;;  %v7247_v12 = vadd.f32 %v661_v5, %v269_v26  ;;  %5831 = vmatprep.subr.mxu1 %v6842_v45  ;;  %5773 = vmatprep.subr.mxu0 %v6871_v50  ;;  %v5330_v32 = vpop.f32.mrf.mxu0  ;;  %v9779_v54 = vand.u32 4294901760, %v7174_v23  ;;  %v7264_v37 = vsub.f32 %v2079_v1, %v7219_v15 }
  0xdd   :  { %9776 = vst [vmem:[#allocation29_spill] sm:$0xff] %v7242_v0  ;;  %9778 = vst [vmem:[#allocation31_spill] sm:$0xff] %v7251_v8  ;;  %5669 = vmatmul.mubr.f32.gmra.mxu0 %v2271_v29  ;;  %v5383_v10 = vpop.f32.mrf.mxu1  ;;  %5726 = vmatmul.mubr.f32.gmra.mxu1 %v7032_v53  ;;  %v2013_v29 = vld [vmem:[%s9472_s1 + $0xb0] sm:$0xff]  ;;  %v289_v53 = vadd.f32 %v7115_v61, %v288_v34  ;;  %v2091_v1 = vsel %vm2029_vm1, %v2011_v30, 0  ;;  %v2311_v56 = vand.u32 4294901760, %v7236_v13  ;;  %v7284_v34 = vand.u32 4294901760, %v2088_v9 }
  0xde   :  { %9777 = vst [vmem:[#allocation30_spill] sm:$0xff] %v7247_v12  ;;  %v7259_v5 = vsub.f32 %v7174_v23, %v9779_v54  ;;  %v319_v54 = vadd.f32 %v5330_v32, %v7115_v61  ;;  %v7274_v12 = vadd.f32 %v5383_v10, %v299_v21  ;;  %5671 = vmatprep.mubr.f32.mxu0 %v2281_v4  ;;  %v308_v26 = vpop.f32.mrf.mxu0  ;;  %v2094_v13 = vsel %vm2029_vm1, %v2012_v18, 0 }
  0xdf   :  { %5728 = vmatprep.mubr.f32.mxu1 %v7038_v20  ;;  %v673_v35 = vpop.f32.mrf.mxu1  ;;  %5832 = vmatpush3.msra.mxu1 %v6842_v45  ;;  %v7282_v43 = vsub.f32 %v2082_v19, %v7242_v0  ;;  %9782 = vst [vmem:[#allocation34_spill] sm:$0xff] %v7284_v34  ;;  %v7290_v4 = vsub.f32 %v2085_v38, %v7251_v8  ;;  %v2097_v30 = vsel %vm2029_vm1, %v2013_v29, 0  ;;  %v9786_v38 = vand.u32 4294901760, %v7217_v60 }
  0xe0   :  { %9780 = vst [vmem:[#allocation32_spill] sm:$0xff] %v7274_v12  ;;  %5774 = vmatpush3.msra.mxu0 %v6871_v50  ;;  %v7287_v21 = vadd.f32 %v673_v35, %v289_v53  ;;  %5833 = vmatprep.subr.mxu1 %v6853_v59  ;;  %v9785_v50 = vand.u32 4294901760, %v7210_v62  ;;  %v7306_v18 = vand.u32 4294901760, %v2091_v1  ;;  %v309_v29 = vadd.f32 %v7115_v61, %v308_v26 }
  0xe1   :  { %9781 = vst [vmem:[#allocation33_spill] sm:$0xff] %v7282_v43  ;;  %9784 = vst [vmem:[#allocation36_spill] sm:$0xff] %v7290_v4  ;;  %5775 = vmatprep.subr.mxu0 %v6896_v41  ;;  %v5333_v32 = vpop.f32.mrf.mxu0  ;;  %5672 = vmatmul.mubr.f32.gmra.mxu0 %v2291_v47  ;;  %v5386_v19 = vpop.f32.mrf.mxu1  ;;  %v7303_v10 = vsub.f32 %v7217_v60, %v9786_v38  ;;  %v2014_v47 = vld [vmem:[%s9472_s1 + $0xb8] sm:$0xff]  ;;  %v9788_v35 = vand.u32 4294901760, %v7240_v52  ;;  %v7323_v12 = vsub.f32 %v2088_v9, %v7284_v34 }
  0xe2   :  { %9783 = vst [vmem:[#allocation35_spill] sm:$0xff] %v7287_v21  ;;  %5729 = vmatmul.mubr.f32.gmra.mxu1 %v7056_v58  ;;  %v2330_v53 = vsub.f32 %v7210_v62, %v9785_v50  ;;  %v339_v23 = vadd.f32 %v5333_v32, %v7115_v61  ;;  %v7313_v58 = vadd.f32 %v5386_v19, %v319_v54  ;;  %v2321_v50 = vand.u32 4294901760, %v7259_v5 }
  0xe3   :  { %5674 = vmatprep.mubr.f32.mxu0 %v2301_v63  ;;  %5731 = vmatprep.mubr.f32.mxu1 %v7071_v51  ;;  %v328_v38 = vpop.f32.mrf.mxu0  ;;  %v685_v20 = vpop.f32.mrf.mxu1  ;;  %v7320_v21 = vsub.f32 %v7240_v52, %v9788_v35  ;;  %9789 = vst [vmem:[#allocation38_spill] sm:$0xff] %v7323_v12  ;;  %v7326_v26 = vand.u32 4294901760, %v2094_v13  ;;  %v7328_v54 = vand.u32 4294901760, %v2097_v30  ;;  %v2015_v63 = vld [vmem:[%s9472_s1 + $0xc0] sm:$0xff]  ;;  %v2100_v9 = vsel %vm2029_vm1, %v2014_v47, 0 }
  0xe4   :  { %9787 = vst [vmem:[#allocation37_spill] sm:$0xff] %v7313_v58  ;;  %5834 = vmatpush3.msra.mxu1 %v6853_v59  ;;  %5776 = vmatpush3.msra.mxu0 %v6896_v41  ;;  %v7334_v5 = vadd.f32 %v685_v20, %v309_v29  ;;  %v2331_v58 = vand.u32 4294901760, %v2330_v53  ;;  %v2341_v41 = vand.u32 4294901760, %v7303_v10  ;;  %v9793_v20 = vand.u32 4294901760, %v7264_v37  ;;  %v2016_v53 = vld [vmem:[%s9472_s1 + $0xc8] sm:$0xff] }
  0xe5   :  { %9790 = vst [vmem:[#allocation39_spill] sm:$0xff] %v7326_v26  ;;  %9791 = vst [vmem:[#allocation40_spill] sm:$0xff] %v7328_v54  ;;  %5835 = vmatprep.subr.mxu1 %v6878_v49  ;;  %5777 = vmatprep.subr.mxu0 %v6913_v7  ;;  %v5336_v35 = vpop.f32.mrf.mxu0  ;;  %v5389_v51 = vpop.f32.mrf.mxu1  ;;  %v7349_v19 = vsub.f32 %v2091_v1, %v7306_v18  ;;  %v329_v47 = vadd.f32 %v7115_v61, %v328_v38  ;;  %v2017_v1 = vld [vmem:[%s9472_s1 + $0xd0] sm:$0xff] }
  0xe6   :  { %9792 = vst [vmem:[#allocation41_spill] sm:$0xff] %v7334_v5  ;;  %5675 = vmatmul.mubr.f32.gmra.mxu0 %v2311_v56  ;;  %5732 = vmatmul.mubr.f32.gmra.mxu1 %v7086_v24  ;;  %v7346_v29 = vsub.f32 %v7264_v37, %v9793_v20  ;;  %v359_v32 = vadd.f32 %v5336_v35, %v7115_v61  ;;  %v2103_v56 = vsel %vm2029_vm1, %v2015_v63, 0  ;;  %v2351_v35 = vand.u32 4294901760, %v7320_v21  ;;  %v2018_v21 = vld [vmem:[%s9472_s1 + $0xd8] sm:$0xff] }
  0xe7   :  { %9794 = vst [vmem:[#allocation42_spill] sm:$0xff] %v7349_v19  ;;  %v7353_v5 = vadd.f32 %v5389_v51, %v339_v23  ;;  %5677 = vmatprep.mubr.f32.mxu0 %v2321_v50  ;;  %5734 = vmatprep.mubr.f32.mxu1 %v7095_v36  ;;  %v348_v10 = vpop.f32.mrf.mxu0  ;;  %v697_v20 = vpop.f32.mrf.mxu1  ;;  %v7365_v51 = vsub.f32 %v2094_v13, %v7326_v26  ;;  %v7370_v50 = vand.u32 4294901760, %v2100_v9  ;;  %v9800_v36 = vand.u32 4294901760, %v7282_v43 }
  0xe8   :  { %v7368_v23 = vsub.f32 %v2097_v30, %v7328_v54  ;;  %5836 = vmatpush3.msra.mxu1 %v6878_v49  ;;  %5778 = vmatpush3.msra.mxu0 %v6913_v7  ;;  %v7374_v63 = vadd.f32 %v697_v20, %v329_v47  ;;  %v9801_v13 = vand.u32 4294901760, %v7290_v4  ;;  %v7389_v47 = vand.u32 4294901760, %v2103_v56 }
  0xe9   :  { %9795 = vst [vmem:[#allocation43_spill] sm:$0xff] %v7353_v5  ;;  %9796 = vst [vmem:[#allocation44_spill] sm:$0xff] %v7365_v51  ;;  %v2370_v38 = vsub.f32 %v7282_v43, %v9800_v36  ;;  %5837 = vmatprep.subr.mxu1 %v6898_v25  ;;  %5887 = vmatprep.subr.mxu0 %v6743_v22  ;;  %v5339_v30 = vpop.f32.mrf.mxu0  ;;  %v5392_v7 = vpop.f32.mrf.mxu1  ;;  %v2106_v36 = vsel %vm2029_vm1, %v2016_v53, 0  ;;  %v2109_v20 = vsel %vm2029_vm1, %v2017_v1, 0  ;;  %v9804_v53 = vand.u32 4294901760, %v7323_v12 }
  0xea   :  { %9797 = vst [vmem:[#allocation45_spill] sm:$0xff] %v7368_v23  ;;  %9798 = vst [vmem:[#allocation46_spill] sm:$0xff] %v7370_v50  ;;  %v7383_v24 = vsub.f32 %v7290_v4, %v9801_v13  ;;  %5678 = vmatmul.mubr.f32.gmra.mxu0 %v2331_v58  ;;  %5735 = vmatmul.mubr.f32.gmra.mxu1 %v7121_v2  ;;  %v349_v13 = vadd.f32 %v7115_v61, %v348_v10  ;;  %v2361_v58 = vand.u32 4294901760, %v7346_v29  ;;  %v2019_v29 = vld [vmem:[%s9472_s1 + $0xe0] sm:$0xff] }
  0xeb   :  { %9799 = vst [vmem:[#allocation47_spill] sm:$0xff] %v7374_v63  ;;  %9802 = vst [vmem:[#allocation48_spill] sm:$0xff] %v7389_v47  ;;  %v379_v63 = vadd.f32 %v5339_v30, %v7115_v61  ;;  %v7395_v5 = vadd.f32 %v5392_v7, %v359_v32  ;;  %5680 = vmatprep.mubr.f32.mxu0 %v2341_v41  ;;  %5737 = vmatprep.mubr.f32.mxu1 %v7139_v46  ;;  %v368_v2 = vpop.f32.mrf.mxu0  ;;  %v709_v4 = vpop.f32.mrf.mxu1  ;;  %v2371_v7 = vand.u32 4294901760, %v2370_v38 }
  0xec   :  { %v2390_v1 = vsub.f32 %v7323_v12, %v9804_v53  ;;  %v7408_v41 = vsub.f32 %v2100_v9, %v7370_v50  ;;  %5838 = vmatpush3.msra.mxu1 %v6898_v25  ;;  %v7414_v30 = vadd.f32 %v709_v4, %v349_v13  ;;  %v7416_v46 = vand.u32 4294901760, %v2106_v36 }
  0xed   :  { %9803 = vst [vmem:[#allocation49_spill] sm:$0xff] %v7395_v5  ;;  %v7418_v5 = vand.u32 4294901760, %v2109_v20  ;;  %5947 = vmatprep.subr.mxu1 %v6720_v33  ;;  %v5342_v53 = vpop.f32.mrf.mxu0  ;;  %v5395_v32 = vpop.f32.mrf.mxu1  ;;  %v2381_v9 = vand.u32 4294901760, %v7383_v24  ;;  %v9808_v10 = vand.u32 4294901760, %v7349_v19  ;;  %v7427_v4 = vsub.f32 %v2103_v56, %v7389_v47 }
  0xee   :  { %9805 = vst [vmem:[#allocation50_spill] sm:$0xff] %v7414_v30  ;;  %9806 = vst [vmem:[#allocation51_spill] sm:$0xff] %v7416_v46  ;;  %5681 = vmatmul.mubr.f32.gmra.mxu0 %v2351_v35  ;;  %5738 = vmatmul.mubr.f32.gmra.mxu1 %v7163_v17  ;;  %v2112_v38 = vsel %vm2029_vm1, %v2018_v21, 0  ;;  %v369_v13 = vadd.f32 %v7115_v61, %v368_v2  ;;  %v399_v30 = vadd.f32 %v5342_v53, %v7115_v61  ;;  %v2020_v35 = vld [vmem:[%s9472_s1 + $0xe8] sm:$0xff] }
  0xef   :  { %9807 = vst [vmem:[#allocation52_spill] sm:$0xff] %v7418_v5  ;;  %v2400_v12 = vsub.f32 %v7349_v19, %v9808_v10  ;;  %9809 = vst [vmem:[#allocation53_spill] sm:$0xff] %v7427_v4  ;;  %v7432_v43 = vadd.f32 %v5395_v32, %v379_v63  ;;  %5683 = vmatprep.mubr.f32.mxu0 %v2361_v58  ;;  %5740 = vmatprep.mubr.f32.mxu1 %v7176_v42  ;;  %v2115_v24 = vsel %vm2029_vm1, %v2019_v29, 0  ;;  %v388_v10 = vpop.f32.mrf.mxu0  ;;  %v721_v56 = vpop.f32.mrf.mxu1  ;;  %v2021_v32 = vld [vmem:[%s9472_s1 + $0xf0] sm:$0xff] }
  0xf0   :  { %v2391_v17 = vand.u32 4294901760, %v2390_v1  ;;  %v9811_v21 = vand.u32 4294901760, %v7365_v51  ;;  %v9812_v53 = vand.u32 4294901760, %v7368_v23  ;;  %v7451_v29 = vadd.f32 %v721_v56, %v369_v13 }
  0xf1   :  { %9810 = vst [vmem:[#allocation54_spill] sm:$0xff] %v7432_v43  ;;  %v7454_v42 = vsub.f32 %v2106_v36, %v7416_v46  ;;  %v7457_v1 = vsub.f32 %v2109_v20, %v7418_v5  ;;  %v5345_v43 = vpop.f32.mrf.mxu0  ;;  %v2401_v58 = vand.u32 4294901760, %v2400_v12  ;;  %v2118_v13 = vsel %vm2029_vm1, %v2020_v35, 0 }
  0xf2   :  { %v2410_v2 = vsub.f32 %v7365_v51, %v9811_v21  ;;  %v7445_v63 = vsub.f32 %v7368_v23, %v9812_v53  ;;  %9813 = vst [vmem:[#allocation55_spill] sm:$0xff] %v7451_v29  ;;  %v7459_v21 = vand.u32 4294901760, %v2112_v38  ;;  %5684 = vmatmul.mubr.f32.gmra.mxu0 %v2371_v7  ;;  %v5398_v53 = vpop.f32.mrf.mxu1  ;;  %5741 = vmatmul.mubr.f32.gmra.mxu1 %v7199_v6  ;;  %v7463_v51 = vand.u32 4294901760, %v2115_v24 }
  0xf3   :  { %v389_v36 = vadd.f32 %v7115_v61, %v388_v10  ;;  %v419_v56 = vadd.f32 %v5345_v43, %v7115_v61  ;;  %v7468_v20 = vadd.f32 %v5398_v53, %v399_v30  ;;  %5686 = vmatprep.mubr.f32.mxu0 %v2381_v9  ;;  %5743 = vmatprep.mubr.f32.mxu1 %v7219_v15  ;;  %v2121_v7 = vsel %vm2029_vm1, %v2021_v32, 0  ;;  %v408_v29 = vpop.f32.mrf.mxu0  ;;  %v2022_v43 = vld [vmem:[%s9472_s1 + $0xf8] sm:$0xff] }
  0xf4   :  { %9814 = vst [vmem:[#allocation56_spill] sm:$0xff] %v7459_v21  ;;  %9815 = vst [vmem:[#allocation57_spill] sm:$0xff] %v7463_v51  ;;  %v733_v6 = vpop.f32.mrf.mxu1  ;;  %v2411_v12 = vand.u32 4294901760, %v2410_v2  ;;  %v2421_v23 = vand.u32 4294901760, %v7445_v63  ;;  %v9817_v19 = vand.u32 4294901760, %v7408_v41  ;;  %v7484_v32 = vsub.f32 %v2112_v38, %v7459_v21 }
  0xf5   :  { %9816 = vst [vmem:[#allocation58_spill] sm:$0xff] %v7468_v20  ;;  %v7479_v30 = vadd.f32 %v733_v6, %v389_v36  ;;  %v5348_v2 = vpop.f32.mrf.mxu0  ;;  %v7491_v15 = vsub.f32 %v2115_v24, %v7463_v51  ;;  %v7493_v6 = vand.u32 4294901760, %v2118_v13  ;;  %v7495_v36 = vand.u32 4294901760, %v2121_v7 }
  0xf6   :  { %v2430_v35 = vsub.f32 %v7408_v41, %v9817_v19  ;;  %5687 = vmatmul.mubr.f32.gmra.mxu0 %v2391_v17  ;;  %v5401_v63 = vpop.f32.mrf.mxu1  ;;  %5744 = vmatmul.mubr.f32.gmra.mxu1 %v7242_v0  ;;  %v9819_v19 = vand.u32 4294901760, %v7427_v4  ;;  %v409_v10 = vadd.f32 %v7115_v61, %v408_v29  ;;  %v439_v38 = vadd.f32 %v5348_v2, %v7115_v61 }
  0xf7   :  { %9818 = vst [vmem:[#allocation59_spill] sm:$0xff] %v7479_v30  ;;  %9820 = vst [vmem:[#allocation60_spill] sm:$0xff] %v7493_v6  ;;  %v7499_v9 = vadd.f32 %v5401_v63, %v419_v56  ;;  %5689 = vmatprep.mubr.f32.mxu0 %v2401_v58  ;;  %5746 = vmatprep.mubr.f32.mxu1 %v7251_v8  ;;  %v2124_v17 = vsel %vm2029_vm1, %v2022_v43, 0  ;;  %v428_v0 = vpop.f32.mrf.mxu0  ;;  %v9824_v20 = vand.u32 4294901760, %v7454_v42  ;;  %v9825_v29 = vand.u32 4294901760, %v7457_v1 }
  0xf8   :  { %v2440_v53 = vsub.f32 %v7427_v4, %v9819_v19  ;;  %9821 = vst [vmem:[#allocation61_spill] sm:$0xff] %v7495_v36  ;;  %v745_v19 = vpop.f32.mrf.mxu1  ;;  %v2431_v30 = vand.u32 4294901760, %v2430_v35  ;;  %v7515_v35 = vsub.f32 %v2118_v13, %v7493_v6 }
  0xf9   :  { %9822 = vst [vmem:[#allocation62_spill] sm:$0xff] %v7499_v9  ;;  %v7503_v24 = vadd.f32 %v745_v19, %v409_v10  ;;  %v2450_v4 = vsub.f32 %v7454_v42, %v9824_v20  ;;  %v2460_v2 = vsub.f32 %v7457_v1, %v9825_v29  ;;  %v5351_v58 = vpop.f32.mrf.mxu0  ;;  %v7518_v10 = vsub.f32 %v2121_v7, %v7495_v36 }
  0xfa   :  { %5690 = vmatmul.mubr.f32.gmra.mxu0 %v2411_v12  ;;  %v5404_v63 = vpop.f32.mrf.mxu1  ;;  %5747 = vmatmul.mubr.f32.gmra.mxu1 %v7284_v34  ;;  %v7520_v20 = vand.u32 4294901760, %v2124_v17  ;;  %v429_v19 = vadd.f32 %v7115_v61, %v428_v0  ;;  %v459_v29 = vadd.f32 %v5351_v58, %v7115_v61  ;;  %v2441_v12 = vand.u32 4294901760, %v2440_v53 }
  0xfb   :  { %9823 = vst [vmem:[#allocation63_spill] sm:$0xff] %v7503_v24  ;;  %v7524_v56 = vadd.f32 %v5404_v63, %v439_v38  ;;  %5692 = vmatprep.mubr.f32.mxu0 %v2421_v23  ;;  %5749 = vmatprep.mubr.f32.mxu1 %v7306_v18  ;;  %v448_v34 = vpop.f32.mrf.mxu0  ;;  %v2451_v13 = vand.u32 4294901760, %v2450_v4  ;;  %v9827_v7 = vand.u32 4294901760, %v7484_v32  ;;  %v9828_v38 = vand.u32 4294901760, %v7491_v15 }
  0xfc   :  { %9826 = vst [vmem:[#allocation64_spill] sm:$0xff] %v7520_v20  ;;  %v757_v43 = vpop.f32.mrf.mxu1  ;;  %v7539_v63 = vsub.f32 %v2124_v17, %v7520_v20  ;;  %v449_v4 = vadd.f32 %v7115_v61, %v448_v34  ;;  %v9830_v34 = vand.u32 4294901760, %v7515_v35 }
  0xfd   :  { %v7527_v8 = vadd.f32 %v757_v43, %v429_v19  ;;  %v2470_v24 = vsub.f32 %v7484_v32, %v9827_v7  ;;  %v5354_v9 = vpop.f32.mrf.mxu0  ;;  %v2480_v23 = vsub.f32 %v7491_v15, %v9828_v38 }
  0xfe   :  { %5693 = vmatmul.mubr.f32.gmra.mxu0 %v2431_v30  ;;  %v5407_v0 = vpop.f32.mrf.mxu1  ;;  %5750 = vmatmul.mubr.f32.gmra.mxu1 %v7326_v26  ;;  %v479_v43 = vadd.f32 %v5354_v9, %v7115_v61  ;;  %v2461_v30 = vand.u32 4294901760, %v2460_v2  ;;  %v2490_v9 = vsub.f32 %v7515_v35, %v9830_v34  ;;  %v9621_v2 = vand.u32 4294901760, %v7539_v63 }
  0xff   :  { %v7543_v19 = vadd.f32 %v5407_v0, %v459_v29  ;;  %5695 = vmatprep.mubr.f32.mxu0 %v2441_v12  ;;  %5752 = vmatprep.mubr.f32.mxu1 %v7328_v54  ;;  %v468_v7 = vpop.f32.mrf.mxu0  ;;  %v2471_v17 = vand.u32 4294901760, %v2470_v24  ;;  %v9831_v29 = vand.u32 4294901760, %v7518_v10  ;;  %v2481_v24 = vand.u32 4294901760, %v2480_v23 }
 0x100   :  { %v769_v26 = vpop.f32.mrf.mxu1  ;;  %v469_v0 = vadd.f32 %v7115_v61, %v468_v7 }
 0x101   :  { %v7546_v38 = vadd.f32 %v769_v26, %v449_v4  ;;  %v5357_v53 = vpop.f32.mrf.mxu0  ;;  %v2500_v12 = vsub.f32 %v7518_v10, %v9831_v29  ;;  %v2491_v29 = vand.u32 4294901760, %v2490_v9 }
 0x102   :  { %5696 = vmatmul.mubr.f32.gmra.mxu0 %v2451_v13  ;;  %v5410_v58 = vpop.f32.mrf.mxu1  ;;  %5753 = vmatmul.mubr.f32.gmra.mxu1 %v7370_v50  ;;  %v499_v26 = vadd.f32 %v5357_v53, %v7115_v61  ;;  %v2510_v53 = vsub.f32 %v7539_v63, %v9621_v2 }
 0x103   :  { %9829 = vst [vmem:[#allocation65_spill] sm:$0xff] %v7546_v38  ;;  %v7558_v4 = vadd.f32 %v5410_v58, %v479_v43  ;;  %5698 = vmatprep.mubr.f32.mxu0 %v2461_v30  ;;  %5755 = vmatprep.mubr.f32.mxu1 %v7389_v47  ;;  %v488_v13 = vpop.f32.mrf.mxu0 }
 0x104   :  { %v781_v50 = vpop.f32.mrf.mxu1  ;;  %v489_v58 = vadd.f32 %v7115_v61, %v488_v13  ;;  %v2511_v2 = vand.u32 4294901760, %v2510_v53 }
 0x105   :  { %9832 = vst [vmem:[#allocation66_spill] sm:$0xff] %v7558_v4  ;;  %v7561_v54 = vadd.f32 %v781_v50, %v469_v0  ;;  %v5360_v34 = vpop.f32.mrf.mxu0  ;;  %v2501_v50 = vand.u32 4294901760, %v2500_v12 }
 0x106   :  { %5699 = vmatmul.mubr.f32.gmra.mxu0 %v2471_v17  ;;  %v5413_v38 = vpop.f32.mrf.mxu1  ;;  %5756 = vmatmul.mubr.f32.gmra.mxu1 %v7416_v46  ;;  %v519_v43 = vadd.f32 %v5360_v34, %v7115_v61 }
 0x107   :  { %9833 = vst [vmem:[#allocation67_spill] sm:$0xff] %v7561_v54  ;;  %v7569_v30 = vadd.f32 %v5413_v38, %v499_v26  ;;  %5701 = vmatprep.mubr.f32.mxu0 %v2481_v24  ;;  %5758 = vmatprep.mubr.f32.mxu1 %v7418_v5  ;;  %v508_v23 = vpop.f32.mrf.mxu0  ;;  %v9871_v5 = vld [vmem:[#allocation44_spill] sm:$0xff] }
 0x108   :  { %v793_v7 = vpop.f32.mrf.mxu1  ;;  %v509_v13 = vadd.f32 %v7115_v61, %v508_v23  ;;  %v9877_v54 = vand.u32 4294901760, %v9871_v5 }
 0x109   :  { %9834 = vst [vmem:[#allocation68_spill] sm:$0xff] %v7569_v30  ;;  %v7572_v17 = vadd.f32 %v793_v7, %v489_v58  ;;  %v5363_v0 = vpop.f32.mrf.mxu0 }
 0x10a   :  { %5702 = vmatmul.mubr.f32.gmra.mxu0 %v2491_v29  ;;  %v5416_v9 = vpop.f32.mrf.mxu1  ;;  %5759 = vmatmul.mubr.f32.gmra.mxu1 %v7459_v21  ;;  %v539_v34 = vadd.f32 %v5363_v0, %v7115_v61 }
 0x10b   :  { %9835 = vst [vmem:[#allocation69_spill] sm:$0xff] %v7572_v17  ;;  %v7577_v38 = vadd.f32 %v5416_v9, %v519_v43  ;;  %5704 = vmatprep.mubr.f32.mxu0 %v2501_v50  ;;  %5761 = vmatprep.mubr.f32.mxu1 %v7463_v51  ;;  %v528_v12 = vpop.f32.mrf.mxu0  ;;  %v9867_v51 = vld [vmem:[#allocation38_spill] sm:$0xff] }
 0x10c   :  { %v805_v26 = vpop.f32.mrf.mxu1  ;;  %v529_v53 = vadd.f32 %v7115_v61, %v528_v12  ;;  %v9872_v17 = vand.u32 4294901760, %v9867_v51 }
 0x10d   :  { %9836 = vst [vmem:[#allocation70_spill] sm:$0xff] %v7577_v38  ;;  %v7580_v24 = vadd.f32 %v805_v26, %v509_v13  ;;  %v5366_v58 = vpop.f32.mrf.mxu0 }
 0x10e   :  { %5705 = vmatmul.mubr.f32.gmra.mxu0 %v2511_v2  ;;  %v5419_v29 = vpop.f32.mrf.mxu1  ;;  %5762 = vmatmul.mubr.f32.gmra.mxu1 %v7493_v6  ;;  %v559_v23 = vadd.f32 %v5366_v58, %v7115_v61 }
 0x10f   :  { %9837 = vst [vmem:[#allocation71_spill] sm:$0xff] %v7580_v24  ;;  %v7585_v7 = vadd.f32 %v5419_v29, %v539_v34  ;;  %5779 = vmatprep.mubr.f32.mxu0 %v6995_v39  ;;  %5764 = vmatprep.mubr.f32.mxu1 %v7495_v36  ;;  %v548_v43 = vpop.f32.mrf.mxu0  ;;  %v9841_v34 = vand.u32 4294901760, %v6995_v39 }
 0x110   :  { %v817_v50 = vpop.f32.mrf.mxu1  ;;  %v549_v13 = vadd.f32 %v7115_v61, %v548_v43  ;;  %v9844_v43 = vand.u32 4294901760, %v7021_v14 }
 0x111   :  { %9838 = vst [vmem:[#allocation72_spill] sm:$0xff] %v7585_v7  ;;  %v7589_v0 = vadd.f32 %v817_v50, %v529_v53  ;;  %v7591_v9 = vpop.f32.mrf.mxu0 }
 0x112   :  { %5780 = vmatmul.mubr.f32.vlgmr.msra.gmra.mxu0 %v7011_v31  ;;  %v5422_v2 = vpop.f32.mrf.mxu1  ;;  %5765 = vmatmul.mubr.f32.gmra.mxu1 %v7520_v20 }
 0x113   :  { %9839 = vst [vmem:[#allocation73_spill] sm:$0xff] %v7589_v0  ;;  %v7596_v12 = vadd.f32 %v5422_v2, %v559_v23  ;;  %5782 = vmatprep.mubr.f32.mxu0 %v7021_v14  ;;  %5839 = vmatprep.mubr.f32.mxu1 %v9841_v34  ;;  %v7601_v26 = vpop.f32.mrf.mxu0  ;;  %v9843_v23 = vand.u32 4294901760, %v7011_v31  ;;  %v9846_v14 = vand.u32 4294901760, %v7050_v28  ;;  %v9848_v34 = vand.u32 4294901760, %v7069_v27 }
 0x114   :  { %v829_v58 = vpop.f32.mrf.mxu1  ;;  %5888 = vmatpush3.msra.mxu0 %v6743_v22  ;;  %v9864_v0 = vand.u32 4294901760, %v7240_v52 }
 0x115   :  { %9840 = vst [vmem:[#allocation74_spill] sm:$0xff] %v7596_v12  ;;  %v7604_v29 = vadd.f32 %v829_v58, %v549_v13  ;;  %5889 = vmatprep.subr.mxu0 %v6856_v16  ;;  %v7607_v53 = vpop.f32.mrf.mxu0  ;;  %v9849_v58 = vld [vmem:[#allocation22_spill] sm:$0xff] }
 0x116   :  { %5783 = vmatmul.mubr.f32.gmra.mxu0 %v7030_v44  ;;  %v7610_v61 = vpop.f32.mrf.mxu1  ;;  %5840 = vmatmul.mubr.f32.vlgmr.msra.gmra.mxu1 %v9843_v23 }
 0x117   :  { %9842 = vst [vmem:[#allocation75_spill] sm:$0xff] %v7604_v29  ;;  %5785 = vmatprep.mubr.f32.mxu0 %v7050_v28  ;;  %5948 = vmatpush3.msra.mxu1 %v6720_v33  ;;  %v7616_v39 = vpop.f32.mrf.mxu0  ;;  %v9845_v33 = vand.u32 4294901760, %v7030_v44  ;;  %v9847_v28 = vand.u32 4294901760, %v7060_v57 }
 0x118   :  { %v7618_v22 = vpop.f32.mrf.mxu1  ;;  %5842 = vmatprep.mubr.f32.mxu1 %v9844_v43  ;;  %5890 = vmatpush3.msra.mxu0 %v6856_v16 }
 0x119   :  { %5949 = vmatprep.subr.mxu1 %v6828_v40  ;;  %5891 = vmatprep.subr.mxu0 %v6876_v11  ;;  %v7625_v50 = vpop.f32.mrf.mxu0 }
 0x11a   :  { %5786 = vmatmul.mubr.f32.gmra.mxu0 %v7060_v57  ;;  %v7628_v31 = vpop.f32.mrf.mxu1  ;;  %5843 = vmatmul.mubr.f32.gmra.mxu1 %v9845_v33  ;;  %v9850_v57 = vld [vmem:[#allocation15_spill] sm:$0xff]  ;;  %v9852_v33 = vld [vmem:[#allocation17_spill] sm:$0xff] }
 0x11b   :  { %5788 = vmatprep.mubr.f32.mxu0 %v7069_v27  ;;  %5845 = vmatprep.mubr.f32.mxu1 %v9846_v14  ;;  %v7635_v2 = vpop.f32.mrf.mxu0  ;;  %v9851_v27 = vand.u32 4294901760, %v7084_v48  ;;  %v9853_v14 = vand.u32 4294901760, %v7102_v55  ;;  %v9858_v20 = vand.u32 4294901760, %v9852_v33 }
 0x11c   :  { %v7637_v16 = vpop.f32.mrf.mxu1  ;;  %5950 = vmatpush3.msra.mxu1 %v6828_v40  ;;  %5892 = vmatpush3.msra.mxu0 %v6876_v11 }
 0x11d   :  { %5951 = vmatprep.subr.mxu1 %v6842_v45  ;;  %5893 = vmatprep.subr.mxu0 %v6890_v3  ;;  %v7643_v13 = vpop.f32.mrf.mxu0 }
 0x11e   :  { %5789 = vmatmul.mubr.f32.gmra.mxu0 %v7084_v48  ;;  %v7646_v44 = vpop.f32.mrf.mxu1  ;;  %5846 = vmatmul.mubr.f32.gmra.mxu1 %v9847_v28  ;;  %v9854_v28 = vld [vmem:[#allocation3_spill] sm:$0xff] }
 0x11f   :  { %5791 = vmatprep.mubr.f32.mxu0 %v7102_v55  ;;  %5848 = vmatprep.mubr.f32.mxu1 %v9848_v34  ;;  %v7653_v40 = vpop.f32.mrf.mxu0  ;;  %v9855_v48 = vld [vmem:[#allocation19_spill] sm:$0xff]  ;;  %v9856_v55 = vand.u32 4294901760, %v9850_v57 }
 0x120   :  { %v7655_v11 = vpop.f32.mrf.mxu1  ;;  %5952 = vmatpush3.msra.mxu1 %v6842_v45  ;;  %5894 = vmatpush3.msra.mxu0 %v6890_v3 }
 0x121   :  { %5953 = vmatprep.subr.mxu1 %v6853_v59  ;;  %5895 = vmatprep.subr.mxu0 %v9849_v58  ;;  %v7661_v23 = vpop.f32.mrf.mxu0 }
 0x122   :  { %5792 = vmatmul.mubr.f32.gmra.mxu0 %v9850_v57  ;;  %v7664_v43 = vpop.f32.mrf.mxu1  ;;  %5849 = vmatmul.mubr.f32.gmra.mxu1 %v9851_v27 }
 0x123   :  { %5794 = vmatprep.mubr.f32.mxu0 %v9852_v33  ;;  %5851 = vmatprep.mubr.f32.mxu1 %v9853_v14  ;;  %v7671_v45 = vpop.f32.mrf.mxu0  ;;  %v9857_v14 = vld [vmem:[#allocation21_spill] sm:$0xff] }
 0x124   :  { %v7673_v3 = vpop.f32.mrf.mxu1  ;;  %5954 = vmatpush3.msra.mxu1 %v6853_v59  ;;  %5896 = vmatpush3.msra.mxu0 %v9849_v58 }
 0x125   :  { %5955 = vmatprep.subr.mxu1 %v6878_v49  ;;  %5897 = vmatprep.subr.mxu0 %v9854_v28  ;;  %v7679_v34 = vpop.f32.mrf.mxu0 }
 0x126   :  { %5795 = vmatmul.mubr.f32.gmra.mxu0 %v9855_v48  ;;  %v7682_v27 = vpop.f32.mrf.mxu1  ;;  %5852 = vmatmul.mubr.f32.gmra.mxu1 %v9856_v55  ;;  %v9859_v55 = vand.u32 4294901760, %v9855_v48  ;;  %v9861_v48 = vand.u32 4294901760, %v7210_v62 }
 0x127   :  { %5797 = vmatprep.mubr.f32.mxu0 %v9857_v14  ;;  %5854 = vmatprep.mubr.f32.mxu1 %v9858_v20  ;;  %v7689_v59 = vpop.f32.mrf.mxu0  ;;  %v9860_v20 = vand.u32 4294901760, %v9857_v14  ;;  %v9862_v14 = vand.u32 4294901760, %v7217_v60 }
 0x128   :  { %v7691_v58 = vpop.f32.mrf.mxu1  ;;  %5956 = vmatpush3.msra.mxu1 %v6878_v49  ;;  %5898 = vmatpush3.msra.mxu0 %v9854_v28 }
 0x129   :  { %5957 = vmatprep.subr.mxu1 %v6898_v25  ;;  %v7696_v29 = vpop.f32.mrf.mxu0 }
 0x12a   :  { %5798 = vmatmul.mubr.f32.gmra.mxu0 %v7210_v62  ;;  %v7699_v57 = vpop.f32.mrf.mxu1  ;;  %5855 = vmatmul.mubr.f32.gmra.mxu1 %v9859_v55  ;;  %v9865_v62 = vld [vmem:[#allocation36_spill] sm:$0xff] }
 0x12b   :  { %5800 = vmatprep.mubr.f32.mxu0 %v7217_v60  ;;  %5857 = vmatprep.mubr.f32.mxu1 %v9860_v20  ;;  %v7706_v33 = vpop.f32.mrf.mxu0 }
 0x12c   :  { %v7708_v49 = vpop.f32.mrf.mxu1  ;;  %5958 = vmatpush3.msra.mxu1 %v6898_v25  ;;  %v9863_v25 = vld [vmem:[#allocation33_spill] sm:$0xff] }
 0x12d   :  { %v7711_v28 = vpop.f32.mrf.mxu0  ;;  %v9868_v24 = vand.u32 4294901760, %v9863_v25 }
 0x12e   :  { %5801 = vmatmul.mubr.f32.gmra.mxu0 %v7240_v52  ;;  %v7714_v12 = vpop.f32.mrf.mxu1  ;;  %5858 = vmatmul.mubr.f32.gmra.mxu1 %v9861_v48  ;;  %v9866_v48 = vand.u32 4294901760, %v7264_v37  ;;  %v9869_v52 = vld [vmem:[#allocation42_spill] sm:$0xff] }
 0x12f   :  { %5803 = vmatprep.mubr.f32.mxu0 %v7264_v37  ;;  %5860 = vmatprep.mubr.f32.mxu1 %v9862_v14  ;;  %v7721_v55 = vpop.f32.mrf.mxu0 }
 0x130   :  { %v7723_v20 = vpop.f32.mrf.mxu1 }
 0x131   :  { %v7725_v36 = vpop.f32.mrf.mxu0 }
 0x132   :  { %5804 = vmatmul.mubr.f32.gmra.mxu0 %v9863_v25  ;;  %v7728_v6 = vpop.f32.mrf.mxu1  ;;  %5861 = vmatmul.mubr.f32.gmra.mxu1 %v9864_v0  ;;  %v9870_v0 = vand.u32 4294901760, %v9865_v62  ;;  %v9873_v25 = vld [vmem:[#allocation45_spill] sm:$0xff] }
 0x133   :  { %5806 = vmatprep.mubr.f32.mxu0 %v9865_v62  ;;  %5863 = vmatprep.mubr.f32.mxu1 %v9866_v48  ;;  %v7735_v60 = vpop.f32.mrf.mxu0 }
 0x134   :  { %v7737_v14 = vpop.f32.mrf.mxu1 }
 0x135   :  { %v7739_v7 = vpop.f32.mrf.mxu0 }
 0x136   :  { %5807 = vmatmul.mubr.f32.gmra.mxu0 %v9867_v51  ;;  %v7742_v21 = vpop.f32.mrf.mxu1  ;;  %5864 = vmatmul.mubr.f32.gmra.mxu1 %v9868_v24  ;;  %v9874_v24 = vand.u32 4294901760, %v9869_v52  ;;  %v9878_v51 = vld [vmem:[#allocation53_spill] sm:$0xff] }
 0x137   :  { %5809 = vmatprep.mubr.f32.mxu0 %v9869_v52  ;;  %5866 = vmatprep.mubr.f32.mxu1 %v9870_v0  ;;  %v7749_v37 = vpop.f32.mrf.mxu0 }
 0x138   :  { %v7751_v48 = vpop.f32.mrf.mxu1 }
 0x139   :  { %v7753_v38 = vpop.f32.mrf.mxu0 }
 0x13a   :  { %5810 = vmatmul.mubr.f32.gmra.mxu0 %v9871_v5  ;;  %v7756_v46 = vpop.f32.mrf.mxu1  ;;  %5867 = vmatmul.mubr.f32.gmra.mxu1 %v9872_v17  ;;  %v9879_v17 = vand.u32 4294901760, %v9873_v25 }
 0x13b   :  { %5812 = vmatprep.mubr.f32.mxu0 %v9873_v25  ;;  %5869 = vmatprep.mubr.f32.mxu1 %v9874_v24  ;;  %v7763_v62 = vpop.f32.mrf.mxu0 }
 0x13c   :  { %v7765_v0 = vpop.f32.mrf.mxu1 }
 0x13d   :  { %v7767_v30 = vpop.f32.mrf.mxu0 }
 0x13e   :  { %9875 = vst [vmem:[#allocation22_spill] sm:$0xff] %v7767_v30  ;;  %5813 = vmatmul.mubr.f32.gmra.mxu0 %v7408_v41  ;;  %v7770_v47 = vpop.f32.mrf.mxu1  ;;  %5870 = vmatmul.mubr.f32.gmra.mxu1 %v9877_v54  ;;  %v9883_v54 = vand.u32 4294901760, %v9878_v51 }
 0x13f   :  { %9876 = vst [vmem:[#allocation15_spill] sm:$0xff] %v7770_v47  ;;  %5815 = vmatprep.mubr.f32.mxu0 %v9878_v51  ;;  %5872 = vmatprep.mubr.f32.mxu1 %v9879_v17  ;;  %v7777_v52 = vpop.f32.mrf.mxu0  ;;  %v9882_v47 = vand.u32 4294901760, %v7408_v41 }
 0x140   :  { %v7779_v24 = vpop.f32.mrf.mxu1 }
 0x141   :  { %v7781_v4 = vpop.f32.mrf.mxu0 }
 0x142   :  { %9880 = vst [vmem:[#allocation17_spill] sm:$0xff] %v7781_v4  ;;  %5816 = vmatmul.mubr.f32.gmra.mxu0 %v7454_v42  ;;  %v7784_v30 = vpop.f32.mrf.mxu1  ;;  %5873 = vmatmul.mubr.f32.gmra.mxu1 %v9882_v47  ;;  %v9889_v47 = vand.u32 4294901760, %v7457_v1 }
 0x143   :  { %9881 = vst [vmem:[#allocation3_spill] sm:$0xff] %v7784_v30  ;;  %5818 = vmatprep.mubr.f32.mxu0 %v7457_v1  ;;  %5875 = vmatprep.mubr.f32.mxu1 %v9883_v54  ;;  %v7791_v5 = vpop.f32.mrf.mxu0  ;;  %v9888_v30 = vand.u32 4294901760, %v7454_v42  ;;  %v9895_v42 = vand.u32 4294901760, %v7491_v15 }
 0x144   :  { %9884 = vst [vmem:[#allocation19_spill] sm:$0xff] %v7791_v5  ;;  %v7793_v25 = vpop.f32.mrf.mxu1 }
 0x145   :  { %9885 = vst [vmem:[#allocation21_spill] sm:$0xff] %v7793_v25  ;;  %v7795_v17 = vpop.f32.mrf.mxu0 }
 0x146   :  { %9886 = vst [vmem:[#allocation33_spill] sm:$0xff] %v7795_v17  ;;  %5819 = vmatmul.mubr.f32.gmra.mxu0 %v7484_v32  ;;  %v7798_v4 = vpop.f32.mrf.mxu1  ;;  %5876 = vmatmul.mubr.f32.gmra.mxu1 %v9888_v30 }
 0x147   :  { %9887 = vst [vmem:[#allocation36_spill] sm:$0xff] %v7798_v4  ;;  %5821 = vmatprep.mubr.f32.mxu0 %v7491_v15  ;;  %5878 = vmatprep.mubr.f32.mxu1 %v9889_v47  ;;  %v7805_v41 = vpop.f32.mrf.mxu0  ;;  %v9894_v4 = vand.u32 4294901760, %v7484_v32  ;;  %v9901_v32 = vld [vmem:[#allocation4_spill] sm:$0xff] }
 0x148   :  { %9890 = vst [vmem:[#allocation38_spill] sm:$0xff] %v7805_v41  ;;  %v7807_v51 = vpop.f32.mrf.mxu1  ;;  %v9906_v41 = vld [vmem:[#allocation5_spill] sm:$0xff] }
 0x149   :  { %9891 = vst [vmem:[#allocation42_spill] sm:$0xff] %v7807_v51  ;;  %v7809_v54 = vpop.f32.mrf.mxu0 }
 0x14a   :  { %9892 = vst [vmem:[#allocation44_spill] sm:$0xff] %v7809_v54  ;;  %5822 = vmatmul.mubr.f32.gmra.mxu0 %v7515_v35  ;;  %v7812_v17 = vpop.f32.mrf.mxu1  ;;  %5879 = vmatmul.mubr.f32.gmra.mxu1 %v9894_v4  ;;  %v9902_v4 = vand.u32 4294901760, %v7518_v10 }
 0x14b   :  { %9893 = vst [vmem:[#allocation45_spill] sm:$0xff] %v7812_v17  ;;  %5824 = vmatprep.mubr.f32.mxu0 %v7518_v10  ;;  %5881 = vmatprep.mubr.f32.mxu1 %v9895_v42  ;;  %v7819_v1 = vpop.f32.mrf.mxu0  ;;  %v9900_v17 = vand.u32 4294901760, %v7515_v35  ;;  %v9908_v35 = vand.u32 4294901760, %v7539_v63 }
 0x14c   :  { %9896 = vst [vmem:[#allocation53_spill] sm:$0xff] %v7819_v1  ;;  %v7821_v30 = vpop.f32.mrf.mxu1  ;;  %v9905_v1 = vld [vmem:[#allocation24_spill] sm:$0xff] }
 0x14d   :  { %9897 = vst [vmem:[#allocation76_spill] sm:$0xff] %v7821_v30  ;;  %v7823_v47 = vpop.f32.mrf.mxu0  ;;  %v923_v30 = vadd.f32 %v7591_v9, %v9905_v1  ;;  %v9911_v9 = vld [vmem:[#allocation28_spill] sm:$0xff] }
 0x14e   :  { %9898 = vst [vmem:[#allocation77_spill] sm:$0xff] %v7823_v47  ;;  %5825 = vmatmul.mubr.f32.gmra.mxu0 %v7539_v63  ;;  %v7826_v54 = vpop.f32.mrf.mxu1  ;;  %5882 = vmatmul.mubr.f32.gmra.mxu1 %v9900_v17  ;;  %v9909_v17 = vld [vmem:[#allocation26_spill] sm:$0xff]  ;;  %v937_v1 = vadd.f32 %v7607_v53, %v9911_v9 }
 0x14f   :  { %9899 = vst [vmem:[#allocation78_spill] sm:$0xff] %v7826_v54  ;;  %5899 = vmatprep.mubr.f32.mxu0 %v9901_v32  ;;  %5884 = vmatprep.mubr.f32.mxu1 %v9902_v4  ;;  %v7833_v15 = vpop.f32.mrf.mxu0  ;;  %v916_v54 = vadd.f32 %v7601_v26, %v9909_v17  ;;  %v1218_v10 = vadd.f32 %v7610_v61, %v923_v30  ;;  %v9910_v4 = vld [vmem:[#allocation6_spill] sm:$0xff]  ;;  %v9913_v26 = vld [vmem:[#allocation7_spill] sm:$0xff] }
 0x150   :  { %9903 = vst [vmem:[#allocation4_spill] sm:$0xff] %v7833_v15  ;;  %v7835_v42 = vpop.f32.mrf.mxu1  ;;  %v9912_v63 = vld [vmem:[#allocation30_spill] sm:$0xff]  ;;  %v7860_v30 = vld [vmem:[%s9474_s6] ss:$0 sm:$0xff] }
 0x151   :  { %9904 = vst [vmem:[#allocation79_spill] sm:$0xff] %v7835_v42  ;;  %v5545_v47 = vpop.f32.mrf.mxu0 }
 0x152   :  { %5900 = vmatmul.mubr.f32.vlgmr.msra.gmra.mxu0 %v9906_v41  ;;  %v7840_v51 = vpop.f32.mrf.mxu1  ;;  %5885 = vmatmul.mubr.f32.gmra.mxu1 %v9908_v35  ;;  %v1547_v5 = vadd.f32 %v5545_v47, %v1218_v10  ;;  %v930_v35 = vadd.f32 %v7616_v39, %v9912_v63  ;;  %v9915_v39 = vld [vmem:[#allocation32_spill] sm:$0xff] }
 0x153   :  { %9907 = vst [vmem:[#allocation24_spill] sm:$0xff] %v7840_v51  ;;  %5902 = vmatprep.mubr.f32.mxu0 %v9910_v4  ;;  %5959 = vmatprep.mubr.f32.mxu1 %v9901_v32  ;;  %v1540_v15 = vpop.f32.mrf.mxu0  ;;  %v1210_v51 = vadd.f32 %v7618_v22, %v916_v54  ;;  %v1234_v32 = vadd.f32 %v7628_v31, %v937_v1  ;;  %v9914_v22 = vld [vmem:[#allocation8_spill] sm:$0xff]  ;;  %v9918_v1 = vld [vmem:[#allocation9_spill] sm:$0xff] }
 0x154   :  { %v7849_v42 = vpop.f32.mrf.mxu1  ;;  %v951_v54 = vadd.f32 %v7625_v50, %v9915_v39  ;;  %v1226_v9 = vadd.f32 %v7637_v16, %v930_v35 }
 0x155   :  { %v5548_v25 = vpop.f32.mrf.mxu0  ;;  %v1541_v53 = vadd.f32 %v1540_v15, %v1210_v51 }
 0x156   :  { %5903 = vmatmul.mubr.f32.gmra.mxu0 %v9913_v26  ;;  %v5601_v61 = vpop.f32.mrf.mxu1  ;;  %5960 = vmatmul.mubr.f32.vlgmr.msra.gmra.mxu1 %v9906_v41  ;;  %v1559_v63 = vadd.f32 %v5548_v25, %v1234_v32  ;;  %v1250_v15 = vadd.f32 %v7646_v44, %v951_v54  ;;  %v9921_v44 = vld [vmem:[#allocation37_spill] sm:$0xff] }
 0x157   :  { %v7864_v17 = vadd.f32 %v5601_v61, %v1547_v5  ;;  %5905 = vmatprep.mubr.f32.mxu0 %v9914_v22  ;;  %5962 = vmatprep.mubr.f32.mxu1 %v9910_v4  ;;  %v1552_v47 = vpop.f32.mrf.mxu0  ;;  %v9917_v5 = vld [vmem:[#allocation35_spill] sm:$0xff]  ;;  %v965_v35 = vadd.f32 %v7643_v13, %v9921_v44 }
 0x158   :  { %v1801_v10 = vpop.f32.mrf.mxu1  ;;  %v944_v51 = vadd.f32 %v7635_v2, %v9917_v5  ;;  %v1553_v61 = vadd.f32 %v1552_v47, %v1226_v9  ;;  %v9920_v2 = vld [vmem:[#allocation10_spill] sm:$0xff] }
 0x159   :  { %v4725_v41 = vmul.f32 %v7860_v30, %v7864_v17  ;;  %v7873_v31 = vadd.f32 %v1801_v10, %v1541_v53  ;;  %v5551_v4 = vpop.f32.mrf.mxu0  ;;  %v9923_v10 = vld [vmem:[#allocation41_spill] sm:$0xff]  ;;  %v1266_v13 = vadd.f32 %v7664_v43, %v965_v35  ;;  %v9927_v43 = vld [vmem:[#allocation43_spill] sm:$0xff] }
 0x15a   :  { %5906 = vmatmul.mubr.f32.gmra.mxu0 %v9918_v1  ;;  %v5604_v50 = vpop.f32.mrf.mxu1  ;;  %5963 = vmatmul.mubr.f32.gmra.mxu1 %v9913_v26  ;;  %v1242_v53 = vadd.f32 %v7655_v11, %v944_v51  ;;  %v1571_v39 = vadd.f32 %v5551_v4, %v1250_v15  ;;  %v979_v15 = vadd.f32 %v7661_v23, %v9927_v43  ;;  %v9929_v35 = vld [vmem:[#allocation47_spill] sm:$0xff] }
 0x15b   :  { %9916 = vst [vmem:[#allocation5_spill] sm:$0xff] %v7873_v31  ;;  %4757 = vst.msk [vmem:[%s9475_s8 + $0x8] sm:$0xff] %vm4073_vm2, %v4725_v41  ;;  %v4724_v16 = vmul.f32 %v7860_v30, %v7873_v31  ;;  %v7886_v25 = vadd.f32 %v5604_v50, %v1559_v63  ;;  %5908 = vmatprep.mubr.f32.mxu0 %v9920_v2  ;;  %5965 = vmatprep.mubr.f32.mxu1 %v9914_v22  ;;  %v1564_v32 = vpop.f32.mrf.mxu0  ;;  %v9924_v63 = vld [vmem:[#allocation11_spill] sm:$0xff] }
 0x15c   :  { %v1813_v26 = vpop.f32.mrf.mxu1  ;;  %v958_v22 = vadd.f32 %v7653_v40, %v9923_v10  ;;  %v1565_v41 = vadd.f32 %v1564_v32, %v1242_v53  ;;  %v9926_v40 = vld [vmem:[#allocation12_spill] sm:$0xff]  ;;  %v1282_v23 = vadd.f32 %v7682_v27, %v979_v15  ;;  %v9933_v27 = vld [vmem:[#allocation49_spill] sm:$0xff] }
 0x15d   :  { %9919 = vst [vmem:[#allocation26_spill] sm:$0xff] %v7886_v25  ;;  %4756 = vst.msk [vmem:[%s9475_s8] sm:$0xff] %vm4073_vm2, %v4724_v16  ;;  %v4727_v54 = vmul.f32 %v7860_v30, %v7886_v25  ;;  %v7899_v47 = vadd.f32 %v1813_v26, %v1553_v61  ;;  %v5554_v9 = vpop.f32.mrf.mxu0  ;;  %v9930_v26 = vld [vmem:[#allocation13_spill] sm:$0xff]  ;;  %v993_v10 = vadd.f32 %v7679_v34, %v9933_v27  ;;  %v9936_v15 = vld [vmem:[#allocation16_spill] sm:$0xff] }
 0x15e   :  { %5909 = vmatmul.mubr.f32.gmra.mxu0 %v9924_v63  ;;  %v5607_v11 = vpop.f32.mrf.mxu1  ;;  %5966 = vmatmul.mubr.f32.gmra.mxu1 %v9918_v1  ;;  %v1258_v50 = vadd.f32 %v7673_v3, %v958_v22  ;;  %v1583_v61 = vadd.f32 %v5554_v9, %v1266_v13 }
 0x15f   :  { %9922 = vst [vmem:[#allocation6_spill] sm:$0xff] %v7899_v47  ;;  %4759 = vst.msk [vmem:[%s9475_s8 + $0x18] sm:$0xff] %vm4073_vm2, %v4727_v54  ;;  %v4726_v5 = vmul.f32 %v7860_v30, %v7899_v47  ;;  %v7912_v51 = vadd.f32 %v5607_v11, %v1571_v39  ;;  %5911 = vmatprep.mubr.f32.mxu0 %v9926_v40  ;;  %5968 = vmatprep.mubr.f32.mxu1 %v9920_v2  ;;  %v1576_v4 = vpop.f32.mrf.mxu0 }
 0x160   :  { %v1825_v1 = vpop.f32.mrf.mxu1  ;;  %v972_v2 = vadd.f32 %v7671_v45, %v9929_v35  ;;  %v1577_v53 = vadd.f32 %v1576_v4, %v1258_v50  ;;  %v9932_v45 = vld [vmem:[#allocation14_spill] sm:$0xff]  ;;  %v1298_v34 = vadd.f32 %v7699_v57, %v993_v10 }
 0x161   :  { %9925 = vst [vmem:[#allocation28_spill] sm:$0xff] %v7912_v51  ;;  %4758 = vst.msk [vmem:[%s9475_s8 + $0x10] sm:$0xff] %vm4073_vm2, %v4726_v5  ;;  %v4729_v16 = vmul.f32 %v7860_v30, %v7912_v51  ;;  %v7925_v44 = vadd.f32 %v1825_v1, %v1565_v41  ;;  %v5557_v32 = vpop.f32.mrf.mxu0  ;;  %v9935_v5 = vld [vmem:[#allocation50_spill] sm:$0xff] }
 0x162   :  { %5912 = vmatmul.mubr.f32.gmra.mxu0 %v9930_v26  ;;  %v5610_v3 = vpop.f32.mrf.mxu1  ;;  %5969 = vmatmul.mubr.f32.gmra.mxu1 %v9924_v63  ;;  %v1274_v9 = vadd.f32 %v7691_v58, %v972_v2  ;;  %v1595_v63 = vadd.f32 %v5557_v32, %v1282_v23  ;;  %v9939_v57 = vld [vmem:[#allocation54_spill] sm:$0xff] }
 0x163   :  { %9928 = vst [vmem:[#allocation30_spill] sm:$0xff] %v7925_v44  ;;  %4761 = vst.msk [vmem:[%s9475_s8 + $0x28] sm:$0xff] %vm4073_vm2, %v4729_v16  ;;  %v4728_v39 = vmul.f32 %v7860_v30, %v7925_v44  ;;  %v7938_v54 = vadd.f32 %v5610_v3, %v1583_v61  ;;  %5914 = vmatprep.mubr.f32.mxu0 %v9932_v45  ;;  %5971 = vmatprep.mubr.f32.mxu1 %v9926_v40  ;;  %v1588_v22 = vpop.f32.mrf.mxu0  ;;  %v9941_v3 = vld [vmem:[#allocation55_spill] sm:$0xff] }
 0x164   :  { %v1837_v13 = vpop.f32.mrf.mxu1  ;;  %v986_v40 = vadd.f32 %v7689_v59, %v9935_v5  ;;  %v1589_v4 = vadd.f32 %v1588_v22, %v1274_v9  ;;  %v9938_v59 = vld [vmem:[#allocation18_spill] sm:$0xff]  ;;  %v1007_v61 = vadd.f32 %v7696_v29, %v9939_v57 }
 0x165   :  { %9931 = vst [vmem:[#allocation7_spill] sm:$0xff] %v7938_v54  ;;  %4760 = vst.msk [vmem:[%s9475_s8 + $0x20] sm:$0xff] %vm4073_vm2, %v4728_v39  ;;  %v4731_v11 = vmul.f32 %v7860_v30, %v7938_v54  ;;  %v7951_v41 = vadd.f32 %v1837_v13, %v1577_v53  ;;  %v5560_v43 = vpop.f32.mrf.mxu0  ;;  %v1000_v53 = vadd.f32 %v7706_v33, %v9941_v3  ;;  %v9944_v33 = vld [vmem:[#allocation23_spill] sm:$0xff] }
 0x166   :  { %5915 = vmatmul.mubr.f32.gmra.mxu0 %v9936_v15  ;;  %v5613_v58 = vpop.f32.mrf.mxu1  ;;  %5972 = vmatmul.mubr.f32.gmra.mxu1 %v9930_v26  ;;  %v1290_v2 = vadd.f32 %v7708_v49, %v986_v40  ;;  %v1607_v23 = vadd.f32 %v5560_v43, %v1298_v34  ;;  %v1314_v29 = vadd.f32 %v7714_v12, %v1007_v61  ;;  %v9945_v12 = vld [vmem:[#allocation58_spill] sm:$0xff]  ;;  %v9947_v43 = vld [vmem:[#allocation59_spill] sm:$0xff] }
 0x167   :  { %9934 = vst [vmem:[#allocation8_spill] sm:$0xff] %v7951_v41  ;;  %4763 = vst.msk [vmem:[%s9475_s8 + $0x38] sm:$0xff] %vm4073_vm2, %v4731_v11  ;;  %v4730_v1 = vmul.f32 %v7860_v30, %v7951_v41  ;;  %v7964_v50 = vadd.f32 %v5613_v58, %v1595_v63  ;;  %5917 = vmatprep.mubr.f32.mxu0 %v9938_v59  ;;  %5974 = vmatprep.mubr.f32.mxu1 %v9932_v45  ;;  %v1600_v16 = vpop.f32.mrf.mxu0  ;;  %v9942_v45 = vld [vmem:[#allocation20_spill] sm:$0xff] }
 0x168   :  { %v1849_v35 = vpop.f32.mrf.mxu1  ;;  %v1601_v27 = vadd.f32 %v1600_v16, %v1290_v2  ;;  %v1021_v13 = vadd.f32 %v7711_v28, %v9945_v12  ;;  %v1306_v11 = vadd.f32 %v7723_v20, %v1000_v53  ;;  %v9953_v53 = vld [vmem:[#allocation63_spill] sm:$0xff] }
 0x169   :  { %9937 = vst [vmem:[#allocation32_spill] sm:$0xff] %v7964_v50  ;;  %4762 = vst.msk [vmem:[%s9475_s8 + $0x30] sm:$0xff] %vm4073_vm2, %v4730_v1  ;;  %v4733_v32 = vmul.f32 %v7860_v30, %v7964_v50  ;;  %v7977_v26 = vadd.f32 %v1849_v35, %v1589_v4  ;;  %v5563_v39 = vpop.f32.mrf.mxu0  ;;  %v9948_v4 = vld [vmem:[#allocation25_spill] sm:$0xff] }
 0x16a   :  { %5918 = vmatmul.mubr.f32.gmra.mxu0 %v9942_v45  ;;  %v5616_v49 = vpop.f32.mrf.mxu1  ;;  %5975 = vmatmul.mubr.f32.gmra.mxu1 %v9936_v15  ;;  %v1619_v5 = vadd.f32 %v5563_v39, %v1314_v29  ;;  %v1014_v15 = vadd.f32 %v7721_v55, %v9947_v43  ;;  %v1330_v28 = vadd.f32 %v7728_v6, %v1021_v13  ;;  %v9950_v55 = vld [vmem:[#allocation27_spill] sm:$0xff]  ;;  %v9951_v6 = vld [vmem:[#allocation62_spill] sm:$0xff] }
 0x16b   :  { %9940 = vst [vmem:[#allocation35_spill] sm:$0xff] %v7977_v26  ;;  %4765 = vst.msk [vmem:[%s9475_s8 + $0x48] sm:$0xff] %vm4073_vm2, %v4733_v32  ;;  %v4732_v10 = vmul.f32 %v7860_v30, %v7977_v26  ;;  %v7990_v22 = vadd.f32 %v5616_v49, %v1607_v23  ;;  %5920 = vmatprep.mubr.f32.mxu0 %v9944_v33  ;;  %5977 = vmatprep.mubr.f32.mxu1 %v9938_v59  ;;  %v1612_v9 = vpop.f32.mrf.mxu0 }
 0x16c   :  { %v1861_v63 = vpop.f32.mrf.mxu1  ;;  %v1613_v1 = vadd.f32 %v1612_v9, %v1306_v11  ;;  %v1035_v61 = vadd.f32 %v7725_v36, %v9951_v6  ;;  %v1322_v2 = vadd.f32 %v7737_v14, %v1014_v15  ;;  %v1028_v29 = vadd.f32 %v7735_v60, %v9953_v53  ;;  %v9956_v60 = vld [vmem:[#allocation31_spill] sm:$0xff] }
 0x16d   :  { %9943 = vst [vmem:[#allocation9_spill] sm:$0xff] %v7990_v22  ;;  %4764 = vst.msk [vmem:[%s9475_s8 + $0x40] sm:$0xff] %vm4073_vm2, %v4732_v10  ;;  %v4735_v40 = vmul.f32 %v7860_v30, %v7990_v22  ;;  %v8003_v34 = vadd.f32 %v1861_v63, %v1601_v27  ;;  %v5566_v58 = vpop.f32.mrf.mxu0  ;;  %v9962_v6 = vld [vmem:[#allocation15_spill] sm:$0xff] }
 0x16e   :  { %5921 = vmatmul.mubr.f32.gmra.mxu0 %v9948_v4  ;;  %v5619_v20 = vpop.f32.mrf.mxu1  ;;  %5978 = vmatmul.mubr.f32.gmra.mxu1 %v9942_v45  ;;  %v1631_v23 = vadd.f32 %v5566_v58, %v1330_v28  ;;  %v1346_v36 = vadd.f32 %v7742_v21, %v1035_v61  ;;  %v9954_v45 = vld [vmem:[#allocation29_spill] sm:$0xff]  ;;  %v1049_v21 = vadd.f32 %v7739_v7, %v7524_v56  ;;  %v9963_v61 = vld [vmem:[#allocation39_spill] sm:$0xff] }
 0x16f   :  { %9946 = vst [vmem:[#allocation10_spill] sm:$0xff] %v8003_v34  ;;  %4767 = vst.msk [vmem:[%s9475_s8 + $0x58] sm:$0xff] %vm4073_vm2, %v4735_v40  ;;  %v4734_v59 = vmul.f32 %v7860_v30, %v8003_v34  ;;  %v8016_v57 = vadd.f32 %v5619_v20, %v1619_v5  ;;  %5923 = vmatprep.mubr.f32.mxu0 %v9950_v55  ;;  %5980 = vmatprep.mubr.f32.mxu1 %v9944_v33  ;;  %v1624_v16 = vpop.f32.mrf.mxu0  ;;  %v9958_v40 = vld [vmem:[#allocation34_spill] sm:$0xff] }
 0x170   :  { %v1873_v35 = vpop.f32.mrf.mxu1  ;;  %v1625_v49 = vadd.f32 %v1624_v16, %v1322_v2  ;;  %v1338_v13 = vadd.f32 %v7751_v48, %v1028_v29  ;;  %v1042_v5 = vadd.f32 %v7749_v37, %v7527_v8  ;;  %v1362_v56 = vadd.f32 %v7756_v46, %v1049_v21 }
 0x171   :  { %9949 = vst [vmem:[#allocation37_spill] sm:$0xff] %v8016_v57  ;;  %4766 = vst.msk [vmem:[%s9475_s8 + $0x50] sm:$0xff] %vm4073_vm2, %v4734_v59  ;;  %v4737_v32 = vmul.f32 %v7860_v30, %v8016_v57  ;;  %v8029_v3 = vadd.f32 %v1873_v35, %v1613_v1  ;;  %v5569_v39 = vpop.f32.mrf.mxu0  ;;  %v1063_v46 = vadd.f32 %v7753_v38, %v7543_v19  ;;  %v9961_v59 = vld [vmem:[#allocation65_spill] sm:$0xff] }
 0x172   :  { %5924 = vmatmul.mubr.f32.gmra.mxu0 %v9954_v45  ;;  %v5622_v14 = vpop.f32.mrf.mxu1  ;;  %5981 = vmatmul.mubr.f32.gmra.mxu1 %v9948_v4  ;;  %v1643_v9 = vadd.f32 %v5569_v39, %v1346_v36  ;;  %v1354_v58 = vadd.f32 %v7765_v0, %v1042_v5  ;;  %v9974_v5 = vld [vmem:[#allocation68_spill] sm:$0xff] }
 0x173   :  { %9952 = vst [vmem:[#allocation41_spill] sm:$0xff] %v8029_v3  ;;  %4769 = vst.msk [vmem:[%s9475_s8 + $0x68] sm:$0xff] %vm4073_vm2, %v4737_v32  ;;  %v4736_v27 = vmul.f32 %v7860_v30, %v8029_v3  ;;  %v8042_v10 = vadd.f32 %v5622_v14, %v1631_v23  ;;  %5926 = vmatprep.mubr.f32.mxu0 %v9956_v60  ;;  %5983 = vmatprep.mubr.f32.mxu1 %v9950_v55  ;;  %v1636_v33 = vpop.f32.mrf.mxu0  ;;  %v9966_v23 = vld [vmem:[#allocation66_spill] sm:$0xff] }
 0x174   :  { %v1885_v12 = vpop.f32.mrf.mxu1  ;;  %v1637_v43 = vadd.f32 %v1636_v33, %v1338_v13  ;;  %v1056_v55 = vadd.f32 %v7763_v62, %v9961_v59  ;;  %v1378_v19 = vadd.f32 %v9962_v6, %v1063_v46  ;;  %v9965_v62 = vld [vmem:[#allocation40_spill] sm:$0xff]  ;;  %v9967_v32 = vld [vmem:[#allocation22_spill] sm:$0xff] }
 0x175   :  { %9955 = vst [vmem:[#allocation11_spill] sm:$0xff] %v8042_v10  ;;  %4768 = vst.msk [vmem:[%s9475_s8 + $0x60] sm:$0xff] %vm4073_vm2, %v4736_v27  ;;  %v4739_v63 = vmul.f32 %v7860_v30, %v8042_v10  ;;  %v8055_v11 = vadd.f32 %v1885_v12, %v1625_v49  ;;  %v5572_v7 = vpop.f32.mrf.mxu0  ;;  %v1077_v53 = vadd.f32 %v9967_v32, %v9966_v23  ;;  %v9969_v27 = vld [vmem:[#allocation67_spill] sm:$0xff]  ;;  %v9971_v12 = vld [vmem:[#allocation46_spill] sm:$0xff] }
 0x176   :  { %5927 = vmatmul.mubr.f32.gmra.mxu0 %v9958_v40  ;;  %v5625_v48 = vpop.f32.mrf.mxu1  ;;  %5984 = vmatmul.mubr.f32.gmra.mxu1 %v9954_v45  ;;  %v1655_v4 = vadd.f32 %v5572_v7, %v1362_v56  ;;  %v1370_v39 = vadd.f32 %v7779_v24, %v1056_v55  ;;  %v9975_v56 = vld [vmem:[#allocation17_spill] sm:$0xff]  ;;  %v9980_v59 = vld [vmem:[#allocation36_spill] sm:$0xff] }
 0x177   :  { %9957 = vst [vmem:[#allocation12_spill] sm:$0xff] %v8055_v11  ;;  %4771 = vst.msk [vmem:[%s9475_s8 + $0x78] sm:$0xff] %vm4073_vm2, %v4739_v63  ;;  %v4738_v15 = vmul.f32 %v7860_v30, %v8055_v11  ;;  %v8068_v28 = vadd.f32 %v5625_v48, %v1643_v9  ;;  %5929 = vmatprep.mubr.f32.mxu0 %v7306_v18  ;;  %5986 = vmatprep.mubr.f32.mxu1 %v9956_v60  ;;  %v1648_v8 = vpop.f32.mrf.mxu0  ;;  %v9970_v60 = vld [vmem:[#allocation3_spill] sm:$0xff]  ;;  %v9985_v23 = vld [vmem:[#allocation33_spill] sm:$0xff] }
 0x178   :  { %v1897_v37 = vpop.f32.mrf.mxu1  ;;  %v1649_v16 = vadd.f32 %v1648_v8, %v1354_v58  ;;  %v1394_v21 = vadd.f32 %v9970_v60, %v1077_v53  ;;  %v1091_v7 = vadd.f32 %v9975_v56, %v9974_v5  ;;  %v9978_v58 = vld [vmem:[#allocation69_spill] sm:$0xff]  ;;  %v9989_v60 = vld [vmem:[#allocation38_spill] sm:$0xff] }
 0x179   :  { %9959 = vst [vmem:[#allocation43_spill] sm:$0xff] %v8068_v28  ;;  %4770 = vst.msk [vmem:[%s9475_s8 + $0x70] sm:$0xff] %vm4073_vm2, %v4738_v15  ;;  %v4741_v20 = vmul.f32 %v7860_v30, %v8068_v28  ;;  %v8081_v1 = vadd.f32 %v1897_v37, %v1637_v43  ;;  %v5575_v38 = vpop.f32.mrf.mxu0  ;;  %v9976_v43 = vld [vmem:[#allocation21_spill] sm:$0xff] }
 0x17a   :  { %5930 = vmatmul.mubr.f32.gmra.mxu0 %v9963_v61  ;;  %v5628_v0 = vpop.f32.mrf.mxu1  ;;  %5987 = vmatmul.mubr.f32.gmra.mxu1 %v9958_v40  ;;  %v1667_v45 = vadd.f32 %v5575_v38, %v1378_v19  ;;  %v1410_v55 = vadd.f32 %v9980_v59, %v1091_v7  ;;  %v9981_v19 = vld [vmem:[#allocation51_spill] sm:$0xff]  ;;  %v9993_v7 = vld [vmem:[#allocation57_spill] sm:$0xff] }
 0x17b   :  { %9960 = vst [vmem:[#allocation47_spill] sm:$0xff] %v8081_v1  ;;  %4773 = vst.msk [vmem:[%s9475_s8 + $0x88] sm:$0xff] %vm4073_vm2, %v4741_v20  ;;  %v4740_v35 = vmul.f32 %v7860_v30, %v8081_v1  ;;  %v8094_v2 = vadd.f32 %v5628_v0, %v1655_v4  ;;  %5932 = vmatprep.mubr.f32.mxu0 %v9965_v62  ;;  %5989 = vmatprep.mubr.f32.mxu1 %v7306_v18  ;;  %v1660_v29 = vpop.f32.mrf.mxu0  ;;  %v9979_v4 = vld [vmem:[#allocation19_spill] sm:$0xff] }
 0x17c   :  { %v1909_v36 = vpop.f32.mrf.mxu1  ;;  %v1070_v18 = vadd.f32 %v7777_v52, %v9969_v27  ;;  %v1661_v13 = vadd.f32 %v1660_v29, %v1370_v39  ;;  %v9973_v52 = vld [vmem:[#allocation48_spill] sm:$0xff]  ;;  %v1084_v20 = vadd.f32 %v9979_v4, %v9978_v58 }
 0x17d   :  { %9964 = vst [vmem:[#allocation13_spill] sm:$0xff] %v8094_v2  ;;  %4772 = vst.msk [vmem:[%s9475_s8 + $0x80] sm:$0xff] %vm4073_vm2, %v4740_v35  ;;  %v4743_v14 = vmul.f32 %v7860_v30, %v8094_v2  ;;  %v8107_v49 = vadd.f32 %v1909_v36, %v1649_v16  ;;  %v5578_v33 = vpop.f32.mrf.mxu0  ;;  %v9983_v35 = vld [vmem:[#allocation52_spill] sm:$0xff]  ;;  %v9986_v36 = vld [vmem:[#allocation42_spill] sm:$0xff] }
 0x17e   :  { %5933 = vmatmul.mubr.f32.gmra.mxu0 %v9971_v12  ;;  %v5631_v24 = vpop.f32.mrf.mxu1  ;;  %5990 = vmatmul.mubr.f32.gmra.mxu1 %v9963_v61  ;;  %v1386_v15 = vadd.f32 %v9976_v43, %v1070_v18  ;;  %v1679_v46 = vadd.f32 %v5578_v33, %v1394_v21  ;;  %v1402_v39 = vadd.f32 %v9986_v36, %v1084_v20  ;;  %v9988_v18 = vld [vmem:[#allocation71_spill] sm:$0xff]  ;;  %v9990_v33 = vld [vmem:[#allocation45_spill] sm:$0xff]  ;;  %v10004_v36 = vld [vmem:[#allocation74_spill] sm:$0xff] }
 0x17f   :  { %9968 = vst [vmem:[#allocation14_spill] sm:$0xff] %v8107_v49  ;;  %4775 = vst.msk [vmem:[%s9475_s8 + $0x98] sm:$0xff] %vm4073_vm2, %v4743_v14  ;;  %v4742_v9 = vmul.f32 %v7860_v30, %v8107_v49  ;;  %v8120_v63 = vadd.f32 %v5631_v24, %v1667_v45  ;;  %5935 = vmatprep.mubr.f32.mxu0 %v9973_v52  ;;  %5992 = vmatprep.mubr.f32.mxu1 %v9965_v62  ;;  %v1672_v40 = vpop.f32.mrf.mxu0  ;;  %v9984_v62 = vld [vmem:[#allocation70_spill] sm:$0xff] }
 0x180   :  { %v1921_v48 = vpop.f32.mrf.mxu1  ;;  %v1673_v61 = vadd.f32 %v1672_v40, %v1386_v15  ;;  %v1105_v32 = vadd.f32 %v9985_v23, %v9984_v62  ;;  %v1098_v21 = vadd.f32 %v9989_v60, %v9988_v18  ;;  %v9994_v40 = vld [vmem:[#allocation72_spill] sm:$0xff]  ;;  %v10006_v60 = vld [vmem:[#allocation79_spill] sm:$0xff] }
 0x181   :  { %9972 = vst [vmem:[#allocation49_spill] sm:$0xff] %v8120_v63  ;;  %4774 = vst.msk [vmem:[%s9475_s8 + $0x90] sm:$0xff] %vm4073_vm2, %v4742_v9  ;;  %v4745_v8 = vmul.f32 %v7860_v30, %v8120_v63  ;;  %v8133_v37 = vadd.f32 %v1921_v48, %v1661_v13  ;;  %v5581_v6 = vpop.f32.mrf.mxu0  ;;  %v9991_v13 = vld [vmem:[#allocation56_spill] sm:$0xff] }
 0x182   :  { %5936 = vmatmul.mubr.f32.gmra.mxu0 %v9981_v19  ;;  %v5634_v38 = vpop.f32.mrf.mxu1  ;;  %5993 = vmatmul.mubr.f32.gmra.mxu1 %v9971_v12  ;;  %v1691_v45 = vadd.f32 %v5581_v6, %v1410_v55  ;;  %v1426_v12 = vadd.f32 %v9990_v33, %v1105_v32  ;;  %v9995_v48 = vld [vmem:[#allocation44_spill] sm:$0xff]  ;;  %v9998_v55 = vld [vmem:[#allocation73_spill] sm:$0xff] }
 0x183   :  { %9977 = vst [vmem:[#allocation50_spill] sm:$0xff] %v8133_v37  ;;  %4777 = vst.msk [vmem:[%s9475_s8 + $0xa8] sm:$0xff] %vm4073_vm2, %v4745_v8  ;;  %v4744_v0 = vmul.f32 %v7860_v30, %v8133_v37  ;;  %v8146_v16 = vadd.f32 %v5634_v38, %v1679_v46  ;;  %5938 = vmatprep.mubr.f32.mxu0 %v9983_v35  ;;  %5995 = vmatprep.mubr.f32.mxu1 %v9973_v52  ;;  %v1684_v53 = vpop.f32.mrf.mxu0  ;;  %v9996_v8 = vld [vmem:[#allocation76_spill] sm:$0xff]  ;;  %v9999_v6 = vld [vmem:[#allocation53_spill] sm:$0xff] }
 0x184   :  { %v1933_v29 = vpop.f32.mrf.mxu1  ;;  %v1685_v52 = vadd.f32 %v1684_v53, %v1402_v39  ;;  %v1119_v43 = vadd.f32 %v9995_v48, %v9994_v40  ;;  %v1418_v58 = vadd.f32 %v9996_v8, %v1098_v21  ;;  %v10000_v38 = vld [vmem:[#allocation78_spill] sm:$0xff]  ;;  %v10005_v39 = vld [vmem:[#allocation77_spill] sm:$0xff]  ;;  %v10011_v48 = vld [vmem:[#allocation24_spill] sm:$0xff] }
 0x185   :  { %9982 = vst [vmem:[#allocation16_spill] sm:$0xff] %v8146_v16  ;;  %4776 = vst.msk [vmem:[%s9475_s8 + $0xa0] sm:$0xff] %vm4073_vm2, %v4744_v0  ;;  %v4747_v14 = vmul.f32 %v7860_v30, %v8146_v16  ;;  %v8159_v27 = vadd.f32 %v1933_v29, %v1673_v61  ;;  %v5584_v24 = vpop.f32.mrf.mxu0  ;;  %v10003_v29 = vld [vmem:[#allocation61_spill] sm:$0xff] }
 0x186   :  { %5939 = vmatmul.mubr.f32.gmra.mxu0 %v9991_v13  ;;  %v5637_v9 = vpop.f32.mrf.mxu1  ;;  %5996 = vmatmul.mubr.f32.gmra.mxu1 %v9981_v19  ;;  %v1703_v4 = vadd.f32 %v5584_v24, %v1426_v12  ;;  %v1112_v19 = vadd.f32 %v9999_v6, %v9998_v55  ;;  %v1442_v61 = vadd.f32 %v10000_v38, %v1119_v43 }
 0x187   :  { %9987 = vst [vmem:[#allocation18_spill] sm:$0xff] %v8159_v27  ;;  %4779 = vst.msk [vmem:[%s9475_s8 + $0xb8] sm:$0xff] %vm4073_vm2, %v4747_v14  ;;  %v4746_v5 = vmul.f32 %v7860_v30, %v8159_v27  ;;  %v8172_v56 = vadd.f32 %v5637_v9, %v1691_v45  ;;  %5941 = vmatprep.mubr.f32.mxu0 %v9993_v7  ;;  %5998 = vmatprep.mubr.f32.mxu1 %v9983_v35  ;;  %v1696_v15 = vpop.f32.mrf.mxu0  ;;  %v10001_v35 = vld [vmem:[#allocation60_spill] sm:$0xff] }
 0x188   :  { %v1945_v46 = vpop.f32.mrf.mxu1  ;;  %v1697_v23 = vadd.f32 %v1696_v15, %v1418_v58  ;;  %v1133_v45 = vadd.f32 %v10005_v39, %v10004_v36  ;;  %v1434_v21 = vadd.f32 %v10006_v60, %v1112_v19  ;;  %v10009_v9 = vld [vmem:[#allocation4_spill] sm:$0xff] }
 0x189   :  { %9992 = vst [vmem:[#allocation54_spill] sm:$0xff] %v8172_v56  ;;  %4778 = vst.msk [vmem:[%s9475_s8 + $0xb0] sm:$0xff] %vm4073_vm2, %v4746_v5  ;;  %v4749_v20 = vmul.f32 %v7860_v30, %v8172_v56  ;;  %v8185_v59 = vadd.f32 %v1945_v46, %v1685_v52  ;;  %v5587_v0 = vpop.f32.mrf.mxu0 }
 0x18a   :  { %5942 = vmatmul.mubr.f32.gmra.mxu0 %v10001_v35  ;;  %v5640_v62 = vpop.f32.mrf.mxu1  ;;  %5999 = vmatmul.mubr.f32.gmra.mxu1 %v9991_v13  ;;  %v1715_v33 = vadd.f32 %v5587_v0, %v1442_v61  ;;  %v10008_v13 = vld [vmem:[#allocation75_spill] sm:$0xff]  ;;  %v1458_v43 = vadd.f32 %v10011_v48, %v1133_v45 }
 0x18b   :  { %9997 = vst [vmem:[#allocation55_spill] sm:$0xff] %v8185_v59  ;;  %4781 = vst.msk [vmem:[%s9475_s8 + $0xc8] sm:$0xff] %vm4073_vm2, %v4749_v20  ;;  %v4748_v32 = vmul.f32 %v7860_v30, %v8185_v59  ;;  %v8198_v53 = vadd.f32 %v5640_v62, %v1703_v4  ;;  %5944 = vmatprep.mubr.f32.mxu0 %v10003_v29  ;;  %6001 = vmatprep.mubr.f32.mxu1 %v9993_v7  ;;  %v1708_v14 = vpop.f32.mrf.mxu0  ;;  %v10010_v7 = vld [vmem:[#allocation64_spill] sm:$0xff] }
 0x18c   :  { %v1957_v18 = vpop.f32.mrf.mxu1  ;;  %v1126_v52 = vadd.f32 %v10009_v9, %v10008_v13  ;;  %v1709_v15 = vadd.f32 %v1708_v14, %v1434_v21 }
 0x18d   :  { %10002 = vst [vmem:[#allocation20_spill] sm:$0xff] %v8198_v53  ;;  %4780 = vst.msk [vmem:[%s9475_s8 + $0xc0] sm:$0xff] %vm4073_vm2, %v4748_v32  ;;  %v4751_v12 = vmul.f32 %v7860_v30, %v8198_v53  ;;  %v8211_v24 = vadd.f32 %v1957_v18, %v1697_v23  ;;  %v5590_v5 = vpop.f32.mrf.mxu0 }
 0x18e   :  { %5945 = vmatmul.mubr.f32.gmra.mxu0 %v10010_v7  ;;  %v5643_v40 = vpop.f32.mrf.mxu1  ;;  %6002 = vmatmul.mubr.f32.gmra.mxu1 %v10001_v35  ;;  %v1450_v20 = vadd.f32 %v7849_v42, %v1126_v52  ;;  %v1727_v55 = vadd.f32 %v5590_v5, %v1458_v43 }
 0x18f   :  { %10007 = vst [vmem:[#allocation23_spill] sm:$0xff] %v8211_v24  ;;  %4783 = vst.msk [vmem:[%s9475_s8 + $0xd8] sm:$0xff] %vm4073_vm2, %v4751_v12  ;;  %v4750_v46 = vmul.f32 %v7860_v30, %v8211_v24  ;;  %v8224_v8 = vadd.f32 %v5643_v40, %v1715_v33  ;;  %6004 = vmatprep.mubr.f32.mxu1 %v10003_v29  ;;  %v1720_v58 = vpop.f32.mrf.mxu0 }
 0x190   :  { %v1969_v4 = vpop.f32.mrf.mxu1  ;;  %v1721_v0 = vadd.f32 %v1720_v58, %v1450_v20 }
 0x191   :  { %10012 = vst [vmem:[#allocation58_spill] sm:$0xff] %v8224_v8  ;;  %4782 = vst.msk [vmem:[%s9475_s8 + $0xd0] sm:$0xff] %vm4073_vm2, %v4750_v46  ;;  %v4753_v6 = vmul.f32 %v7860_v30, %v8224_v8  ;;  %v8234_v19 = vadd.f32 %v1969_v4, %v1709_v15  ;;  %v5661_v38 = vpop.f32.mrf.mxu0 }
 0x192   :  { %v5646_v61 = vpop.f32.mrf.mxu1  ;;  %6005 = vmatmul.mubr.f32.gmra.mxu1 %v10010_v7 }
 0x193   :  { %10013 = vst [vmem:[#allocation59_spill] sm:$0xff] %v8234_v19  ;;  %4785 = vst.msk [vmem:[%s9475_s8 + $0xe8] sm:$0xff] %vm4073_vm2, %v4753_v6  ;;  %v4752_v42 = vmul.f32 %v7860_v30, %v8234_v19  ;;  %v8243_v35 = vadd.f32 %v5646_v61, %v1727_v55  ;;  %v2203_v62 = vpop.f32.mrf.mxu0 }
 0x194   :  { %v1981_v23 = vpop.f32.mrf.mxu1 }
 0x195   :  { %10014 = vst [vmem:[#allocation25_spill] sm:$0xff] %v8243_v35  ;;  %4784 = vst.msk [vmem:[%s9475_s8 + $0xe0] sm:$0xff] %vm4073_vm2, %v4752_v42  ;;  %v4755_v32 = vmul.f32 %v7860_v30, %v8243_v35  ;;  %v8251_v29 = vadd.f32 %v1981_v23, %v1721_v0  ;;  %v5664_v36 = vpop.f32.mrf.mxu0 }
 0x196   :  { %v5721_v39 = vpop.f32.mrf.mxu1 }
 0x197   :  { %10015 = vst [vmem:[#allocation27_spill] sm:$0xff] %v8251_v29  ;;  %4787 = vst.msk [vmem:[%s9475_s8 + $0xf8] sm:$0xff] %vm4073_vm2, %v4755_v32  ;;  %v4754_v45 = vmul.f32 %v7860_v30, %v8251_v29  ;;  %v8259_v14 = vadd.f32 %v5721_v39, %v5661_v38  ;;  %v2223_v18 = vpop.f32.mrf.mxu0 }
 0x198   :  { %v2614_v60 = vpop.f32.mrf.mxu1 }
 0x199   :  { %4786 = vst.msk [vmem:[%s9475_s8 + $0xf0] sm:$0xff] %vm4073_vm2, %v4754_v45  ;;  %v8265_v21 = vadd.f32 %v2614_v60, %v2203_v62  ;;  %v5667_v33 = vpop.f32.mrf.mxu0 }
 0x19a   :  { %v5724_v12 = vpop.f32.mrf.mxu1 }
 0x19b   :  { %v8267_v13 = vadd.f32 %v5724_v12, %v5664_v36  ;;  %v2243_v9 = vpop.f32.mrf.mxu0 }
 0x19c   :  { %v2626_v52 = vpop.f32.mrf.mxu1 }
 0x19d   :  { %v8269_v5 = vadd.f32 %v2626_v52, %v2223_v18  ;;  %v5670_v7 = vpop.f32.mrf.mxu0 }
 0x19e   :  { %v5727_v40 = vpop.f32.mrf.mxu1 }
 0x19f   :  { %v8271_v48 = vadd.f32 %v5727_v40, %v5667_v33  ;;  %v2263_v43 = vpop.f32.mrf.mxu0 }
 0x1a0   :  { %v2638_v15 = vpop.f32.mrf.mxu1 }
 0x1a1   :  { %v8273_v46 = vadd.f32 %v2638_v15, %v2243_v9  ;;  %v5673_v58 = vpop.f32.mrf.mxu0 }
 0x1a2   :  { %v5730_v4 = vpop.f32.mrf.mxu1 }
 0x1a3   :  { %v8275_v20 = vadd.f32 %v5730_v4, %v5670_v7  ;;  %v2283_v55 = vpop.f32.mrf.mxu0 }
 0x1a4   :  { %v2650_v6 = vpop.f32.mrf.mxu1 }
 0x1a5   :  { %v8277_v38 = vadd.f32 %v2650_v6, %v2263_v43 }
 0x1a6   :  { %v5676_v61 = vpop.f32.mrf.mxu0  ;;  %v5733_v0 = vpop.f32.mrf.mxu1 }
 0x1a7   :  { %v8279_v42 = vadd.f32 %v5733_v0, %v5673_v58 }
 0x1a8   :  { %v2303_v62 = vpop.f32.mrf.mxu0  ;;  %v2662_v23 = vpop.f32.mrf.mxu1 }
 0x1a9   :  { %v8281_v32 = vadd.f32 %v2662_v23, %v2283_v55 }
 0x1aa   :  { %v5679_v36 = vpop.f32.mrf.mxu0  ;;  %v5736_v39 = vpop.f32.mrf.mxu1 }
 0x1ab   :  { %v8283_v45 = vadd.f32 %v5736_v39, %v5676_v61 }
 0x1ac   :  { %v2323_v18 = vpop.f32.mrf.mxu0  ;;  %v2674_v60 = vpop.f32.mrf.mxu1 }
 0x1ad   :  { %v8285_v33 = vadd.f32 %v2674_v60, %v2303_v62 }
 0x1ae   :  { %v5682_v12 = vpop.f32.mrf.mxu0  ;;  %v5739_v9 = vpop.f32.mrf.mxu1 }
 0x1af   :  { %v8287_v52 = vadd.f32 %v5739_v9, %v5679_v36 }
 0x1b0   :  { %v2343_v7 = vpop.f32.mrf.mxu0  ;;  %v2686_v40 = vpop.f32.mrf.mxu1 }
 0x1b1   :  { %v8289_v43 = vadd.f32 %v2686_v40, %v2323_v18 }
 0x1b2   :  { %v5685_v15 = vpop.f32.mrf.mxu0  ;;  %v5742_v58 = vpop.f32.mrf.mxu1 }
 0x1b3   :  { %v8291_v4 = vadd.f32 %v5742_v58, %v5682_v12 }
 0x1b4   :  { %v2363_v55 = vpop.f32.mrf.mxu0  ;;  %v2698_v6 = vpop.f32.mrf.mxu1 }
 0x1b5   :  { %v8293_v61 = vadd.f32 %v2698_v6, %v2343_v7 }
 0x1b6   :  { %v5688_v0 = vpop.f32.mrf.mxu0  ;;  %v5745_v23 = vpop.f32.mrf.mxu1 }
 0x1b7   :  { %v8295_v62 = vadd.f32 %v5745_v23, %v5685_v15 }
 0x1b8   :  { %v2383_v39 = vpop.f32.mrf.mxu0  ;;  %v2710_v60 = vpop.f32.mrf.mxu1 }
 0x1b9   :  { %v8297_v36 = vadd.f32 %v2710_v60, %v2363_v55 }
 0x1ba   :  { %v5691_v9 = vpop.f32.mrf.mxu0  ;;  %v5748_v29 = vpop.f32.mrf.mxu1 }
 0x1bb   :  { %v8299_v18 = vadd.f32 %v5748_v29, %v5688_v0 }
 0x1bc   :  { %v2403_v40 = vpop.f32.mrf.mxu0  ;;  %v2722_v35 = vpop.f32.mrf.mxu1 }
 0x1bd   :  { %10016 = vst [vmem:[#allocation62_spill] sm:$0xff] %v8299_v18  ;;  %v8301_v12 = vadd.f32 %v2722_v35, %v2383_v39 }
 0x1be   :  { %v5694_v58 = vpop.f32.mrf.mxu0  ;;  %v5751_v19 = vpop.f32.mrf.mxu1 }
 0x1bf   :  { %10017 = vst [vmem:[#allocation63_spill] sm:$0xff] %v8301_v12  ;;  %v8303_v7 = vadd.f32 %v5751_v19, %v5691_v9 }
 0x1c0   :  { %v2423_v6 = vpop.f32.mrf.mxu0  ;;  %v2734_v8 = vpop.f32.mrf.mxu1 }
 0x1c1   :  { %10018 = vst [vmem:[#allocation29_spill] sm:$0xff] %v8303_v7  ;;  %v8305_v15 = vadd.f32 %v2734_v8, %v2403_v40 }
 0x1c2   :  { %v5697_v23 = vpop.f32.mrf.mxu0  ;;  %v5754_v24 = vpop.f32.mrf.mxu1 }
 0x1c3   :  { %10019 = vst [vmem:[#allocation31_spill] sm:$0xff] %v8305_v15  ;;  %v8307_v55 = vadd.f32 %v5754_v24, %v5694_v58 }
 0x1c4   :  { %v2443_v60 = vpop.f32.mrf.mxu0  ;;  %v2746_v53 = vpop.f32.mrf.mxu1 }
 0x1c5   :  { %10020 = vst [vmem:[#allocation34_spill] sm:$0xff] %v8307_v55  ;;  %v8309_v29 = vadd.f32 %v2746_v53, %v2423_v6 }
 0x1c6   :  { %v5700_v0 = vpop.f32.mrf.mxu0  ;;  %v5757_v59 = vpop.f32.mrf.mxu1 }
 0x1c7   :  { %10021 = vst [vmem:[#allocation65_spill] sm:$0xff] %v8309_v29  ;;  %v8311_v35 = vadd.f32 %v5757_v59, %v5697_v23 }
 0x1c8   :  { %v2463_v39 = vpop.f32.mrf.mxu0  ;;  %v2758_v56 = vpop.f32.mrf.mxu1 }
 0x1c9   :  { %10022 = vst [vmem:[#allocation15_spill] sm:$0xff] %v8311_v35  ;;  %v8313_v19 = vadd.f32 %v2758_v56, %v2443_v60 }
 0x1ca   :  { %v5703_v9 = vpop.f32.mrf.mxu0  ;;  %v5760_v27 = vpop.f32.mrf.mxu1 }
 0x1cb   :  { %10023 = vst [vmem:[#allocation39_spill] sm:$0xff] %v8313_v19  ;;  %v8315_v8 = vadd.f32 %v5760_v27, %v5700_v0 }
 0x1cc   :  { %v2483_v40 = vpop.f32.mrf.mxu0  ;;  %v2770_v16 = vpop.f32.mrf.mxu1 }
 0x1cd   :  { %10024 = vst [vmem:[#allocation40_spill] sm:$0xff] %v8315_v8  ;;  %v8317_v24 = vadd.f32 %v2770_v16, %v2463_v39 }
 0x1ce   :  { %v5706_v58 = vpop.f32.mrf.mxu0  ;;  %v5763_v37 = vpop.f32.mrf.mxu1 }
 0x1cf   :  { %10025 = vst [vmem:[#allocation66_spill] sm:$0xff] %v8317_v24  ;;  %v8319_v53 = vadd.f32 %v5763_v37, %v5703_v9 }
 0x1d0   :  { %v2503_v6 = vpop.f32.mrf.mxu0  ;;  %v2782_v63 = vpop.f32.mrf.mxu1 }
 0x1d1   :  { %10026 = vst [vmem:[#allocation22_spill] sm:$0xff] %v8319_v53  ;;  %v8321_v59 = vadd.f32 %v2782_v63, %v2483_v40 }
 0x1d2   :  { %v8323_v23 = vpop.f32.mrf.mxu0  ;;  %v5766_v56 = vpop.f32.mrf.mxu1 }
 0x1d3   :  { %10027 = vst [vmem:[#allocation67_spill] sm:$0xff] %v8321_v59  ;;  %v8325_v60 = vadd.f32 %v5766_v56, %v5706_v58 }
 0x1d4   :  { %v2884_v49 = vpop.f32.mrf.mxu0  ;;  %v2794_v27 = vpop.f32.mrf.mxu1 }
 0x1d5   :  { %10028 = vst [vmem:[#allocation3_spill] sm:$0xff] %v8325_v60  ;;  %v8327_v0 = vadd.f32 %v2794_v27, %v2503_v6 }
 0x1d6   :  { %v5784_v2 = vpop.f32.mrf.mxu0  ;;  %v8329_v16 = vpop.f32.mrf.mxu1 }
 0x1d7   :  { %10029 = vst [vmem:[#allocation46_spill] sm:$0xff] %v8327_v0 }
 0x1d8   :  { %v2898_v39 = vpop.f32.mrf.mxu0  ;;  %v8331_v1 = vpop.f32.mrf.mxu1 }
 0x1da   :  { %v5787_v37 = vpop.f32.mrf.mxu0  ;;  %v8333_v9 = vpop.f32.mrf.mxu1 }
 0x1dc   :  { %v2912_v63 = vpop.f32.mrf.mxu0  ;;  %v8335_v40 = vpop.f32.mrf.mxu1 }
 0x1de   :  { %v8337_v59 = vpop.f32.mrf.mxu0  ;;  %v8339_v58 = vpop.f32.mrf.mxu1 }
 0x1e0   :  { %v8341_v56 = vpop.f32.mrf.mxu0  ;;  %v8343_v6 = vpop.f32.mrf.mxu1 }
 0x1e2   :  { %v8345_v27 = vpop.f32.mrf.mxu0  ;;  %v8347_v0 = vpop.f32.mrf.mxu1 }
 0x1e4   :  { %v8349_v60 = vpop.f32.mrf.mxu0  ;;  %v8351_v53 = vpop.f32.mrf.mxu1 }
 0x1e6   :  { %v8353_v24 = vpop.f32.mrf.mxu0  ;;  %v8355_v28 = vpop.f32.mrf.mxu1 }
 0x1e8   :  { %v8357_v11 = vpop.f32.mrf.mxu0  ;;  %v8359_v10 = vpop.f32.mrf.mxu1 }
 0x1ea   :  { %v8361_v8 = vpop.f32.mrf.mxu0  ;;  %v8363_v3 = vpop.f32.mrf.mxu1 }
 0x1ec   :  { %v8365_v57 = vpop.f32.mrf.mxu0  ;;  %v8367_v19 = vpop.f32.mrf.mxu1 }
 0x1ee   :  { %v8369_v34 = vpop.f32.mrf.mxu0  ;;  %v8371_v35 = vpop.f32.mrf.mxu1 }
 0x1f0   :  { %v8373_v22 = vpop.f32.mrf.mxu0  ;;  %v8375_v26 = vpop.f32.mrf.mxu1 }
 0x1f2   :  { %v8377_v50 = vpop.f32.mrf.mxu0  ;;  %v8379_v29 = vpop.f32.mrf.mxu1 }
 0x1f4   :  { %v8381_v41 = vpop.f32.mrf.mxu0  ;;  %v8383_v55 = vpop.f32.mrf.mxu1 }
 0x1f5   :  { %10030 = vst [vmem:[#allocation48_spill] sm:$0xff] %v8383_v55 }
 0x1f6   :  { %v8385_v54 = vpop.f32.mrf.mxu0  ;;  %v8387_v44 = vpop.f32.mrf.mxu1 }
 0x1f7   :  { %10031 = vst [vmem:[#allocation68_spill] sm:$0xff] %v8385_v54  ;;  %10032 = vst [vmem:[#allocation17_spill] sm:$0xff] %v8387_v44 }
 0x1f8   :  { %v8389_v15 = vpop.f32.mrf.mxu0  ;;  %v8391_v51 = vpop.f32.mrf.mxu1 }
 0x1f9   :  { %10033 = vst [vmem:[#allocation21_spill] sm:$0xff] %v8389_v15  ;;  %10034 = vst [vmem:[#allocation69_spill] sm:$0xff] %v8391_v51 }
 0x1fa   :  { %v8393_v47 = vpop.f32.mrf.mxu0  ;;  %v8395_v7 = vpop.f32.mrf.mxu1 }
 0x1fb   :  { %10035 = vst [vmem:[#allocation19_spill] sm:$0xff] %v8393_v47  ;;  %10036 = vst [vmem:[#allocation36_spill] sm:$0xff] %v8395_v7 }
 0x1fc   :  { %v8397_v25 = vpop.f32.mrf.mxu0  ;;  %v8399_v12 = vpop.f32.mrf.mxu1 }
 0x1fd   :  { %10037 = vst [vmem:[#allocation51_spill] sm:$0xff] %v8397_v25  ;;  %10038 = vst [vmem:[#allocation52_spill] sm:$0xff] %v8399_v12 }
 0x1fe   :  { %v8401_v18 = vpop.f32.mrf.mxu0  ;;  %v8403_v31 = vpop.f32.mrf.mxu1 }
 0x1ff   :  { %10039 = vst [vmem:[#allocation70_spill] sm:$0xff] %v8401_v18  ;;  %10040 = vst [vmem:[#allocation33_spill] sm:$0xff] %v8403_v31 }
 0x200   :  { %v8405_v55 = vpop.f32.mrf.mxu0  ;;  %v8407_v54 = vpop.f32.mrf.mxu1 }
 0x201   :  { %10041 = vst [vmem:[#allocation42_spill] sm:$0xff] %v8405_v55  ;;  %10042 = vst [vmem:[#allocation71_spill] sm:$0xff] %v8407_v54 }
 0x202   :  { %v8409_v44 = vpop.f32.mrf.mxu0  ;;  %v8411_v15 = vpop.f32.mrf.mxu1 }
 0x203   :  { %10043 = vst [vmem:[#allocation38_spill] sm:$0xff] %v8409_v44  ;;  %10044 = vst [vmem:[#allocation45_spill] sm:$0xff] %v8411_v15 }
 0x204   :  { %v8413_v51 = vpop.f32.mrf.mxu0  ;;  %v8415_v47 = vpop.f32.mrf.mxu1 }
 0x205   :  { %10045 = vst [vmem:[#allocation56_spill] sm:$0xff] %v8413_v51  ;;  %10046 = vst [vmem:[#allocation57_spill] sm:$0xff] %v8415_v47 }
 0x206   :  { %v8417_v7 = vpop.f32.mrf.mxu0  ;;  %v8419_v25 = vpop.f32.mrf.mxu1 }
 0x207   :  { %10047 = vst [vmem:[#allocation72_spill] sm:$0xff] %v8417_v7  ;;  %10048 = vst [vmem:[#allocation44_spill] sm:$0xff] %v8419_v25  ;;  %v2892_v7 = vadd.f32 %v8323_v23, %v8259_v14  ;;  %v2885_v25 = vadd.f32 %v2884_v49, %v8265_v21  ;;  %v2934_v21 = vadd.f32 %v8337_v59, %v8275_v20 }
 0x208   :  { %v8421_v12 = vpop.f32.mrf.mxu0  ;;  %v8423_v18 = vpop.f32.mrf.mxu1 }
 0x209   :  { %10049 = vst [vmem:[#allocation76_spill] sm:$0xff] %v8421_v12  ;;  %10050 = vst [vmem:[#allocation73_spill] sm:$0xff] %v8423_v18  ;;  %v8469_v20 = vadd.f32 %v8347_v0, %v2934_v21  ;;  %v10060_v0 = vld [vmem:[#allocation48_spill] sm:$0xff]  ;;  %v10063_v21 = vld [vmem:[#allocation21_spill] sm:$0xff] }
 0x20a   :  { %v8425_v31 = vpop.f32.mrf.mxu0  ;;  %v8427_v55 = vpop.f32.mrf.mxu1 }
 0x20b   :  { %10051 = vst [vmem:[#allocation53_spill] sm:$0xff] %v8425_v31  ;;  %10052 = vst [vmem:[#allocation78_spill] sm:$0xff] %v8427_v55  ;;  %v2906_v31 = vadd.f32 %v5784_v2, %v8267_v13  ;;  %v2899_v55 = vadd.f32 %v2898_v39, %v8269_v5  ;;  %v2927_v13 = vadd.f32 %v8341_v56, %v8277_v38  ;;  %v10061_v39 = vld [vmem:[#allocation17_spill] sm:$0xff] }
 0x20c   :  { %v8429_v54 = vpop.f32.mrf.mxu0  ;;  %v8431_v44 = vpop.f32.mrf.mxu1  ;;  %v2962_v38 = vadd.f32 %v8353_v24, %v8283_v45  ;;  %v2969_v45 = vadd.f32 %v8365_v57, %v8289_v43 }
 0x20d   :  { %10053 = vst [vmem:[#allocation60_spill] sm:$0xff] %v8429_v54  ;;  %10054 = vst [vmem:[#allocation61_spill] sm:$0xff] %v8431_v44  ;;  %v3189_v54 = vadd.f32 %v8329_v16, %v2892_v7  ;;  %v2920_v44 = vadd.f32 %v5787_v37, %v8271_v48  ;;  %v3205_v49 = vadd.f32 %v8333_v9, %v2906_v31 }
 0x20e   :  { %v8433_v15 = vpop.f32.mrf.mxu0  ;;  %v8435_v51 = vpop.f32.mrf.mxu1  ;;  %v3197_v2 = vadd.f32 %v8335_v40, %v2899_v55  ;;  %v2941_v48 = vadd.f32 %v8349_v60, %v8281_v32  ;;  %v2976_v32 = vadd.f32 %v8361_v8, %v8287_v52  ;;  %v8489_v24 = vadd.f32 %v8363_v3, %v2962_v38 }
 0x20f   :  { %10055 = vst [vmem:[#allocation74_spill] sm:$0xff] %v8433_v15  ;;  %10056 = vst [vmem:[#allocation77_spill] sm:$0xff] %v8435_v51  ;;  %v3181_v15 = vadd.f32 %v8331_v1, %v2885_v25  ;;  %v2913_v51 = vadd.f32 %v2912_v63, %v8273_v46  ;;  %v3221_v5 = vadd.f32 %v8339_v58, %v2920_v44 }
 0x210   :  { %v8440_v12 = vpop.f32.mrf.mxu0  ;;  %v8442_v18 = vpop.f32.mrf.mxu1  ;;  %v2948_v25 = vadd.f32 %v8345_v27, %v8279_v42  ;;  %v8474_v44 = vadd.f32 %v8351_v53, %v2927_v13  ;;  %v8484_v55 = vadd.f32 %v8359_v10, %v2941_v48  ;;  %v2983_v10 = vadd.f32 %v8373_v22, %v8293_v61  ;;  %v10059_v53 = vld [vmem:[#allocation68_spill] sm:$0xff]  ;;  %v10064_v13 = vld [vmem:[#allocation69_spill] sm:$0xff]  ;;  %v10065_v48 = vld [vmem:[#allocation26_spill] sm:$0xff] }
 0x211   :  { %v8462_v1 = vadd.f32 %v8343_v6, %v2913_v51  ;;  %v2955_v51 = vadd.f32 %v8357_v11, %v8285_v33  ;;  %v2990_v11 = vadd.f32 %v8369_v34, %v8291_v4  ;;  %v8499_v33 = vadd.f32 %v8371_v35, %v2976_v32  ;;  %v10067_v32 = vld [vmem:[#allocation19_spill] sm:$0xff] }
 0x212   :  { %v5901_v47 = vpop.f32.mrf.mxu0  ;;  %v8450_v14 = vpop.f32.mrf.mxu1  ;;  %v8479_v42 = vadd.f32 %v8355_v28, %v2948_v25  ;;  %v8502_v57 = vadd.f32 %v8375_v26, %v2969_v45  ;;  %v3004_v34 = vadd.f32 %v8377_v50, %v8295_v62  ;;  %v2997_v4 = vadd.f32 %v8381_v41, %v8297_v36  ;;  %v8516_v26 = vld [vmem:[%s9476_s5] ss:$0 sm:$0xff]  ;;  %v10057_v50 = vld [vmem:[#allocation5_spill] sm:$0xff] }
 0x213   :  { %v3524_v7 = vadd.f32 %v5901_v47, %v3189_v54  ;;  %v8494_v28 = vadd.f32 %v8367_v19, %v2955_v51  ;;  %v8511_v22 = vadd.f32 %v8379_v29, %v2990_v11  ;;  %v8526_v62 = vld [vmem:[%s9474_s6] ss:$0 sm:$0xff]  ;;  %v10058_v29 = vld [vmem:[#allocation62_spill] sm:$0xff]  ;;  %v8532_v16 = vadd.f32 %v10060_v0, %v2983_v10  ;;  %v10066_v51 = vld [vmem:[#allocation29_spill] sm:$0xff] }
 0x214   :  { %v3517_v31 = vpop.f32.mrf.mxu0  ;;  %v8466_v46 = vpop.f32.mrf.mxu1  ;;  %v3018_v60 = vadd.f32 %v10059_v53, %v10058_v29  ;;  %v8535_v37 = vadd.f32 %v10061_v39, %v3004_v34  ;;  %v8545_v25 = vadd.f32 %v10064_v13, %v2997_v4  ;;  %v10069_v34 = vld [vmem:[#allocation28_spill] sm:$0xff] }
 0x215   :  { %v3518_v47 = vadd.f32 %v3517_v31, %v3181_v15  ;;  %v10073_v53 = vld [vmem:[#allocation52_spill] sm:$0xff] }
 0x216   :  { %v5904_v59 = vpop.f32.mrf.mxu0  ;;  %v5961_v23 = vpop.f32.mrf.mxu1 }
 0x217   :  { %v3787_v54 = vadd.f32 %v5961_v23, %v3524_v7  ;;  %v3536_v61 = vadd.f32 %v5904_v59, %v3205_v49  ;;  %v10062_v49 = vld [vmem:[#allocation63_spill] sm:$0xff]  ;;  %v3032_v59 = vadd.f32 %v10067_v32, %v10066_v51  ;;  %v10068_v23 = vld [vmem:[#allocation6_spill] sm:$0xff] }
 0x218   :  { %v3529_v52 = vpop.f32.mrf.mxu0  ;;  %v3780_v8 = vpop.f32.mrf.mxu1 }
 0x219   :  { %v3971_v3 = vadd.f32 %v3787_v54, %v7864_v17  ;;  %v4789_v43 = vmul.f32 %v7860_v30, %v3787_v54  ;;  %v3781_v15 = vadd.f32 %v3780_v8, %v3518_v47  ;;  %v3530_v17 = vadd.f32 %v3529_v52, %v3197_v2 }
 0x21a   :  { %v5907_v35 = vpop.f32.mrf.mxu0  ;;  %v5964_v19 = vpop.f32.mrf.mxu1  ;;  %v3011_v2 = vadd.f32 %v10063_v21, %v10062_v49  ;;  %v10075_v21 = vld [vmem:[#allocation7_spill] sm:$0xff] }
 0x21b   :  { %v4003_v30 = vmax.f32 %v3971_v3, 0.0  ;;  %4821 = vst.msk [vmem:[%s9477_s9 + $0x8] sm:$0xff] %vm4073_vm2, %v4789_v43  ;;  %v3970_v41 = vadd.f32 %v3781_v15, %v10057_v50  ;;  %v4788_v36 = vmul.f32 %v8526_v62, %v3781_v15  ;;  %v3799_v63 = vadd.f32 %v5964_v19, %v3536_v61  ;;  %v10071_v19 = vld [vmem:[#allocation51_spill] sm:$0xff] }
 0x21c   :  { %v3541_v9 = vpop.f32.mrf.mxu0  ;;  %v3792_v40 = vpop.f32.mrf.mxu1  ;;  %v3548_v58 = vadd.f32 %v5907_v35, %v3221_v5  ;;  %v10070_v35 = vld [vmem:[#allocation31_spill] sm:$0xff]  ;;  %v8574_v0 = vadd.f32 %v10073_v53, %v3011_v2 }
 0x21d   :  { %v4002_v56 = vmax.f32 %v3970_v41, 0.0  ;;  %4820 = vst.msk [vmem:[%s9477_s9] sm:$0xff] %vm4073_vm2, %v4788_v36  ;;  %v3793_v6 = vadd.f32 %v3792_v40, %v3530_v17  ;;  %v4042_v27 = vmul.f32 %v8516_v26, %v4003_v30  ;;  %v3973_v31 = vadd.f32 %v3799_v63, %v10065_v48  ;;  %v10072_v17 = vld [vmem:[#allocation36_spill] sm:$0xff]  ;;  %v10074_v40 = vld [vmem:[#allocation30_spill] sm:$0xff] }
 0x21e   :  { %v4791_v38 = vmul.f32 %v8526_v62, %v3799_v63  ;;  %v5910_v5 = vpop.f32.mrf.mxu0  ;;  %v5967_v7 = vpop.f32.mrf.mxu1  ;;  %v3542_v11 = vadd.f32 %v3541_v9, %v8462_v1  ;;  %v8570_v30 = vadd.f32 %v10072_v17, %v3018_v60  ;;  %v10082_v17 = vld [vmem:[#allocation71_spill] sm:$0xff] }
 0x21f   :  { %v3972_v45 = vadd.f32 %v3793_v6, %v10068_v23  ;;  %v4790_v47 = vmul.f32 %v8526_v62, %v3793_v6  ;;  %v3811_v54 = vadd.f32 %v5967_v7, %v3548_v58  ;;  %v4005_v10 = vmax.f32 %v3973_v31, 0.0  ;;  %v10076_v31 = vld [vmem:[#allocation34_spill] sm:$0xff]  ;;  %v10078_v7 = vld [vmem:[#allocation33_spill] sm:$0xff] }
 0x220   :  { %4823 = vst.msk [vmem:[%s9477_s9 + $0x18] sm:$0xff] %vm4073_vm2, %v4791_v38  ;;  %v3560_v52 = vadd.f32 %v5910_v5, %v8469_v20  ;;  %v3553_v8 = vpop.f32.mrf.mxu0  ;;  %v3804_v3 = vpop.f32.mrf.mxu1  ;;  %v4077_v43 = vsel %vm4073_vm2, %v4042_v27, 0.0  ;;  %v4041_v61 = vmul.f32 %v8516_v26, %v4002_v56  ;;  %v3025_v20 = vadd.f32 %v10071_v19, %v10070_v35  ;;  %v10077_v38 = vld [vmem:[#allocation70_spill] sm:$0xff] }
 0x221   :  { %v4004_v15 = vmax.f32 %v3972_v45, 0.0  ;;  %4822 = vst.msk [vmem:[%s9477_s9 + $0x10] sm:$0xff] %vm4073_vm2, %v4790_v47  ;;  %v3975_v1 = vadd.f32 %v3811_v54, %v10069_v34  ;;  %v4793_v4 = vmul.f32 %v8526_v62, %v3811_v54  ;;  %4078 = vadd.xlane.f32.xlu0 %v4077_v43  ;;  %v3805_v50 = vadd.f32 %v3804_v3, %v3542_v11 }
 0x222   :  { %v5913_v41 = vpop.f32.mrf.mxu0  ;;  %v5970_v36 = vpop.f32.mrf.mxu1  ;;  %v4044_v29 = vmul.f32 %v8516_v26, %v4005_v10  ;;  %v3554_v39 = vadd.f32 %v3553_v8, %v8474_v44  ;;  %v4074_v48 = vsel %vm4073_vm2, %v4041_v61, 0.0  ;;  %v3046_v5 = vadd.f32 %v10077_v38, %v10076_v31  ;;  %v10086_v31 = vld [vmem:[#allocation15_spill] sm:$0xff]  ;;  %v10087_v38 = vld [vmem:[#allocation38_spill] sm:$0xff] }
 0x223   :  { %v4007_v9 = vmax.f32 %v3975_v1, 0.0  ;;  %4825 = vst.msk [vmem:[%s9477_s9 + $0x28] sm:$0xff] %vm4073_vm2, %v4793_v4  ;;  %v3823_v63 = vadd.f32 %v5970_v36, %v3560_v52  ;;  %v3974_v60 = vadd.f32 %v3805_v50, %v10074_v40  ;;  %v4792_v58 = vmul.f32 %v8526_v62, %v3805_v50  ;;  %v10081_v1 = vld [vmem:[#allocation42_spill] sm:$0xff] }
 0x224   :  { %v3565_v56 = vpop.f32.mrf.mxu0  ;;  %v3816_v6 = vpop.f32.mrf.mxu1  ;;  %v4083_v27 = vsel %vm4073_vm2, %v4044_v29, 0.0  ;;  %v4043_v49 = vmul.f32 %v8516_v26, %v4004_v15  ;;  %v8591_v51 = vadd.f32 %v10078_v7, %v3032_v59  ;;  %v3572_v23 = vadd.f32 %v5913_v41, %v8479_v42  ;;  %v10079_v59 = vld [vmem:[#allocation8_spill] sm:$0xff] }
 0x225   :  { %v3977_v2 = vadd.f32 %v3823_v63, %v10075_v21  ;;  %v4795_v44 = vmul.f32 %v8526_v62, %v3823_v63  ;;  %v3817_v13 = vadd.f32 %v3816_v6, %v3554_v39  ;;  %4084 = vadd.xlane.f32.xlu1 %v4083_v27  ;;  %v4006_v32 = vmax.f32 %v3974_v60, 0.0  ;;  %4824 = vst.msk [vmem:[%s9477_s9 + $0x20] sm:$0xff] %vm4073_vm2, %v4792_v58  ;;  %v10083_v41 = vld [vmem:[#allocation32_spill] sm:$0xff]  ;;  %v10084_v63 = vld [vmem:[#allocation35_spill] sm:$0xff] }
 0x226   :  { %v5916_v45 = vpop.f32.mrf.mxu0  ;;  %4075 = vadd.xlane.f32.xlu0 %v4074_v48  ;;  %v5973_v47 = vpop.f32.mrf.mxu1  ;;  %v3566_v54 = vadd.f32 %v3565_v56, %v8484_v55  ;;  %v4080_v42 = vsel %vm4073_vm2, %v4043_v49, 0.0  ;;  %v4046_v34 = vmul.f32 %v8516_v26, %v4007_v9  ;;  %v10080_v55 = vld [vmem:[#allocation65_spill] sm:$0xff]  ;;  %v8616_v50 = vadd.f32 %v10082_v17, %v3025_v20 }
 0x227   :  { %v4009_v11 = vmax.f32 %v3977_v2, 0.0  ;;  %4827 = vst.msk [vmem:[%s9477_s9 + $0x38] sm:$0xff] %vm4073_vm2, %v4795_v44  ;;  %v3976_v10 = vadd.f32 %v3817_v13, %v10079_v59  ;;  %v4794_v52 = vmul.f32 %v8526_v62, %v3817_v13  ;;  %v3835_v3 = vadd.f32 %v5973_v47, %v3572_v23 }
 0x228   :  { %v3577_v8 = vpop.f32.mrf.mxu0  ;;  %v3828_v43 = vpop.f32.mrf.mxu1  ;;  %v4045_v15 = vmul.f32 %v8516_v26, %v4006_v32  ;;  %v3039_v4 = vadd.f32 %v10081_v1, %v10080_v55  ;;  %v3584_v35 = vadd.f32 %v5916_v45, %v8489_v24  ;;  %v4089_v49 = vsel %vm4073_vm2, %v4046_v34, 0.0  ;;  %v10088_v32 = vld [vmem:[#allocation45_spill] sm:$0xff]  ;;  %v10090_v34 = vld [vmem:[#allocation39_spill] sm:$0xff]  ;;  %v10091_v55 = vld [vmem:[#allocation56_spill] sm:$0xff] }
 0x229   :  { %v4008_v61 = vmax.f32 %v3976_v10, 0.0  ;;  %4826 = vst.msk [vmem:[%s9477_s9 + $0x30] sm:$0xff] %vm4073_vm2, %v4794_v52  ;;  %v3829_v19 = vadd.f32 %v3828_v43, %v3566_v54  ;;  %4081 = vadd.xlane.f32.xlu1 %v4080_v42  ;;  %v3979_v36 = vadd.f32 %v3835_v3, %v10083_v41  ;;  %v4797_v29 = vmul.f32 %v8526_v62, %v3835_v3  ;;  %v10093_v41 = vld [vmem:[#allocation57_spill] sm:$0xff] }
 0x22a   :  { %v5919_v53 = vpop.f32.mrf.mxu0  ;;  %v5976_v39 = vpop.f32.mrf.mxu1  ;;  %v4086_v9 = vsel %vm4073_vm2, %v4045_v15, 0.0  ;;  %v4048_v24 = vmul.f32 %v8516_v26, %v4009_v11  ;;  %v3578_v56 = vadd.f32 %v3577_v8, %v8494_v28  ;;  %v10085_v28 = vld [vmem:[#allocation9_spill] sm:$0xff]  ;;  %v3060_v7 = vadd.f32 %v10087_v38, %v10086_v31  ;;  %v10089_v8 = vld [vmem:[#allocation10_spill] sm:$0xff]  ;;  %v10098_v38 = vld [vmem:[#allocation11_spill] sm:$0xff] }
 0x22b   :  { %v3978_v40 = vadd.f32 %v3829_v19, %v10084_v63  ;;  %v4796_v60 = vmul.f32 %v8526_v62, %v3829_v19  ;;  %v3847_v58 = vadd.f32 %v5976_v39, %v3584_v35  ;;  %4087 = vadd.xlane.f32.xlu0 %v4086_v9  ;;  %v4011_v20 = vmax.f32 %v3979_v36, 0.0  ;;  %4829 = vst.msk [vmem:[%s9477_s9 + $0x48] sm:$0xff] %vm4073_vm2, %v4797_v29 }
 0x22c   :  { %v3589_v6 = vpop.f32.mrf.mxu0  ;;  %v3840_v27 = vpop.f32.mrf.mxu1  ;;  %v4047_v21 = vmul.f32 %v8516_v26, %v4008_v61  ;;  %v3596_v2 = vadd.f32 %v5919_v53, %v8499_v33  ;;  %v8641_v23 = vadd.f32 %v10088_v32, %v3046_v5  ;;  %v4095_v10 = vsel %vm4073_vm2, %v4048_v24, 0.0  ;;  %v10092_v61 = vld [vmem:[#allocation37_spill] sm:$0xff] }
 0x22d   :  { %v4010_v44 = vmax.f32 %v3978_v40, 0.0  ;;  %4828 = vst.msk [vmem:[%s9477_s9 + $0x40] sm:$0xff] %vm4073_vm2, %v4796_v60  ;;  %v3981_v13 = vadd.f32 %v3847_v58, %v10085_v28  ;;  %v4799_v48 = vmul.f32 %v8526_v62, %v3847_v58  ;;  %4090 = vadd.xlane.f32.xlu1 %v4089_v49  ;;  %v3841_v47 = vadd.f32 %v3840_v27, %v3578_v56  ;;  %v10095_v49 = vld [vmem:[#allocation40_spill] sm:$0xff] }
 0x22e   :  { %v5922_v45 = vpop.f32.mrf.mxu0  ;;  %v5979_v33 = vpop.f32.mrf.mxu1  ;;  %v4092_v54 = vsel %vm4073_vm2, %v4047_v21, 0.0  ;;  %v3590_v11 = vadd.f32 %v3589_v6, %v8502_v57  ;;  %v4050_v57 = vmul.f32 %v8516_v26, %v4011_v20  ;;  %v3053_v1 = vadd.f32 %v10091_v55, %v10090_v34  ;;  %v10096_v21 = vld [vmem:[#allocation72_spill] sm:$0xff] }
 0x22f   :  { %4831 = vst.msk [vmem:[%s9477_s9 + $0x58] sm:$0xff] %vm4073_vm2, %v4799_v48  ;;  %v3859_v59 = vadd.f32 %v5979_v33, %v3596_v2  ;;  %4093 = vadd.xlane.f32.xlu0 %v4092_v54  ;;  %v4049_v52 = vmul.f32 %v8516_v26, %v4010_v44  ;;  %v4013_v5 = vmax.f32 %v3981_v13, 0.0  ;;  %v3980_v3 = vadd.f32 %v3841_v47, %v10089_v8  ;;  %v10097_v48 = vld [vmem:[#allocation44_spill] sm:$0xff] }
 0x230   :  { %v4798_v43 = vmul.f32 %v8526_v62, %v3841_v47  ;;  %v3601_v42 = vpop.f32.mrf.mxu0  ;;  %v3852_v15 = vpop.f32.mrf.mxu1  ;;  %v8659_v36 = vadd.f32 %v10093_v41, %v3039_v4  ;;  %v3608_v29 = vadd.f32 %v5922_v45, %v8511_v22  ;;  %v10094_v4 = vld [vmem:[#allocation41_spill] sm:$0xff]  ;;  %v4101_v6 = vsel %vm4073_vm2, %v4050_v57, 0.0 }
 0x231   :  { %v3983_v35 = vadd.f32 %v3859_v59, %v10092_v61  ;;  %v4801_v19 = vmul.f32 %v8526_v62, %v3859_v59  ;;  %v3853_v17 = vadd.f32 %v3852_v15, %v3590_v11  ;;  %4096 = vadd.xlane.f32.xlu1 %v4095_v10  ;;  %v4012_v53 = vmax.f32 %v3980_v3, 0.0  ;;  %v10101_v61 = vld [vmem:[#allocation66_spill] sm:$0xff] }
 0x232   :  { %4830 = vst.msk [vmem:[%s9477_s9 + $0x50] sm:$0xff] %vm4073_vm2, %v4798_v43  ;;  %v5925_v39 = vpop.f32.mrf.mxu0  ;;  %v5982_v9 = vpop.f32.mrf.mxu1  ;;  %v4098_v63 = vsel %vm4073_vm2, %v4049_v52, 0.0  ;;  %v3602_v40 = vadd.f32 %v3601_v42, %v8532_v16  ;;  %v4052_v16 = vmul.f32 %v8516_v26, %v4013_v5  ;;  %v3074_v2 = vadd.f32 %v10096_v21, %v10095_v49 }
 0x233   :  { %v4015_v60 = vmax.f32 %v3983_v35, 0.0  ;;  %4833 = vst.msk [vmem:[%s9477_s9 + $0x68] sm:$0xff] %vm4073_vm2, %v4801_v19  ;;  %v3982_v22 = vadd.f32 %v3853_v17, %v10094_v4  ;;  %v4800_v58 = vmul.f32 %v8526_v62, %v3853_v17  ;;  %4099 = vadd.xlane.f32.xlu0 %v4098_v63  ;;  %v3871_v56 = vadd.f32 %v5982_v9, %v3608_v29  ;;  %v10102_v35 = vld [vmem:[#allocation76_spill] sm:$0xff]  ;;  %v10103_v17 = vld [vmem:[#allocation73_spill] sm:$0xff]  ;;  %v10104_v4 = vld [vmem:[#allocation47_spill] sm:$0xff] }
 0x234   :  { %v3613_v24 = vpop.f32.mrf.mxu0  ;;  %v3864_v20 = vpop.f32.mrf.mxu1  ;;  %v4051_v27 = vmul.f32 %v8516_v26, %v4012_v53  ;;  %v3620_v44 = vadd.f32 %v5925_v39, %v8535_v37  ;;  %v8685_v31 = vadd.f32 %v10097_v48, %v3060_v7  ;;  %v10099_v37 = vld [vmem:[#allocation12_spill] sm:$0xff]  ;;  %v4107_v43 = vsel %vm4073_vm2, %v4052_v16, 0.0  ;;  %v10107_v16 = vld [vmem:[#allocation13_spill] sm:$0xff] }
 0x235   :  { %v4014_v28 = vmax.f32 %v3982_v22, 0.0  ;;  %4832 = vst.msk [vmem:[%s9477_s9 + $0x60] sm:$0xff] %vm4073_vm2, %v4800_v58  ;;  %v3865_v13 = vadd.f32 %v3864_v20, %v3602_v40  ;;  %4102 = vadd.xlane.f32.xlu1 %v4101_v6  ;;  %v3985_v32 = vadd.f32 %v3871_v56, %v10098_v38  ;;  %v4803_v45 = vmul.f32 %v8526_v62, %v3871_v56  ;;  %v10105_v20 = vld [vmem:[#allocation22_spill] sm:$0xff]  ;;  %v10106_v6 = vld [vmem:[#allocation53_spill] sm:$0xff] }
 0x236   :  { %v5928_v47 = vpop.f32.mrf.mxu0  ;;  %v5985_v33 = vpop.f32.mrf.mxu1  ;;  %v4104_v54 = vsel %vm4073_vm2, %v4051_v27, 0.0  ;;  %v4054_v52 = vmul.f32 %v8516_v26, %v4015_v60  ;;  %v3614_v5 = vadd.f32 %v3613_v24, %v8545_v25  ;;  %v10100_v25 = vld [vmem:[#allocation43_spill] sm:$0xff]  ;;  %v3067_v19 = vadd.f32 %v10102_v35, %v10101_v61 }
 0x237   :  { %v3984_v11 = vadd.f32 %v3865_v13, %v10099_v37  ;;  %v4802_v59 = vmul.f32 %v8526_v62, %v3865_v13  ;;  %v3883_v10 = vadd.f32 %v5985_v33, %v3620_v44  ;;  %4105 = vadd.xlane.f32.xlu0 %v4104_v54  ;;  %v4017_v7 = vmax.f32 %v3985_v32, 0.0  ;;  %4835 = vst.msk [vmem:[%s9477_s9 + $0x78] sm:$0xff] %vm4073_vm2, %v4803_v45 }
 0x238   :  { %v3625_v8 = vpop.f32.mrf.mxu0  ;;  %v3876_v3 = vpop.f32.mrf.mxu1  ;;  %v4053_v42 = vmul.f32 %v8516_v26, %v4014_v28  ;;  %v3632_v15 = vadd.f32 %v5928_v47, %v8570_v30  ;;  %v8710_v41 = vadd.f32 %v10103_v17, %v3053_v1  ;;  %v4113_v40 = vsel %vm4073_vm2, %v4054_v52, 0.0  ;;  %v10108_v28 = vld [vmem:[#allocation78_spill] sm:$0xff] }
 0x239   :  { %v4016_v57 = vmax.f32 %v3984_v11, 0.0  ;;  %4834 = vst.msk [vmem:[%s9477_s9 + $0x70] sm:$0xff] %vm4073_vm2, %v4802_v59  ;;  %v3987_v34 = vadd.f32 %v3883_v10, %v10100_v25  ;;  %v4805_v55 = vmul.f32 %v8526_v62, %v3883_v10  ;;  %4108 = vadd.xlane.f32.xlu1 %v4107_v43  ;;  %v3877_v53 = vadd.f32 %v3876_v3, %v3614_v5 }
 0x23a   :  { %v5931_v29 = vpop.f32.mrf.mxu0  ;;  %v5988_v30 = vpop.f32.mrf.mxu1  ;;  %v4110_v39 = vsel %vm4073_vm2, %v4053_v42, 0.0  ;;  %v3626_v9 = vadd.f32 %v3625_v8, %v8574_v0  ;;  %v4056_v0 = vmul.f32 %v8516_v26, %v4017_v7  ;;  %v3088_v27 = vadd.f32 %v10106_v6, %v10105_v20  ;;  %v10110_v7 = vld [vmem:[#allocation67_spill] sm:$0xff]  ;;  %v10111_v8 = vld [vmem:[#allocation60_spill] sm:$0xff]  ;;  %v10117_v20 = vld [vmem:[#allocation74_spill] sm:$0xff] }
 0x23b   :  { %4837 = vst.msk [vmem:[%s9477_s9 + $0x88] sm:$0xff] %vm4073_vm2, %v4805_v55  ;;  %v3895_v63 = vadd.f32 %v5988_v30, %v3632_v15  ;;  %4111 = vadd.xlane.f32.xlu0 %v4110_v39  ;;  %v4055_v60 = vmul.f32 %v8516_v26, %v4016_v57  ;;  %v4019_v1 = vmax.f32 %v3987_v34, 0.0  ;;  %v3986_v22 = vadd.f32 %v3877_v53, %v10104_v4  ;;  %v10112_v57 = vld [vmem:[#allocation61_spill] sm:$0xff] }
 0x23c   :  { %v4804_v58 = vmul.f32 %v8526_v62, %v3877_v53  ;;  %v3637_v24 = vpop.f32.mrf.mxu0  ;;  %v3888_v56 = vpop.f32.mrf.mxu1  ;;  %v8728_v13 = vadd.f32 %v10108_v28, %v3074_v2  ;;  %v3644_v48 = vadd.f32 %v5931_v29, %v8591_v51  ;;  %v10109_v2 = vld [vmem:[#allocation14_spill] sm:$0xff]  ;;  %v4119_v52 = vsel %vm4073_vm2, %v4056_v0, 0.0  ;;  %v10113_v34 = vld [vmem:[#allocation49_spill] sm:$0xff]  ;;  %v10116_v0 = vld [vmem:[#allocation3_spill] sm:$0xff] }
 0x23d   :  { %v3989_v49 = vadd.f32 %v3895_v63, %v10107_v16  ;;  %v4807_v21 = vmul.f32 %v8526_v62, %v3895_v63  ;;  %v3889_v44 = vadd.f32 %v3888_v56, %v3626_v9  ;;  %4114 = vadd.xlane.f32.xlu1 %v4113_v40  ;;  %v4018_v38 = vmax.f32 %v3986_v22, 0.0  ;;  %v10114_v53 = vld [vmem:[#allocation50_spill] sm:$0xff]  ;;  %v10118_v16 = vld [vmem:[#allocation77_spill] sm:$0xff] }
 0x23e   :  { %4836 = vst.msk [vmem:[%s9477_s9 + $0x80] sm:$0xff] %vm4073_vm2, %v4804_v58  ;;  %v5934_v32 = vpop.f32.mrf.mxu0  ;;  %v5991_v45 = vpop.f32.mrf.mxu1  ;;  %v4116_v47 = vsel %vm4073_vm2, %v4055_v60, 0.0  ;;  %v3638_v33 = vadd.f32 %v3637_v24, %v8616_v50  ;;  %v4058_v50 = vmul.f32 %v8516_v26, %v4019_v1  ;;  %v3081_v3 = vadd.f32 %v10111_v8, %v10110_v7 }
 0x23f   :  { %v4021_v54 = vmax.f32 %v3989_v49, 0.0  ;;  %4839 = vst.msk [vmem:[%s9477_s9 + $0x98] sm:$0xff] %vm4073_vm2, %v4807_v21  ;;  %v3988_v51 = vadd.f32 %v3889_v44, %v10109_v2  ;;  %v4806_v37 = vmul.f32 %v8526_v62, %v3889_v44  ;;  %4117 = vadd.xlane.f32.xlu0 %v4116_v47  ;;  %v3907_v59 = vadd.f32 %v5991_v45, %v3644_v48 }
 0x240   :  { %v3649_v11 = vpop.f32.mrf.mxu0  ;;  %v3900_v10 = vpop.f32.mrf.mxu1  ;;  %v4057_v5 = vmul.f32 %v8516_v26, %v4018_v38  ;;  %v3656_v43 = vadd.f32 %v5934_v32, %v8641_v23  ;;  %v3389_v25 = vadd.f32 %v10112_v57, %v3067_v19  ;;  %v4125_v1 = vsel %vm4073_vm2, %v4058_v50, 0.0 }
 0x241   :  { %v4020_v42 = vmax.f32 %v3988_v51, 0.0  ;;  %4838 = vst.msk [vmem:[%s9477_s9 + $0x90] sm:$0xff] %vm4073_vm2, %v4806_v37  ;;  %v3901_v15 = vadd.f32 %v3900_v10, %v3638_v33  ;;  %4120 = vadd.xlane.f32.xlu1 %v4119_v52  ;;  %v3991_v55 = vadd.f32 %v3907_v59, %v10113_v34  ;;  %v4809_v61 = vmul.f32 %v8526_v62, %v3907_v59  ;;  %v10120_v37 = vld [vmem:[#allocation46_spill] sm:$0xff] }
 0x242   :  { %v5937_v35 = vpop.f32.mrf.mxu0  ;;  %v5994_v17 = vpop.f32.mrf.mxu1  ;;  %v4122_v29 = vsel %vm4073_vm2, %v4057_v5, 0.0  ;;  %v4060_v9 = vmul.f32 %v8516_v26, %v4021_v54  ;;  %v3650_v63 = vadd.f32 %v3649_v11, %v8659_v36  ;;  %v10115_v36 = vld [vmem:[#allocation16_spill] sm:$0xff]  ;;  %v3102_v6 = vadd.f32 %v10117_v20, %v10116_v0  ;;  %v10121_v59 = vld [vmem:[#allocation54_spill] sm:$0xff] }
 0x243   :  { %v3990_v23 = vadd.f32 %v3901_v15, %v10114_v53  ;;  %v4808_v30 = vmul.f32 %v8526_v62, %v3901_v15  ;;  %v3919_v39 = vadd.f32 %v5994_v17, %v3656_v43  ;;  %4123 = vadd.xlane.f32.xlu0 %v4122_v29  ;;  %v4023_v40 = vmax.f32 %v3991_v55, 0.0  ;;  %4841 = vst.msk [vmem:[%s9477_s9 + $0xa8] sm:$0xff] %vm4073_vm2, %v4809_v61 }
 0x244   :  { %v3661_v19 = vpop.f32.mrf.mxu0  ;;  %v3912_v60 = vpop.f32.mrf.mxu1  ;;  %v4059_v4 = vmul.f32 %v8516_v26, %v4020_v42  ;;  %v3668_v22 = vadd.f32 %v5937_v35, %v8685_v31  ;;  %v3413_v49 = vadd.f32 %v10118_v16, %v3088_v27  ;;  %v4131_v32 = vsel %vm4073_vm2, %v4060_v9, 0.0  ;;  %v10119_v27 = vld [vmem:[#allocation18_spill] sm:$0xff]  ;;  %v10123_v9 = vld [vmem:[#allocation20_spill] sm:$0xff] }
 0x245   :  { %v4022_v58 = vmax.f32 %v3990_v23, 0.0  ;;  %4840 = vst.msk [vmem:[%s9477_s9 + $0xa0] sm:$0xff] %vm4073_vm2, %v4808_v30  ;;  %v3993_v24 = vadd.f32 %v3919_v39, %v10115_v36  ;;  %v4811_v56 = vmul.f32 %v8526_v62, %v3919_v39  ;;  %4126 = vadd.xlane.f32.xlu1 %v4125_v1  ;;  %v3913_v44 = vadd.f32 %v3912_v60, %v3650_v63 }
 0x246   :  { %v5940_v21 = vpop.f32.mrf.mxu0  ;;  %v5997_v28 = vpop.f32.mrf.mxu1  ;;  %v4128_v31 = vsel %vm4073_vm2, %v4059_v4, 0.0  ;;  %v3662_v48 = vadd.f32 %v3661_v19, %v8710_v41  ;;  %v4062_v41 = vmul.f32 %v8516_v26, %v4023_v40  ;;  %v3095_v11 = vadd.f32 %v8440_v12, %v10120_v37 }
 0x247   :  { %4843 = vst.msk [vmem:[%s9477_s9 + $0xb8] sm:$0xff] %vm4073_vm2, %v4811_v56  ;;  %v3931_v38 = vadd.f32 %v5997_v28, %v3668_v22  ;;  %4129 = vadd.xlane.f32.xlu0 %v4128_v31  ;;  %v4061_v45 = vmul.f32 %v8516_v26, %v4022_v58  ;;  %v4025_v47 = vmax.f32 %v3993_v24, 0.0  ;;  %v3992_v33 = vadd.f32 %v3913_v44, %v10119_v27 }
 0x248   :  { %v4810_v54 = vmul.f32 %v8526_v62, %v3913_v44  ;;  %v3673_v2 = vpop.f32.mrf.mxu0  ;;  %v3924_v51 = vpop.f32.mrf.mxu1  ;;  %v3405_v50 = vadd.f32 %v8442_v18, %v3081_v3  ;;  %v3680_v7 = vadd.f32 %v5940_v21, %v8728_v13  ;;  %v10122_v18 = vld [vmem:[#allocation55_spill] sm:$0xff]  ;;  %v4137_v35 = vsel %vm4073_vm2, %v4062_v41, 0.0  ;;  %v10125_v21 = vld [vmem:[#allocation58_spill] sm:$0xff] }
 0x249   :  { %v3995_v10 = vadd.f32 %v3931_v38, %v10121_v59  ;;  %v4813_v52 = vmul.f32 %v8526_v62, %v3931_v38  ;;  %v3925_v5 = vadd.f32 %v3924_v51, %v3662_v48  ;;  %4132 = vadd.xlane.f32.xlu1 %v4131_v32  ;;  %v4024_v8 = vmax.f32 %v3992_v33, 0.0 }
 0x24a   :  { %4842 = vst.msk [vmem:[%s9477_s9 + $0xb0] sm:$0xff] %vm4073_vm2, %v4810_v54  ;;  %v5943_v43 = vpop.f32.mrf.mxu0  ;;  %v6000_v42 = vpop.f32.mrf.mxu1  ;;  %v4134_v12 = vsel %vm4073_vm2, %v4061_v45, 0.0  ;;  %v3674_v15 = vadd.f32 %v3673_v2, %v3389_v25  ;;  %v4064_v25 = vmul.f32 %v8516_v26, %v4025_v47  ;;  %v3429_v29 = vadd.f32 %v8450_v14, %v3102_v6  ;;  %v10124_v14 = vld [vmem:[#allocation23_spill] sm:$0xff] }
 0x24b   :  { %v4027_v57 = vmax.f32 %v3995_v10, 0.0  ;;  %4845 = vst.msk [vmem:[%s9477_s9 + $0xc8] sm:$0xff] %vm4073_vm2, %v4813_v52  ;;  %v3994_v3 = vadd.f32 %v3925_v5, %v10122_v18  ;;  %v4812_v13 = vmul.f32 %v8526_v62, %v3925_v5  ;;  %4135 = vadd.xlane.f32.xlu0 %v4134_v12  ;;  %v3943_v55 = vadd.f32 %v6000_v42, %v3680_v7  ;;  %v10126_v54 = vld [vmem:[#allocation59_spill] sm:$0xff] }
 0x24c   :  { %v3685_v34 = vpop.f32.mrf.mxu0  ;;  %v3936_v61 = vpop.f32.mrf.mxu1  ;;  %v4063_v17 = vmul.f32 %v8516_v26, %v4024_v8  ;;  %v3692_v53 = vadd.f32 %v5943_v43, %v3413_v49  ;;  %v3421_v39 = vadd.f32 %v8466_v46, %v3095_v11  ;;  %v4143_v20 = vsel %vm4073_vm2, %v4064_v25, 0.0  ;;  %v10127_v11 = vld [vmem:[#allocation25_spill] sm:$0xff]  ;;  %v10128_v8 = vld [vmem:[#allocation27_spill] sm:$0xff] }
 0x24d   :  { %v4026_v23 = vmax.f32 %v3994_v3, 0.0  ;;  %4844 = vst.msk [vmem:[%s9477_s9 + $0xc0] sm:$0xff] %vm4073_vm2, %v4812_v13  ;;  %v3937_v30 = vadd.f32 %v3936_v61, %v3674_v15  ;;  %4138 = vadd.xlane.f32.xlu1 %v4137_v35  ;;  %v3997_v63 = vadd.f32 %v3943_v55, %v10123_v9  ;;  %v4815_v40 = vmul.f32 %v8526_v62, %v3943_v55 }
 0x24e   :  { %v5946_v19 = vpop.f32.mrf.mxu0  ;;  %v6003_v60 = vpop.f32.mrf.mxu1  ;;  %v4140_v1 = vsel %vm4073_vm2, %v4063_v17, 0.0  ;;  %v4066_v36 = vmul.f32 %v8516_v26, %v4027_v57  ;;  %v3686_v24 = vadd.f32 %v3685_v34, %v3405_v50  ;;  %v8871_v35 = vstv %s9478_s7 }
 0x24f   :  { %v3996_v4 = vadd.f32 %v3937_v30, %v10124_v14  ;;  %v4814_v22 = vmul.f32 %v8526_v62, %v3937_v30  ;;  %v3955_v58 = vadd.f32 %v6003_v60, %v3692_v53  ;;  %4141 = vadd.xlane.f32.xlu0 %v4140_v1  ;;  %v4029_v56 = vmax.f32 %v3997_v63, 0.0  ;;  %4847 = vst.msk [vmem:[%s9477_s9 + $0xd8] sm:$0xff] %vm4073_vm2, %v4815_v40 }
 0x250   :  { %v3697_v46 = vpop.f32.mrf.mxu0  ;;  %v3948_v0 = vpop.f32.mrf.mxu1  ;;  %v4065_v6 = vmul.f32 %v8516_v26, %v4026_v23  ;;  %v3704_v16 = vadd.f32 %v5946_v19, %v3429_v29  ;;  %v4149_v47 = vsel %vm4073_vm2, %v4066_v36, 0.0 }
 0x251   :  { %v4028_v49 = vmax.f32 %v3996_v4, 0.0  ;;  %4846 = vst.msk [vmem:[%s9477_s9 + $0xd0] sm:$0xff] %vm4073_vm2, %v4814_v22  ;;  %v3999_v44 = vadd.f32 %v3955_v58, %v10125_v21  ;;  %v4817_v28 = vmul.f32 %v8526_v62, %v3955_v58  ;;  %4144 = vadd.xlane.f32.xlu1 %v4143_v20  ;;  %v3949_v31 = vadd.f32 %v3948_v0, %v3686_v24 }
 0x252   :  { %v6006_v48 = vpop.f32.mrf.mxu1  ;;  %v4146_v38 = vsel %vm4073_vm2, %v4065_v6, 0.0  ;;  %v3698_v32 = vadd.f32 %v3697_v46, %v3421_v39  ;;  %v4068_v37 = vmul.f32 %v8516_v26, %v4029_v56 }
 0x253   :  { %4849 = vst.msk [vmem:[%s9477_s9 + $0xe8] sm:$0xff] %vm4073_vm2, %v4817_v28  ;;  %v3967_v45 = vadd.f32 %v6006_v48, %v3704_v16  ;;  %4147 = vadd.xlane.f32.xlu0 %v4146_v38  ;;  %v4067_v27 = vmul.f32 %v8516_v26, %v4028_v49  ;;  %v4031_v33 = vmax.f32 %v3999_v44, 0.0  ;;  %v3998_v2 = vadd.f32 %v3949_v31, %v10126_v54 }
 0x254   :  { %v4816_v51 = vmul.f32 %v8526_v62, %v3949_v31  ;;  %v3960_v41 = vpop.f32.mrf.mxu1  ;;  %v4155_v12 = vsel %vm4073_vm2, %v4068_v37, 0.0 }
 0x255   :  { %v4001_v59 = vadd.f32 %v3967_v45, %v10127_v11  ;;  %v4819_v10 = vmul.f32 %v8526_v62, %v3967_v45  ;;  %v3961_v52 = vadd.f32 %v3960_v41, %v3698_v32  ;;  %4150 = vadd.xlane.f32.xlu1 %v4149_v47  ;;  %v4152_v5 = vsel %vm4073_vm2, %v4067_v27, 0.0 }
 0x256   :  { %v4030_v50 = vmax.f32 %v3998_v2, 0.0  ;;  %4848 = vst.msk [vmem:[%s9477_s9 + $0xe0] sm:$0xff] %vm4073_vm2, %v4816_v51  ;;  %v4070_v57 = vmul.f32 %v8516_v26, %v4031_v33 }
 0x257   :  { %v4033_v7 = vmax.f32 %v4001_v59, 0.0  ;;  %4851 = vst.msk [vmem:[%s9477_s9 + $0xf8] sm:$0xff] %vm4073_vm2, %v4819_v10  ;;  %v4000_v43 = vadd.f32 %v3961_v52, %v10128_v8  ;;  %v4818_v42 = vmul.f32 %v8526_v62, %v3961_v52  ;;  %4153 = vadd.xlane.f32.xlu0 %v4152_v5 }
 0x258   :  { %v4069_v15 = vmul.f32 %v8516_v26, %v4030_v50  ;;  %v4161_v34 = vsel %vm4073_vm2, %v4070_v57, 0.0 }
 0x259   :  { %v4032_v18 = vmax.f32 %v4000_v43, 0.0  ;;  %4850 = vst.msk [vmem:[%s9477_s9 + $0xf0] sm:$0xff] %vm4073_vm2, %v4818_v42  ;;  %4156 = vadd.xlane.f32.xlu1 %v4155_v12  ;;  %v4072_v3 = vmul.f32 %v8516_v26, %v4033_v7 }
 0x25a   :  { %v4158_v13 = vsel %vm4073_vm2, %v4069_v15, 0.0 }
 0x25b   :  { %4159 = vadd.xlane.f32.xlu0 %v4158_v13  ;;  %v4071_v62 = vmul.f32 %v8516_v26, %v4032_v18  ;;  %v4167_v61 = vsel %vm4073_vm2, %v4072_v3, 0.0 }
 0x25d   :  { %4162 = vadd.xlane.f32.xlu1 %v4161_v34  ;;  %v4164_v55 = vsel %vm4073_vm2, %v4071_v62, 0.0 }
 0x25f   :  { %4165 = vadd.xlane.f32.xlu0 %v4164_v55 }
 0x261   :  { %4168 = vadd.xlane.f32.xlu1 %v4167_v61 }
 0x2aa   :  { %v4079_v17 = vpop.xlane.xlu0 %4078 }
 0x2ab   :  { %v8874_v25 = vadd.f32 %v8871_v35, %v4079_v17 }
 0x2ad   :  { %v4237_v26 = vand.u32 2147483647, %v8874_v25  ;;  %v4205_v43 = vmax.f32 %v8874_v25, 0.0 }
 0x2ae   :  { %v4085_v29 = vpop.xlane.xlu1 %4084 }
 0x2af   :  { %v4269_v53 = vsub.f32 0.0, %v4237_v26  ;;  %v8878_v23 = vadd.f32 %v8871_v35, %v4085_v29  ;;  %v4076_v30 = vpop.xlane.xlu0 %4075 }
 0x2b0   :  { %v8881_v39 = vadd.f32 %v8871_v35, %v4076_v30 }
 0x2b1   :  { %v4302_v9 = vmul.f32 1.442695, %v4269_v53  ;;  %v4239_v63 = vand.u32 2147483647, %v8878_v23  ;;  %v4207_v18 = vmax.f32 %v8878_v23, 0.0 }
 0x2b2   :  { %v4236_v40 = vand.u32 2147483647, %v8881_v39  ;;  %v4082_v19 = vpop.xlane.xlu1 %4081  ;;  %v4204_v13 = vmax.f32 %v8881_v39, 0.0 }
 0x2b3   :  { %6007 = vpow2.f32 %v4302_v9  ;;  %v4271_v60 = vsub.f32 0.0, %v4239_v63  ;;  %v8886_v1 = vadd.f32 %v8871_v35, %v4082_v19 }
 0x2b4   :  { %v4268_v14 = vsub.f32 0.0, %v4236_v40  ;;  %v4088_v4 = vpop.xlane.xlu0 %4087 }
 0x2b5   :  { %v4306_v22 = vmul.f32 1.442695, %v4271_v60  ;;  %v4238_v58 = vand.u32 2147483647, %v8886_v1  ;;  %v8890_v36 = vadd.f32 %v8871_v35, %v4088_v4  ;;  %v4206_v34 = vmax.f32 %v8886_v1, 0.0 }
 0x2b6   :  { %v4300_v24 = vmul.f32 1.442695, %v4268_v14  ;;  %v4091_v56 = vpop.xlane.xlu1 %4090 }
 0x2b7   :  { %6009 = vpow2.f32 %v4306_v22  ;;  %v4270_v46 = vsub.f32 0.0, %v4238_v58  ;;  %v4240_v0 = vand.u32 2147483647, %v8890_v36  ;;  %v8894_v20 = vadd.f32 %v8871_v35, %v4091_v56 }
 0x2b8   :  { %6011 = vpow2.f32 %v4300_v24  ;;  %v4094_v6 = vpop.xlane.xlu0 %4093  ;;  %v4208_v53 = vmax.f32 %v8890_v36, 0.0 }
 0x2b9   :  { %v4304_v16 = vmul.f32 1.442695, %v4270_v46  ;;  %v4272_v49 = vsub.f32 0.0, %v4240_v0  ;;  %v8897_v21 = vadd.f32 %v8871_v35, %v4094_v6  ;;  %v4241_v44 = vand.u32 2147483647, %v8894_v20 }
 0x2ba   :  { %v4097_v28 = vpop.xlane.xlu1 %4096  ;;  %v4209_v30 = vmax.f32 %v8894_v20, 0.0 }
 0x2bb   :  { %6013 = vpow2.f32 %v4304_v16  ;;  %v4308_v31 = vmul.f32 1.442695, %v4272_v49  ;;  %v4242_v48 = vand.u32 2147483647, %v8897_v21  ;;  %v4273_v38 = vsub.f32 0.0, %v4241_v44 }
 0x2bc   :  { %v8902_v32 = vadd.f32 %v8871_v35, %v4097_v28  ;;  %v4100_v45 = vpop.xlane.xlu0 %4099  ;;  %v4210_v9 = vmax.f32 %v8897_v21, 0.0 }
 0x2bd   :  { %6015 = vpow2.f32 %v4308_v31  ;;  %v4274_v47 = vsub.f32 0.0, %v4242_v48  ;;  %v8905_v27 = vadd.f32 %v8871_v35, %v4100_v45  ;;  %v4310_v33 = vmul.f32 1.442695, %v4273_v38 }
 0x2be   :  { %v4243_v54 = vand.u32 2147483647, %v8902_v32  ;;  %v4103_v2 = vpop.xlane.xlu1 %4102  ;;  %v4211_v6 = vmax.f32 %v8902_v32, 0.0 }
 0x2bf   :  { %v4312_v51 = vmul.f32 1.442695, %v4274_v47  ;;  %v4244_v41 = vand.u32 2147483647, %v8905_v27  ;;  %v8910_v37 = vadd.f32 %v8871_v35, %v4103_v2  ;;  %6017 = vpow2.f32 %v4310_v33 }
 0x2c0   :  { %v6008_v11 = vpop.eup %6007  ;;  %v4275_v59 = vsub.f32 0.0, %v4243_v54  ;;  %v4106_v7 = vpop.xlane.xlu0 %4105  ;;  %v4212_v16 = vmax.f32 %v8905_v27, 0.0 }
 0x2c1   :  { %v4373_v10 = vadd.f32 1.0, %v6008_v11  ;;  %6019 = vpow2.f32 %v4312_v51  ;;  %v4276_v5 = vsub.f32 0.0, %v4244_v41  ;;  %v4245_v50 = vand.u32 2147483647, %v8910_v37 }
 0x2c2   :  { %v4314_v52 = vmul.f32 1.442695, %v4275_v59  ;;  %v4376_v57 = vmul.f32 -0.5, %v6008_v11  ;;  %v8918_v55 = vadd.f32 %v8871_v35, %v4106_v7  ;;  %v4379_v40 = vand.u32 2147483647, %v6008_v11  ;;  %v4109_v14 = vpop.xlane.xlu1 %4108 }
 0x2c3   :  { %6021 = vlog2.f32 %v4373_v10  ;;  %v4316_v42 = vmul.f32 1.442695, %v4276_v5  ;;  %v4277_v12 = vsub.f32 0.0, %v4245_v50  ;;  %v8930_v44 = vadd.f32 %v8871_v35, %v4109_v14 }
 0x2c4   :  { %v6010_v8 = vpop.eup %6009  ;;  %6023 = vpow2.f32 %v4314_v52  ;;  %v4377_v63 = vadd.f32 1.0, %v4376_v57  ;;  %v4246_v24 = vand.u32 2147483647, %v8918_v55  ;;  %vm8934_vm4 = vcmp.lt.f32.partialorder %v4379_v40, 0.0004427343  ;;  %v4112_v10 = vpop.xlane.xlu0 %4111 }
 0x2c5   :  { %v6012_v15 = vpop.eup %6011  ;;  %v4391_v3 = vadd.f32 1.0, %v6010_v8  ;;  %6025 = vpow2.f32 %v4316_v42  ;;  %v4394_v61 = vmul.f32 -0.5, %v6010_v8  ;;  %v4318_v26 = vmul.f32 1.442695, %v4277_v12 }
 0x2c6   :  { %v4364_v62 = vadd.f32 1.0, %v6012_v15  ;;  %v4367_v17 = vmul.f32 -0.5, %v6012_v15  ;;  %v4397_v22 = vand.u32 2147483647, %v6010_v8  ;;  %v4370_v58 = vand.u32 2147483647, %v6012_v15  ;;  %v4115_v42 = vpop.xlane.xlu1 %4114 }
 0x2c7   :  { %6027 = vlog2.f32 %v4391_v3  ;;  %v4395_v56 = vadd.f32 1.0, %v4394_v61  ;;  %v4278_v49 = vsub.f32 0.0, %v4246_v24  ;;  %v4378_v31 = vmul.f32 %v6008_v11, %v4377_v63 }
 0x2c8   :  { %v6014_v29 = vpop.eup %6013  ;;  %6029 = vlog2.f32 %v4364_v62  ;;  %v4368_v46 = vadd.f32 1.0, %v4367_v17  ;;  %vm8940_vm5 = vcmp.lt.f32.partialorder %v4397_v22, 0.0004427343  ;;  %vm8946_vm6 = vcmp.lt.f32.partialorder %v4370_v58, 0.0004427343  ;;  %v4118_v47 = vpop.xlane.xlu0 %4117 }
 0x2c9   :  { %v4382_v19 = vadd.f32 1.0, %v6014_v29  ;;  %v4385_v60 = vmul.f32 -0.5, %v6014_v29  ;;  %6031 = vpow2.f32 %v4318_v26  ;;  %v4388_v33 = vand.u32 2147483647, %v6014_v29 }
 0x2ca   :  { %v8923_v4 = vpop.eup %6015  ;;  %v4396_v51 = vmul.f32 %v6010_v8, %v4395_v56  ;;  %v4369_v41 = vmul.f32 %v6012_v15, %v4368_v46  ;;  %v4320_v50 = vmul.f32 1.442695, %v4278_v49  ;;  %v4247_v7 = vand.u32 2147483647, %v8930_v44 }
 0x2cb   :  { %6033 = vlog2.f32 %v4382_v19  ;;  %v4400_v0 = vadd.f32 1.0, %v8923_v4  ;;  %v4386_v38 = vadd.f32 1.0, %v4385_v60  ;;  %v4403_v54 = vmul.f32 -0.5, %v8923_v4 }
 0x2cc   :  { %v8932_v28 = vpop.eup %6017  ;;  %v4406_v5 = vand.u32 2147483647, %v8923_v4  ;;  %vm8956_vm7 = vcmp.lt.f32.partialorder %v4388_v33, 0.0004427343  ;;  %v8963_v26 = vadd.f32 %v8871_v35, %v4112_v10  ;;  %v8971_v19 = vadd.f32 %v8871_v35, %v4115_v42 }
 0x2cd   :  { %6035 = vlog2.f32 %v4400_v0  ;;  %v4409_v2 = vadd.f32 1.0, %v8932_v28  ;;  %v4387_v8 = vmul.f32 %v6014_v29, %v4386_v38  ;;  %v4412_v15 = vmul.f32 -0.5, %v8932_v28 }
 0x2ce   :  { %v8938_v45 = vpop.eup %6019  ;;  %v4404_v62 = vadd.f32 1.0, %v4403_v54  ;;  %v4415_v40 = vand.u32 2147483647, %v8932_v28  ;;  %vm8975_vm8 = vcmp.lt.f32.partialorder %v4406_v5, 0.0004427343  ;;  %v4279_v49 = vsub.f32 0.0, %v4247_v7 }
 0x2cf   :  { %v4418_v59 = vadd.f32 1.0, %v8938_v45  ;;  %6037 = vlog2.f32 %v4409_v2  ;;  %v4421_v61 = vmul.f32 -0.5, %v8938_v45  ;;  %v4413_v46 = vadd.f32 1.0, %v4412_v15 }
 0x2d0   :  { %v6022_v52 = vpop.eup %6021  ;;  %v4424_v0 = vand.u32 2147483647, %v8938_v45  ;;  %vm8990_vm9 = vcmp.lt.f32.partialorder %v4415_v40, 0.0004427343  ;;  %v4322_v2 = vmul.f32 1.442695, %v4279_v49 }
 0x2d1   :  { %v8953_v12 = vpop.eup %6023  ;;  %v4375_v57 = vmul.f32 0.6931472, %v6022_v52  ;;  %6039 = vlog2.f32 %v4418_v59  ;;  %v4414_v7 = vmul.f32 %v8932_v28, %v4413_v46  ;;  %v4248_v39 = vand.u32 2147483647, %v8963_v26 }
 0x2d2   :  { %v4427_v17 = vadd.f32 1.0, %v8953_v12  ;;  %v8965_v63 = vpop.eup %6025  ;;  %6041 = vpow2.f32 %v4320_v50  ;;  %v4430_v54 = vmul.f32 -0.5, %v8953_v12  ;;  %v4433_v52 = vand.u32 2147483647, %v8953_v12 }
 0x2d3   :  { %v4381_v29 = vsel %vm8934_vm4, %v4378_v31, %v4375_v57  ;;  %v4436_v58 = vadd.f32 1.0, %v8965_v63  ;;  %v4422_v31 = vadd.f32 1.0, %v4421_v61  ;;  %v4439_v42 = vmul.f32 -0.5, %v8965_v63 }
 0x2d4   :  { %v6028_v60 = vpop.eup %6027  ;;  %v4653_v14 = vadd.f32 %v4381_v29, %v4205_v43  ;;  %6043 = vlog2.f32 %v4427_v17  ;;  %v4405_v43 = vmul.f32 %v8923_v4, %v4404_v62  ;;  %vm9010_vm10 = vcmp.lt.f32.partialorder %v4424_v0, 0.0004427343 }
 0x2d5   :  { %v6030_v24 = vpop.eup %6029  ;;  %v4393_v56 = vmul.f32 0.6931472, %v6028_v60  ;;  %6045 = vlog2.f32 %v4436_v58  ;;  %v4423_v23 = vmul.f32 %v8938_v45, %v4422_v31  ;;  %v4431_v11 = vadd.f32 1.0, %v4430_v54  ;;  %v4124_v58 = vpop.xlane.xlu0 %4123 }
 0x2d6   :  { %4686 = vst.msk [vmem:[%s9479_s10 + $0x8] sm:$0xff] %vm4684_vm3, %v4653_v14  ;;  %v4366_v25 = vmul.f32 0.6931472, %v6030_v24  ;;  %v8986_v48 = vpop.eup %6031  ;;  %vm9023_vm11 = vcmp.lt.f32.partialorder %v4433_v52, 0.0004427343  ;;  %v4280_v62 = vsub.f32 0.0, %v4248_v39 }
 0x2d7   :  { %v4399_v38 = vsel %vm8940_vm5, %v4396_v51, %v4393_v56  ;;  %v4445_v5 = vadd.f32 1.0, %v8986_v48  ;;  %v4249_v61 = vand.u32 2147483647, %v8971_v19  ;;  %v4440_v40 = vadd.f32 1.0, %v4439_v42 }
 0x2d8   :  { %v6034_v59 = vpop.eup %6033  ;;  %v4655_v10 = vadd.f32 %v4399_v38, %v4207_v18  ;;  %v4372_v4 = vsel %vm8946_vm6, %v4369_v41, %v4366_v25  ;;  %v4324_v14 = vmul.f32 1.442695, %v4280_v62  ;;  %v4432_v56 = vmul.f32 %v8953_v12, %v4431_v11 }
 0x2d9   :  { %v4652_v51 = vadd.f32 %v4372_v4, %v4204_v13  ;;  %v4384_v50 = vmul.f32 0.6931472, %v6034_v59  ;;  %6047 = vlog2.f32 %v4445_v5  ;;  %v4121_v13 = vpop.xlane.xlu1 %4120  ;;  %v4281_v22 = vsub.f32 0.0, %v4249_v61 }
 0x2da   :  { %v6036_v57 = vpop.eup %6035  ;;  %4688 = vst.msk [vmem:[%s9479_s10 + $0x18] sm:$0xff] %vm4684_vm3, %v4655_v10  ;;  %6049 = vpow2.f32 %v4322_v2  ;;  %v9034_v3 = vadd.f32 %v8871_v35, %v4121_v13  ;;  %v4448_v46 = vmul.f32 -0.5, %v8986_v48  ;;  %v4442_v54 = vand.u32 2147483647, %v8965_v63 }
 0x2db   :  { %4685 = vst.msk [vmem:[%s9479_s10] sm:$0xff] %vm4684_vm3, %v4652_v51  ;;  %v4390_v28 = vsel %vm8956_vm7, %v4387_v8, %v4384_v50  ;;  %v4402_v41 = vmul.f32 0.6931472, %v6036_v57  ;;  %v9031_v8 = vadd.f32 %v8871_v35, %v4118_v47  ;;  %6051 = vpow2.f32 %v4324_v14  ;;  %v4130_v47 = vpop.xlane.xlu0 %4129 }
 0x2dc   :  { %v4654_v45 = vadd.f32 %v4390_v28, %v4206_v34  ;;  %v6038_v17 = vpop.eup %6037  ;;  %v4251_v25 = vand.u32 2147483647, %v9034_v3  ;;  %v4441_v10 = vmul.f32 %v8965_v63, %v4440_v40  ;;  %v4451_v20 = vand.u32 2147483647, %v8986_v48 }
 0x2dd   :  { %v4408_v29 = vsel %vm8975_vm8, %v4405_v43, %v4402_v41  ;;  %v4411_v60 = vmul.f32 0.6931472, %v6038_v17  ;;  %v4250_v0 = vand.u32 2147483647, %v9031_v8  ;;  %v4127_v43 = vpop.xlane.xlu1 %4126  ;;  %v4449_v63 = vadd.f32 1.0, %v4448_v46 }
 0x2de   :  { %v6040_v1 = vpop.eup %6039  ;;  %4687 = vst.msk [vmem:[%s9479_s10 + $0x10] sm:$0xff] %vm4684_vm3, %v4654_v45  ;;  %v4656_v34 = vadd.f32 %v4408_v29, %v4208_v53  ;;  %v4326_v53 = vmul.f32 1.442695, %v4281_v22  ;;  %v4283_v52 = vsub.f32 0.0, %v4251_v25  ;;  %v9075_v5 = vadd.f32 %v8871_v35, %v4124_v58 }
 0x2df   :  { %v4420_v24 = vmul.f32 0.6931472, %v6040_v1  ;;  %v9045_v49 = vpop.eup %6041  ;;  %v4417_v36 = vsel %vm8990_vm9, %v4414_v7, %v4411_v60  ;;  %vm4443_vm12 = vcmp.lt.f32.partialorder %v4442_v54, 0.0004427343  ;;  %v4213_v57 = vmax.f32 %v8910_v37, 0.0  ;;  %v4136_v29 = vpop.xlane.xlu0 %4135 }
 0x2e0   :  { %4689 = vst.msk [vmem:[%s9479_s10 + $0x20] sm:$0xff] %vm4684_vm3, %v4656_v34  ;;  %v4657_v31 = vadd.f32 %v4417_v36, %v4209_v30  ;;  %v4454_v2 = vadd.f32 1.0, %v9045_v49  ;;  %6053 = vpow2.f32 %v4326_v53  ;;  %v4282_v30 = vsub.f32 0.0, %v4250_v0 }
 0x2e1   :  { %v6044_v12 = vpop.eup %6043  ;;  %v4426_v38 = vsel %vm9010_vm10, %v4423_v23, %v4420_v24  ;;  %v4330_v7 = vmul.f32 1.442695, %v4283_v52  ;;  %v4252_v23 = vand.u32 2147483647, %v9075_v5  ;;  %v9082_v18 = vadd.f32 %v8871_v35, %v4127_v43  ;;  %v4133_v39 = vpop.xlane.xlu1 %4132 }
 0x2e2   :  { %v4658_v33 = vadd.f32 %v4426_v38, %v4210_v9  ;;  %v4429_v59 = vmul.f32 0.6931472, %v6044_v12  ;;  %v6046_v4 = vpop.eup %6045  ;;  %4690 = vst.msk [vmem:[%s9479_s10 + $0x28] sm:$0xff] %vm4684_vm3, %v4657_v31  ;;  %6055 = vlog2.f32 %v4454_v2  ;;  %v4328_v50 = vmul.f32 1.442695, %v4282_v30 }
 0x2e3   :  { %v4438_v9 = vmul.f32 0.6931472, %v6046_v4  ;;  %vm9090_vm13 = vcmp.lt.f32.partialorder %v4451_v20, 0.0004427343  ;;  %v9095_v37 = vadd.f32 %v8871_v35, %v4130_v47  ;;  %v4450_v11 = vmul.f32 %v8986_v48, %v4449_v63 }
 0x2e4   :  { %4691 = vst.msk [vmem:[%s9479_s10 + $0x30] sm:$0xff] %vm4684_vm3, %v4658_v33  ;;  %v4435_v21 = vsel %vm9023_vm11, %v4432_v56, %v4429_v59  ;;  %6057 = vpow2.f32 %v4328_v50  ;;  %v4284_v45 = vsub.f32 0.0, %v4252_v23  ;;  %v4457_v27 = vmul.f32 -0.5, %v9045_v49 }
 0x2e5   :  { %v4659_v51 = vadd.f32 %v4435_v21, %v4211_v6  ;;  %v4444_v42 = vsel %vm4443_vm12, %v4441_v10, %v4438_v9  ;;  %6059 = vpow2.f32 %v4330_v7  ;;  %v4253_v15 = vand.u32 2147483647, %v9082_v18  ;;  %v4139_v4 = vpop.xlane.xlu1 %4138 }
 0x2e6   :  { %v6048_v13 = vpop.eup %6047  ;;  %v4660_v32 = vadd.f32 %v4444_v42, %v4212_v16  ;;  %v9108_v62 = vadd.f32 %v8871_v35, %v4133_v39  ;;  %v4332_v48 = vmul.f32 1.442695, %v4284_v45  ;;  %v4254_v17 = vand.u32 2147483647, %v9095_v37 }
 0x2e7   :  { %4692 = vst.msk [vmem:[%s9479_s10 + $0x38] sm:$0xff] %vm4684_vm3, %v4659_v51  ;;  %v9097_v28 = vpop.eup %6049  ;;  %v4447_v41 = vmul.f32 0.6931472, %v6048_v13  ;;  %v4214_v1 = vmax.f32 %v8918_v55, 0.0  ;;  %v4215_v34 = vmax.f32 %v8930_v44, 0.0  ;;  %v4285_v14 = vsub.f32 0.0, %v4253_v15 }
 0x2e8   :  { %4693 = vst.msk [vmem:[%s9479_s10 + $0x40] sm:$0xff] %vm4684_vm3, %v4660_v32  ;;  %v4463_v16 = vadd.f32 1.0, %v9097_v28  ;;  %v4460_v60 = vand.u32 2147483647, %v9045_v49  ;;  %v4286_v22 = vsub.f32 0.0, %v4254_v17  ;;  %v9116_v58 = vpop.eup %6051  ;;  %v4458_v24 = vadd.f32 1.0, %v4457_v27 }
 0x2e9   :  { %v4453_v61 = vsel %vm9090_vm13, %v4450_v11, %v4447_v41  ;;  %v4216_v56 = vmax.f32 %v8963_v26, 0.0  ;;  %v4255_v55 = vand.u32 2147483647, %v9108_v62  ;;  %v9125_v46 = vadd.f32 %v8871_v35, %v4136_v29  ;;  %v4142_v41 = vpop.xlane.xlu0 %4141 }
 0x2ea   :  { %v4661_v40 = vadd.f32 %v4453_v61, %v4213_v57  ;;  %6061 = vlog2.f32 %v4463_v16  ;;  %v4472_v0 = vadd.f32 1.0, %v9116_v58  ;;  %v4217_v36 = vmax.f32 %v8971_v19, 0.0 }
 0x2eb   :  { %6063 = vpow2.f32 %v4332_v48  ;;  %v4218_v53 = vmax.f32 %v9031_v8, 0.0  ;;  %v4334_v25 = vmul.f32 1.442695, %v4285_v14  ;;  %v4466_v12 = vmul.f32 -0.5, %v9097_v28 }
 0x2ec   :  { %4694 = vst.msk [vmem:[%s9479_s10 + $0x48] sm:$0xff] %vm4684_vm3, %v4661_v40  ;;  %v4336_v31 = vmul.f32 1.442695, %v4286_v22  ;;  %v4287_v38 = vsub.f32 0.0, %v4255_v55  ;;  %v4256_v54 = vand.u32 2147483647, %v9125_v46  ;;  %6065 = vlog2.f32 %v4472_v0 }
 0x2ed   :  { %v9130_v43 = vpop.eup %6053  ;;  %vm9134_vm14 = vcmp.lt.f32.partialorder %v4460_v60, 0.0004427343  ;;  %v4219_v10 = vmax.f32 %v9034_v3, 0.0  ;;  %v4459_v30 = vmul.f32 %v9045_v49, %v4458_v24  ;;  %v4220_v52 = vmax.f32 %v9075_v5, 0.0 }
 0x2ee   :  { %v4481_v59 = vadd.f32 1.0, %v9130_v43  ;;  %6067 = vpow2.f32 %v4334_v25  ;;  %v4469_v21 = vand.u32 2147483647, %v9097_v28  ;;  %v4338_v9 = vmul.f32 1.442695, %v4287_v38 }
 0x2ef   :  { %v6056_v2 = vpop.eup %6055  ;;  %v4288_v63 = vsub.f32 0.0, %v4256_v54  ;;  %v4467_v51 = vadd.f32 1.0, %v4466_v12  ;;  %v9146_v50 = vadd.f32 %v8871_v35, %v4139_v4  ;;  %v4475_v49 = vmul.f32 -0.5, %v9116_v58  ;;  %v4145_v12 = vpop.xlane.xlu1 %4144 }
 0x2f0   :  { %v4456_v20 = vmul.f32 0.6931472, %v6056_v2  ;;  %6069 = vlog2.f32 %v4481_v59  ;;  %v4478_v39 = vand.u32 2147483647, %v9116_v58  ;;  %v4221_v32 = vmax.f32 %v9082_v18, 0.0 }
 0x2f1   :  { %6071 = vpow2.f32 %v4336_v31  ;;  %v9148_v7 = vpop.eup %6057  ;;  %v4340_v57 = vmul.f32 1.442695, %v4288_v63  ;;  %v4222_v6 = vmax.f32 %v9095_v37, 0.0  ;;  %vm9161_vm15 = vcmp.lt.f32.partialorder %v4469_v21, 0.0004427343 }
 0x2f2   :  { %v4462_v47 = vsel %vm9134_vm14, %v4459_v30, %v4456_v20  ;;  %6073 = vpow2.f32 %v4338_v9  ;;  %v9151_v23 = vpop.eup %6059  ;;  %v4490_v13 = vadd.f32 1.0, %v9148_v7  ;;  %v4484_v45 = vmul.f32 -0.5, %v9130_v43 }
 0x2f3   :  { %v4662_v42 = vadd.f32 %v4462_v47, %v4214_v1  ;;  %v4499_v27 = vadd.f32 1.0, %v9151_v23  ;;  %6075 = vpow2.f32 %v4340_v57  ;;  %v4468_v16 = vmul.f32 %v9097_v28, %v4467_v51 }
 0x2f4   :  { %6077 = vlog2.f32 %v4490_v13  ;;  %v4223_v15 = vmax.f32 %v9108_v62, 0.0  ;;  %v4257_v61 = vand.u32 2147483647, %v9146_v50  ;;  %v4476_v17 = vadd.f32 1.0, %v4475_v49 }
 0x2f5   :  { %4695 = vst.msk [vmem:[%s9479_s10 + $0x50] sm:$0xff] %vm4684_vm3, %v4662_v42  ;;  %6079 = vlog2.f32 %v4499_v27  ;;  %v4224_v29 = vmax.f32 %v9125_v46, 0.0  ;;  %v9172_v40 = vadd.f32 %v8871_v35, %v4142_v41  ;;  %vm9174_vm0 = vcmp.lt.f32.partialorder %v4478_v39, 0.0004427343  ;;  %v4148_v27 = vpop.xlane.xlu0 %4147 }
 0x2f6   :  { %v4493_v28 = vmul.f32 -0.5, %v9148_v7  ;;  %v4289_v22 = vsub.f32 0.0, %v4257_v61  ;;  %v4485_v24 = vadd.f32 1.0, %v4484_v45  ;;  %v4487_v55 = vand.u32 2147483647, %v9130_v43 }
 0x2f7   :  { %v6062_v48 = vpop.eup %6061  ;;  %v4502_v0 = vmul.f32 -0.5, %v9151_v23  ;;  %v4496_v38 = vand.u32 2147483647, %v9148_v7  ;;  %v4505_v59 = vand.u32 2147483647, %v9151_v23  ;;  %v4477_v30 = vmul.f32 %v9116_v58, %v4476_v17 }
 0x2f8   :  { %v6064_v1 = vpop.eup %6063  ;;  %v4465_v60 = vmul.f32 0.6931472, %v6062_v48  ;;  %v4342_v2 = vmul.f32 1.442695, %v4289_v22  ;;  %v4258_v4 = vand.u32 2147483647, %v9172_v40  ;;  %v9190_v9 = vadd.f32 %v8871_v35, %v4145_v12 }
 0x2f9   :  { %v4508_v25 = vadd.f32 1.0, %v6064_v1  ;;  %v4511_v54 = vmul.f32 -0.5, %v6064_v1  ;;  %v6066_v20 = vpop.eup %6065  ;;  %v4494_v21 = vadd.f32 1.0, %v4493_v28  ;;  %vm9199_vm1 = vcmp.lt.f32.partialorder %v4487_v55, 0.0004427343 }
 0x2fa   :  { %v4471_v31 = vsel %vm9161_vm15, %v4468_v16, %v4465_v60  ;;  %v4474_v44 = vmul.f32 0.6931472, %v6066_v20  ;;  %v4503_v58 = vadd.f32 1.0, %v4502_v0  ;;  %vm9203_vm2 = vcmp.lt.f32.partialorder %v4496_v38, 0.0004427343  ;;  %v4151_v60 = vpop.xlane.xlu1 %4150 }
 0x2fb   :  { %v4663_v33 = vadd.f32 %v4471_v31, %v4215_v34  ;;  %6081 = vlog2.f32 %v4508_v25  ;;  %v9192_v63 = vpop.eup %6067  ;;  %v4486_v34 = vmul.f32 %v9130_v43, %v4485_v24  ;;  %v4512_v49 = vadd.f32 1.0, %v4511_v54 }
 0x2fc   :  { %6083 = vpow2.f32 %v4342_v2  ;;  %v4514_v57 = vand.u32 2147483647, %v6064_v1  ;;  %v4517_v39 = vadd.f32 1.0, %v9192_v63  ;;  %v4480_v41 = vsel %vm9174_vm0, %v4477_v30, %v4474_v44 }
 0x2fd   :  { %4696 = vst.msk [vmem:[%s9479_s10 + $0x58] sm:$0xff] %vm4684_vm3, %v4663_v33  ;;  %v6070_v51 = vpop.eup %6069  ;;  %vm9212_vm4 = vcmp.lt.f32.partialorder %v4505_v59, 0.0004427343  ;;  %v4290_v45 = vsub.f32 0.0, %v4258_v4  ;;  %v4664_v61 = vadd.f32 %v4480_v41, %v4216_v56  ;;  %v4495_v48 = vmul.f32 %v9148_v7, %v4494_v21  ;;  %v4154_v4 = vpop.xlane.xlu0 %4153 }
 0x2fe   :  { %v9208_v13 = vpop.eup %6071  ;;  %v4483_v43 = vmul.f32 0.6931472, %v6070_v51  ;;  %6085 = vlog2.f32 %v4517_v39  ;;  %v4259_v17 = vand.u32 2147483647, %v9190_v9  ;;  %v4504_v28 = vmul.f32 %v9151_v23, %v4503_v58  ;;  %v4157_v44 = vpop.xlane.xlu1 %4156 }
 0x2ff   :  { %v9216_v16 = vpop.eup %6073  ;;  %v4520_v22 = vmul.f32 -0.5, %v9192_v63  ;;  %v4526_v24 = vadd.f32 1.0, %v9208_v13  ;;  %4697 = vst.msk [vmem:[%s9479_s10 + $0x60] sm:$0xff] %vm4684_vm3, %v4664_v61  ;;  %v4513_v56 = vmul.f32 %v6064_v1, %v4512_v49  ;;  %vm9235_vm5 = vcmp.lt.f32.partialorder %v4514_v57, 0.0004427343 }
 0x300   :  { %v4489_v14 = vsel %vm9199_vm1, %v4486_v34, %v4483_v43  ;;  %v9227_v55 = vpop.eup %6075  ;;  %v4535_v23 = vadd.f32 1.0, %v9216_v16  ;;  %v4529_v25 = vmul.f32 -0.5, %v9208_v13  ;;  %v4344_v12 = vmul.f32 1.442695, %v4290_v45 }
 0x301   :  { %v4665_v26 = vadd.f32 %v4489_v14, %v4217_v36  ;;  %v6078_v0 = vpop.eup %6077  ;;  %6087 = vlog2.f32 %v4526_v24  ;;  %v9242_v31 = vadd.f32 %v8871_v35, %v4148_v27  ;;  %v4544_v36 = vadd.f32 1.0, %v9227_v55 }
 0x302   :  { %v6080_v38 = vpop.eup %6079  ;;  %v4492_v19 = vmul.f32 0.6931472, %v6078_v0  ;;  %6089 = vlog2.f32 %v4535_v23  ;;  %v4291_v1 = vsub.f32 0.0, %v4259_v17  ;;  %v4521_v2 = vadd.f32 1.0, %v4520_v22  ;;  %v4163_v24 = vpop.xlane.xlu1 %4162 }
 0x303   :  { %4698 = vst.msk [vmem:[%s9479_s10 + $0x68] sm:$0xff] %vm4684_vm3, %v4665_v26  ;;  %v4501_v54 = vmul.f32 0.6931472, %v6080_v38  ;;  %v4523_v33 = vand.u32 2147483647, %v9192_v63  ;;  %v9251_v59 = vadd.f32 %v8871_v35, %v4151_v60  ;;  %v4538_v21 = vmul.f32 -0.5, %v9216_v16  ;;  %v4160_v60 = vpop.xlane.xlu0 %4159 }
 0x304   :  { %v4498_v20 = vsel %vm9203_vm2, %v4495_v48, %v4492_v19  ;;  %v4532_v30 = vand.u32 2147483647, %v9208_v13  ;;  %6091 = vlog2.f32 %v4544_v36  ;;  %v4530_v58 = vadd.f32 1.0, %v4529_v25 }
 0x305   :  { %v4666_v34 = vadd.f32 %v4498_v20, %v4218_v53  ;;  %v4507_v47 = vsel %vm9212_vm4, %v4504_v28, %v4501_v54  ;;  %6093 = vpow2.f32 %v4344_v12  ;;  %v4541_v42 = vand.u32 2147483647, %v9216_v16 }
 0x306   :  { %v4667_v49 = vadd.f32 %v4507_v47, %v4219_v10  ;;  %v4346_v57 = vmul.f32 1.442695, %v4291_v1  ;;  %v4260_v39 = vand.u32 2147483647, %v9242_v31  ;;  %v4522_v53 = vmul.f32 %v9192_v63, %v4521_v2 }
 0x307   :  { %4699 = vst.msk [vmem:[%s9479_s10 + $0x70] sm:$0xff] %vm4684_vm3, %v4666_v34  ;;  %vm9272_vm6 = vcmp.lt.f32.partialorder %v4523_v33, 0.0004427343  ;;  %v4261_v3 = vand.u32 2147483647, %v9251_v59  ;;  %v4539_v11 = vadd.f32 1.0, %v4538_v21  ;;  %v9290_v17 = vadd.f32 %v8871_v35, %v4154_v4 }
 0x308   :  { %v6082_v51 = vpop.eup %6081  ;;  %4700 = vst.msk [vmem:[%s9479_s10 + $0x78] sm:$0xff] %vm4684_vm3, %v4667_v49  ;;  %vm9281_vm7 = vcmp.lt.f32.partialorder %v4532_v30, 0.0004427343  ;;  %v4547_v45 = vmul.f32 -0.5, %v9227_v55  ;;  %6095 = vpow2.f32 %v4346_v57  ;;  %v4292_v61 = vsub.f32 0.0, %v4260_v39 }
 0x309   :  { %v9265_v41 = vpop.eup %6083  ;;  %v4510_v8 = vmul.f32 0.6931472, %v6082_v51  ;;  %v4293_v48 = vsub.f32 0.0, %v4261_v3  ;;  %v4531_v28 = vmul.f32 %v9208_v13, %v4530_v58  ;;  %vm9295_vm8 = vcmp.lt.f32.partialorder %v4541_v42, 0.0004427343  ;;  %v4166_v58 = vpop.xlane.xlu0 %4165 }
 0x30a   :  { %v4553_v63 = vadd.f32 1.0, %v9265_v41  ;;  %v4348_v7 = vmul.f32 1.442695, %v4292_v61  ;;  %v9301_v0 = vadd.f32 %v8871_v35, %v4157_v44  ;;  %v4262_v13 = vand.u32 2147483647, %v9290_v17 }
 0x30b   :  { %v4516_v27 = vsel %vm9235_vm5, %v4513_v56, %v4510_v8  ;;  %v6086_v26 = vpop.eup %6085  ;;  %v4550_v56 = vand.u32 2147483647, %v9227_v55  ;;  %v4350_v23 = vmul.f32 1.442695, %v4293_v48  ;;  %v9309_v25 = vadd.f32 %v8871_v35, %v4160_v60 }
 0x30c   :  { %v4668_v14 = vadd.f32 %v4516_v27, %v4220_v52  ;;  %6097 = vlog2.f32 %v4553_v63  ;;  %v4519_v5 = vmul.f32 0.6931472, %v6086_v26  ;;  %v4548_v52 = vadd.f32 1.0, %v4547_v45 }
 0x30d   :  { %v4540_v12 = vmul.f32 %v9216_v16, %v4539_v11  ;;  %6099 = vpow2.f32 %v4348_v7  ;;  %v4263_v38 = vand.u32 2147483647, %v9301_v0  ;;  %v9314_v19 = vadd.f32 %v8871_v35, %v4163_v24 }
 0x30e   :  { %4701 = vst.msk [vmem:[%s9479_s10 + $0x80] sm:$0xff] %vm4684_vm3, %v4668_v14  ;;  %v6088_v36 = vpop.eup %6087  ;;  %v4525_v1 = vsel %vm9272_vm6, %v4522_v53, %v4519_v5  ;;  %v4556_v54 = vmul.f32 -0.5, %v9265_v41  ;;  %6101 = vpow2.f32 %v4350_v23  ;;  %v4294_v2 = vsub.f32 0.0, %v4262_v13 }
 0x30f   :  { %v6090_v33 = vpop.eup %6089  ;;  %v4669_v4 = vadd.f32 %v4525_v1, %v4221_v32  ;;  %v4528_v20 = vmul.f32 0.6931472, %v6088_v36  ;;  %v4295_v16 = vsub.f32 0.0, %v4263_v38  ;;  %v4264_v30 = vand.u32 2147483647, %v9309_v25 }
 0x310   :  { %v4537_v21 = vmul.f32 0.6931472, %v6090_v33  ;;  %v4549_v44 = vmul.f32 %v9227_v55, %v4548_v52  ;;  %vm9323_vm9 = vcmp.lt.f32.partialorder %v4550_v56, 0.0004427343  ;;  %v4352_v47 = vmul.f32 1.442695, %v4294_v2 }
 0x311   :  { %v6092_v51 = vpop.eup %6091  ;;  %4702 = vst.msk [vmem:[%s9479_s10 + $0x88] sm:$0xff] %vm4684_vm3, %v4669_v4  ;;  %v4534_v18 = vsel %vm9281_vm7, %v4531_v28, %v4528_v20  ;;  %v4354_v32 = vmul.f32 1.442695, %v4295_v16  ;;  %v4296_v49 = vsub.f32 0.0, %v4264_v30  ;;  %v4265_v42 = vand.u32 2147483647, %v9314_v19  ;;  %v4169_v28 = vpop.xlane.xlu1 %4168 }
 0x312   :  { %v6094_v55 = vpop.eup %6093  ;;  %v4670_v57 = vadd.f32 %v4534_v18, %v4222_v6  ;;  %v4543_v39 = vsel %vm9295_vm8, %v4540_v12, %v4537_v21  ;;  %v4546_v8 = vmul.f32 0.6931472, %v6092_v51  ;;  %6103 = vpow2.f32 %v4352_v47 }
 0x313   :  { %v4671_v53 = vadd.f32 %v4543_v39, %v4223_v15  ;;  %v4557_v43 = vadd.f32 1.0, %v4556_v54  ;;  %v4562_v3 = vadd.f32 1.0, %v6094_v55  ;;  %v9341_v10 = vadd.f32 %v8871_v35, %v4166_v58 }
 0x314   :  { %4703 = vst.msk [vmem:[%s9479_s10 + $0x90] sm:$0xff] %vm4684_vm3, %v4670_v57  ;;  %v4552_v37 = vsel %vm9323_vm9, %v4549_v44, %v4546_v8  ;;  %6105 = vpow2.f32 %v4354_v32  ;;  %v4356_v6 = vmul.f32 1.442695, %v4296_v49  ;;  %v4297_v11 = vsub.f32 0.0, %v4265_v42 }
 0x315   :  { %v6096_v45 = vpop.eup %6095  ;;  %4704 = vst.msk [vmem:[%s9479_s10 + $0x98] sm:$0xff] %vm4684_vm3, %v4671_v53  ;;  %v4672_v62 = vadd.f32 %v4552_v37, %v4224_v29  ;;  %v4559_v15 = vand.u32 2147483647, %v9265_v41  ;;  %6107 = vlog2.f32 %v4562_v3  ;;  %v4266_v48 = vand.u32 2147483647, %v9341_v10 }
 0x316   :  { %v4571_v63 = vadd.f32 1.0, %v6096_v45  ;;  %6109 = vpow2.f32 %v4356_v6  ;;  %v4358_v61 = vmul.f32 1.442695, %v4297_v11  ;;  %v4558_v14 = vmul.f32 %v9265_v41, %v4557_v43 }
 0x317   :  { %4705 = vst.msk [vmem:[%s9479_s10 + $0xa0] sm:$0xff] %vm4684_vm3, %v4672_v62  ;;  %v4225_v46 = vmax.f32 %v9146_v50, 0.0  ;;  %vm4560_vm10 = vcmp.lt.f32.partialorder %v4559_v15, 0.0004427343  ;;  %v4298_v29 = vsub.f32 0.0, %v4266_v48  ;;  %v4565_v7 = vmul.f32 -0.5, %v6094_v55 }
 0x318   :  { %6111 = vlog2.f32 %v4571_v63  ;;  %v9370_v41 = vadd.f32 %v8871_v35, %v4169_v28  ;;  %v4568_v50 = vand.u32 2147483647, %v6094_v55  ;;  %v4574_v13 = vmul.f32 -0.5, %v6096_v45 }
 0x319   :  { %v6098_v27 = vpop.eup %6097  ;;  %6113 = vpow2.f32 %v4358_v61  ;;  %v4360_v52 = vmul.f32 1.442695, %v4298_v29  ;;  %v4566_v38 = vadd.f32 1.0, %v4565_v7  ;;  %v4226_v35 = vmax.f32 %v9172_v40, 0.0 }
 0x31a   :  { %v4555_v60 = vmul.f32 0.6931472, %v6098_v27  ;;  %v9363_v22 = vpop.eup %6099  ;;  %v4267_v1 = vand.u32 2147483647, %v9370_v41  ;;  %vm9383_vm11 = vcmp.lt.f32.partialorder %v4568_v50, 0.0004427343 }
 0x31b   :  { %v9365_v26 = vpop.eup %6101  ;;  %v4580_v23 = vadd.f32 1.0, %v9363_v22  ;;  %v4575_v4 = vadd.f32 1.0, %v4574_v13  ;;  %v4567_v21 = vmul.f32 %v6094_v55, %v4566_v38  ;;  %v4577_v44 = vand.u32 2147483647, %v6096_v45 }
 0x31c   :  { %v4561_v24 = vsel %vm4560_vm10, %v4558_v14, %v4555_v60  ;;  %v4589_v5 = vadd.f32 1.0, %v9365_v26  ;;  %v4583_v34 = vmul.f32 -0.5, %v9363_v22  ;;  %v4592_v47 = vmul.f32 -0.5, %v9365_v26 }
 0x31d   :  { %v4673_v56 = vadd.f32 %v4561_v24, %v4225_v46  ;;  %6115 = vlog2.f32 %v4580_v23  ;;  %v4299_v58 = vsub.f32 0.0, %v4267_v1  ;;  %v4227_v32 = vmax.f32 %v9190_v9, 0.0 }
 0x31e   :  { %6117 = vlog2.f32 %v4589_v5  ;;  %v4576_v55 = vmul.f32 %v6096_v45, %v4575_v4  ;;  %vm4578_vm12 = vcmp.lt.f32.partialorder %v4577_v44, 0.0004427343  ;;  %v4584_v39 = vadd.f32 1.0, %v4583_v34 }
 0x31f   :  { %4706 = vst.msk [vmem:[%s9479_s10 + $0xa8] sm:$0xff] %vm4684_vm3, %v4673_v56  ;;  %v9376_v12 = vpop.eup %6103  ;;  %6119 = vpow2.f32 %v4360_v52  ;;  %v4586_v8 = vand.u32 2147483647, %v9363_v22  ;;  %v4593_v3 = vadd.f32 1.0, %v4592_v47  ;;  %v4362_v37 = vmul.f32 1.442695, %v4299_v58 }
 0x320   :  { %v4598_v36 = vadd.f32 1.0, %v9376_v12  ;;  %v4601_v9 = vmul.f32 -0.5, %v9376_v12  ;;  %v4595_v11 = vand.u32 2147483647, %v9365_v26  ;;  %v4228_v62 = vmax.f32 %v9242_v31, 0.0 }
 0x321   :  { %v9380_v54 = vpop.eup %6105  ;;  %v4585_v61 = vmul.f32 %v9363_v22, %v4584_v39  ;;  %vm4587_vm13 = vcmp.lt.f32.partialorder %v4586_v8, 0.0004427343  ;;  %v4229_v48 = vmax.f32 %v9251_v59, 0.0  ;;  %v4594_v31 = vmul.f32 %v9365_v26, %v4593_v3 }
 0x322   :  { %v6108_v2 = vpop.eup %6107  ;;  %6121 = vlog2.f32 %v4598_v36  ;;  %v4607_v20 = vadd.f32 1.0, %v9380_v54  ;;  %v4610_v15 = vmul.f32 -0.5, %v9380_v54  ;;  %v4602_v46 = vadd.f32 1.0, %v4601_v9 }
 0x323   :  { %v9388_v16 = vpop.eup %6109  ;;  %v4564_v30 = vmul.f32 0.6931472, %v6108_v2  ;;  %vm4596_vm14 = vcmp.lt.f32.partialorder %v4595_v11, 0.0004427343  ;;  %v4604_v24 = vand.u32 2147483647, %v9376_v12 }
 0x324   :  { %6123 = vlog2.f32 %v4607_v20  ;;  %v4616_v40 = vadd.f32 1.0, %v9388_v16  ;;  %v4619_v29 = vmul.f32 -0.5, %v9388_v16  ;;  %v4611_v22 = vadd.f32 1.0, %v4610_v15 }
 0x325   :  { %v6112_v51 = vpop.eup %6111  ;;  %v4570_v18 = vsel %vm9383_vm11, %v4567_v21, %v4564_v30  ;;  %v4613_v59 = vand.u32 2147483647, %v9380_v54  ;;  %v4603_v13 = vmul.f32 %v9376_v12, %v4602_v46  ;;  %v4230_v1 = vmax.f32 %v9290_v17, 0.0 }
 0x326   :  { %v9396_v49 = vpop.eup %6113  ;;  %v4674_v42 = vadd.f32 %v4570_v18, %v4226_v35  ;;  %v4573_v57 = vmul.f32 0.6931472, %v6112_v51  ;;  %6125 = vlog2.f32 %v4616_v40  ;;  %v4620_v38 = vadd.f32 1.0, %v4619_v29 }
 0x327   :  { %v4625_v53 = vadd.f32 1.0, %v9396_v49  ;;  %v4628_v50 = vmul.f32 -0.5, %v9396_v49  ;;  %vm4605_vm15 = vcmp.lt.f32.partialorder %v4604_v24, 0.0004427343  ;;  %v4622_v35 = vand.u32 2147483647, %v9388_v16 }
 0x328   :  { %4707 = vst.msk [vmem:[%s9479_s10 + $0xb0] sm:$0xff] %vm4684_vm3, %v4674_v42  ;;  %v4579_v43 = vsel %vm4578_vm12, %v4576_v55, %v4573_v57  ;;  %v4612_v4 = vmul.f32 %v9380_v54, %v4611_v22  ;;  %v4231_v12 = vmax.f32 %v9301_v0, 0.0  ;;  %vm4614_vm0 = vcmp.lt.f32.partialorder %v4613_v59, 0.0004427343 }
 0x329   :  { %v4675_v6 = vadd.f32 %v4579_v43, %v4227_v32  ;;  %6127 = vlog2.f32 %v4625_v53  ;;  %v4629_v21 = vadd.f32 1.0, %v4628_v50  ;;  %v4621_v47 = vmul.f32 %v9388_v16, %v4620_v38 }
 0x32a   :  { %v6116_v45 = vpop.eup %6115  ;;  %6129 = vpow2.f32 %v4362_v37  ;;  %v4631_v40 = vand.u32 2147483647, %v9396_v49  ;;  %v4232_v54 = vmax.f32 %v9309_v25, 0.0  ;;  %vm4623_vm1 = vcmp.lt.f32.partialorder %v4622_v35, 0.0004427343 }
 0x32b   :  { %v6118_v63 = vpop.eup %6117  ;;  %4708 = vst.msk [vmem:[%s9479_s10 + $0xb8] sm:$0xff] %vm4684_vm3, %v4675_v6  ;;  %v4582_v27 = vmul.f32 0.6931472, %v6116_v45  ;;  %v4630_v42 = vmul.f32 %v9396_v49, %v4629_v21  ;;  %v4233_v57 = vmax.f32 %v9314_v19, 0.0  ;;  %v4234_v3 = vmax.f32 %v9341_v10, 0.0 }
 0x32c   :  { %v9414_v60 = vpop.eup %6119  ;;  %v4591_v14 = vmul.f32 0.6931472, %v6118_v63  ;;  %vm4632_vm2 = vcmp.lt.f32.partialorder %v4631_v40, 0.0004427343 }
 0x32d   :  { %v4588_v28 = vsel %vm4587_vm13, %v4585_v61, %v4582_v27  ;;  %v4634_v56 = vadd.f32 1.0, %v9414_v60  ;;  %v4637_v58 = vmul.f32 -0.5, %v9414_v60  ;;  %v4640_v53 = vand.u32 2147483647, %v9414_v60 }
 0x32e   :  { %v4676_v7 = vadd.f32 %v4588_v28, %v4228_v62  ;;  %v4597_v23 = vsel %vm4596_vm14, %v4594_v31, %v4591_v14  ;;  %v4235_v27 = vmax.f32 %v9370_v41, 0.0 }
 0x32f   :  { %v6122_v5 = vpop.eup %6121  ;;  %v4677_v52 = vadd.f32 %v4597_v23, %v4229_v48  ;;  %6131 = vlog2.f32 %v4634_v56  ;;  %v4638_v39 = vadd.f32 1.0, %v4637_v58  ;;  %vm4641_vm4 = vcmp.lt.f32.partialorder %v4640_v53, 0.0004427343 }
 0x330   :  { %4709 = vst.msk [vmem:[%s9479_s10 + $0xc0] sm:$0xff] %vm4684_vm3, %v4676_v7  ;;  %v4600_v26 = vmul.f32 0.6931472, %v6122_v5 }
 0x331   :  { %v6124_v36 = vpop.eup %6123  ;;  %4710 = vst.msk [vmem:[%s9479_s10 + $0xc8] sm:$0xff] %vm4684_vm3, %v4677_v52  ;;  %v4639_v49 = vmul.f32 %v9414_v60, %v4638_v39 }
 0x332   :  { %v4606_v2 = vsel %vm4605_vm15, %v4603_v13, %v4600_v26  ;;  %v4609_v33 = vmul.f32 0.6931472, %v6124_v36 }
 0x333   :  { %v6126_v20 = vpop.eup %6125  ;;  %v4678_v30 = vadd.f32 %v4606_v2, %v4230_v1 }
 0x334   :  { %v4615_v44 = vsel %vm4614_vm0, %v4612_v4, %v4609_v33  ;;  %v4618_v34 = vmul.f32 0.6931472, %v6126_v20 }
 0x335   :  { %4711 = vst.msk [vmem:[%s9479_s10 + $0xd0] sm:$0xff] %vm4684_vm3, %v4678_v30  ;;  %v4679_v17 = vadd.f32 %v4615_v44, %v4231_v12 }
 0x336   :  { %v6128_v0 = vpop.eup %6127  ;;  %v4624_v51 = vsel %vm4623_vm1, %v4621_v47, %v4618_v34 }
 0x337   :  { %v6130_v18 = vpop.eup %6129  ;;  %4712 = vst.msk [vmem:[%s9479_s10 + $0xd8] sm:$0xff] %vm4684_vm3, %v4679_v17  ;;  %v4680_v16 = vadd.f32 %v4624_v51, %v4232_v54  ;;  %v4627_v32 = vmul.f32 0.6931472, %v6128_v0 }
 0x338   :  { %v4643_v55 = vadd.f32 1.0, %v6130_v18  ;;  %v4646_v6 = vmul.f32 -0.5, %v6130_v18  ;;  %v4649_v45 = vand.u32 2147483647, %v6130_v18 }
 0x339   :  { %4713 = vst.msk [vmem:[%s9479_s10 + $0xe0] sm:$0xff] %vm4684_vm3, %v4680_v16  ;;  %v4633_v25 = vsel %vm4632_vm2, %v4630_v42, %v4627_v32 }
 0x33a   :  { %v4681_v8 = vadd.f32 %v4633_v25, %v4233_v57  ;;  %6133 = vlog2.f32 %v4643_v55  ;;  %v4647_v11 = vadd.f32 1.0, %v4646_v6  ;;  %vm4650_vm5 = vcmp.lt.f32.partialorder %v4649_v45, 0.0004427343 }
 0x33c   :  { %v6132_v43 = vpop.eup %6131  ;;  %4714 = vst.msk [vmem:[%s9479_s10 + $0xe8] sm:$0xff] %vm4684_vm3, %v4681_v8  ;;  %v4648_v63 = vmul.f32 %v6130_v18, %v4647_v11 }
 0x33d   :  { %v4636_v19 = vmul.f32 0.6931472, %v6132_v43 }
 0x33f   :  { %v4642_v9 = vsel %vm4641_vm4, %v4639_v49, %v4636_v19 }
 0x340   :  { %v4682_v37 = vadd.f32 %v4642_v9, %v4234_v3 }
 0x342   :  { %4715 = vst.msk [vmem:[%s9479_s10 + $0xf0] sm:$0xff] %vm4684_vm3, %v4682_v37 }
 0x347   :  { %v6134_v62 = vpop.eup %6133 }
 0x348   :  { %v4645_v15 = vmul.f32 0.6931472, %v6134_v62 }
 0x34a   :  { %v4651_v61 = vsel %vm4650_vm5, %v4648_v63, %v4645_v15 }
 0x34b   :  { %v4683_v48 = vadd.f32 %v4651_v61, %v4235_v27 }
 0x34d   :  { %4716 = vst.msk [vmem:[%s9479_s10 + $0xf8] sm:$0xff] %vm4684_vm3, %v4683_v48 }

</bundles_post_ra>
